<compile_context>
chip_gen: v7x
topology: tpu7x:2x2x1
jax: 0.10.0
libtpu: 0.0.40
codegen_flags: <defaults>
</compile_context>

<pallas_src>
import functools

import jax
import jax.numpy as jnp
import numpy as np
from jax import lax
from jax.experimental import pallas as pl
from jax.experimental.pallas import tpu as pltpu


# ----------------------------------------------------------------------------
# Single fused kernel: LSTM (T unrolled) -> LN -> spatial MHA -> LN -> fc.
# PyTorch gate order (i, f, g, o); gates = x W_ih^T + h W_hh^T + b_ih + b_hh.
# ----------------------------------------------------------------------------
def tsa_fused_kernel(x_ref, mask_ref, wih_ref, whh_ref, b_ref, gamma_ref,
                     beta_ref, wqkv_ref, bqkv_ref, wo_ref, bo_ref, wfc_ref,
                     bfc_ref, out_ref, gx_ref, *, num_heads):
    B, A = out_ref.shape
    N, T, _ = gx_ref.shape                       # N = B * A
    H = whh_ref.shape[0]
    hd = H // num_heads
    scale = 1.0 / float(np.sqrt(hd))

    gamma = gamma_ref[...]                       # (1, H)
    beta = beta_ref[...]                         # (1, H)

    def layer_norm(z):                           # LN over the last (H) axis
        mu = jnp.mean(z, axis=-1, keepdims=True)
        var = jnp.mean(jnp.square(z - mu), axis=-1, keepdims=True)
        return (z - mu) * lax.rsqrt(var + 1e-5) * gamma + beta

    # ---- hoisted LSTM input projection: ONE (N*T, F) x (F, 4H) matmul ----
    gates_x = (jnp.dot(x_ref[...], wih_ref[...],
                       preferred_element_type=jnp.float32)
               + b_ref[...])                     # bias added once for all T
    gx_ref[...] = gates_x.reshape(N, T, 4 * H)

    # ---- LSTM recurrence, fully unrolled: only h @ W_hh per step ----
    whh = whh_ref[...]                           # (H, 4H), stays resident
    h = jnp.zeros((N, H), jnp.float32)
    c = jnp.zeros((N, H), jnp.float32)
    for t in range(T):
        gates = gx_ref[:, t, :] + jnp.dot(h, whh,
                                          preferred_element_type=jnp.float32)
        sig = jax.nn.sigmoid(gates)              # one full-width (N,4H) pass
        i_g = sig[:, 0:H]
        f_g = sig[:, H:2 * H]
        o_g = sig[:, 3 * H:4 * H]
        g_g = jnp.tanh(gates[:, 2 * H:3 * H])
        c = f_g * c + i_g * g_g
        h = o_g * jnp.tanh(c)

    hn = layer_norm(h)                           # (N, H)

    # ---- spatial MHA over assets: fused QKV projection (one matmul) ----
    qkv = (jnp.dot(hn, wqkv_ref[...], preferred_element_type=jnp.float32)
           + bqkv_ref[...])                      # (N, 3H)
    mask = mask_ref[...]                         # (N, N) additive block mask

    attn = jnp.zeros((N, H), jnp.float32)
    for g in range(num_heads):
        q_g = qkv[:, g * hd:(g + 1) * hd]                   # (N, hd)
        k_g = qkv[:, H + g * hd:H + (g + 1) * hd]           # (N, hd)
        v_g = qkv[:, 2 * H + g * hd:2 * H + (g + 1) * hd]   # (N, hd)
        s = (jnp.dot(q_g, k_g.T, preferred_element_type=jnp.float32) * scale
             + mask)                                        # (N, N)
        s = s - jnp.max(s, axis=-1, keepdims=True)
        e = jnp.exp(s)
        p = e * pl.reciprocal(jnp.sum(e, axis=-1, keepdims=True), approx=True)
        ctx_g = jnp.dot(p, v_g, preferred_element_type=jnp.float32)  # (N, hd)
        # accumulate ctx_g @ W_o[head rows]  (== concat(heads) @ W_o)
        attn = attn + jnp.dot(ctx_g, wo_ref[g * hd:(g + 1) * hd, :],
                              preferred_element_type=jnp.float32)
    attn = attn + bo_ref[...]

    # ---- residual + LayerNorm (shared gamma/beta) + Linear(H -> 1) ----
    res = layer_norm(attn + hn)                  # (N, H)
    res3 = res.reshape(B, A, H)
    logits = jnp.sum(res3 * wfc_ref[...], axis=-1) + bfc_ref[0, 0]   # (B, A)
    out_ref[...] = logits.astype(out_ref.dtype)


def temporal_spatial_forward(x, params, num_heads):
    """x: (batch B, asset A, seq T, feat F) -> logits (B, A)."""
    B, A, T, F = x.shape
    N = B * A
    H = params['whh_t'].shape[0]

    # pure metadata reshape -- no transpose pass over HBM
    x2 = x.reshape(N * T, F).astype(jnp.float32)

    # additive block-diagonal mask: each asset only attends within its batch
    ids = np.arange(N) // A
    attn_mask = jnp.asarray(
        np.where(ids[:, None] == ids[None, :], 0.0, -1e30), dtype=jnp.float32)

    vmem_spec = pl.BlockSpec(memory_space=pltpu.MemorySpace.VMEM)
    inputs = (x2, attn_mask, params['wih_t'], params['whh_t'], params['b'],
              params['gamma'], params['beta'], params['wqkv_t'],
              params['bqkv'], params['wo_t'], params['bo'],
              params['wfc'], params['bfc'])
    return pl.pallas_call(
        functools.partial(tsa_fused_kernel, num_heads=num_heads),
        out_shape=jax.ShapeDtypeStruct((B, A), jnp.float32),
        in_specs=[vmem_spec] * len(inputs),
        out_specs=vmem_spec,
        scratch_shapes=[pltpu.VMEM((N, T, 4 * H), jnp.float32)],
    )(*inputs)


# ----------------------------------------------------------------------------
# Pure-JAX reference for validation (mirrors the PyTorch module semantics).
# ----------------------------------------------------------------------------
def reference_forward(x, params, num_heads):
    B, A, T, F = x.shape
    H = params['whh_t'].shape[0]
    xf = jnp.transpose(x.reshape(B * A, T, F), (1, 0, 2))

    def step(carry, xt):
        h, c = carry
        g = xt @ params['wih_t'] + h @ params['whh_t'] + params['b'][0]
        i = jax.nn.sigmoid(g[:, :H])
        f = jax.nn.sigmoid(g[:, H:2 * H])
        gg = jnp.tanh(g[:, 2 * H:3 * H])
        o = jax.nn.sigmoid(g[:, 3 * H:])
        c = f * c + i * gg
        h = o * jnp.tanh(c)
        return (h, c), None

    h0 = jnp.zeros((B * A, H), jnp.float32)
    (h, _), _ = lax.scan(step, (h0, h0), xf)

    def ln(z):
        mu = z.mean(-1, keepdims=True)
        var = ((z - mu) ** 2).mean(-1, keepdims=True)
        return (z - mu) / jnp.sqrt(var + 1e-5) * params['gamma'][0] + params['beta'][0]

    h = ln(h).reshape(B, A, H)
    q = h @ params['wq_t'] + params['bq'][0]
    k = h @ params['wk_t'] + params['bk'][0]
    v = h @ params['wv_t'] + params['bv'][0]
    hd = H // num_heads
    ctxs = []
    for i in range(num_heads):
        sl = slice(i * hd, (i + 1) * hd)
        s = jnp.einsum('bad,bkd->bak', q[..., sl], k[..., sl]) / jnp.sqrt(1.0 * hd)
        p = jax.nn.softmax(s, -1)
        ctxs.append(jnp.einsum('bak,bkd->bad', p, v[..., sl]))
    ctx = jnp.concatenate(ctxs, -1)
    ao = ctx @ params['wo_t'] + params['bo'][0]
    r = ln(ao + h)
    return jnp.sum(r * params['wfc'][0], -1) + params['bfc'][0, 0]


if __name__ == "__main__":
    B, A, T, Fdim = 2, 8, 8, 16     # batch, assets, seq_len, input_dim
    H, NH, OUT = 32, 4, 1           # hidden_dim, num_heads, output_dim

    key = jax.random.PRNGKey(0)
    ks = jax.random.split(key, 20)
    rn = lambda k, s: (0.1 * jax.random.normal(k, s)).astype(jnp.float32)

    x = jax.random.normal(ks[0], (B, A, T, Fdim), jnp.float32)

    # LSTM params (PyTorch: weight_ih (4H,F), weight_hh (4H,H), biases (4H,))
    wih = rn(ks[1], (4 * H, Fdim))
    whh = rn(ks[2], (4 * H, H))
    b_ih = rn(ks[3], (4 * H,))
    b_hh = rn(ks[4], (4 * H,))
    # LayerNorm
    gamma = (1.0 + 0.1 * jax.random.normal(ks[5], (H,))).astype(jnp.float32)
    beta = rn(ks[6], (H,))
    # MHA (in_proj split into q/k/v; out_proj (H,H))
    wq = rn(ks[7], (H, H)); wk = rn(ks[8], (H, H)); wv = rn(ks[9], (H, H))
    bq = rn(ks[10], (H,)); bk = rn(ks[11], (H,)); bv = rn(ks[12], (H,))
    wo = rn(ks[13], (H, H)); bo = rn(ks[14], (H,))
    # fc (OUT=1)
    wfc = rn(ks[15], (OUT, H)); bfc = rn(ks[16], (OUT,))

    params = dict(
        wih_t=wih.T, whh_t=whh.T, b=(b_ih + b_hh).reshape(1, 4 * H),
        gamma=gamma.reshape(1, H), beta=beta.reshape(1, H),
        # separate projections (reference) and fused QKV (kernel)
        wq_t=wq.T, wk_t=wk.T, wv_t=wv.T,
        bq=bq.reshape(1, H), bk=bk.reshape(1, H), bv=bv.reshape(1, H),
        wqkv_t=jnp.concatenate([wq.T, wk.T, wv.T], axis=1),   # (H, 3H)
        bqkv=jnp.concatenate([bq, bk, bv]).reshape(1, 3 * H),
        wo_t=wo.T, bo=bo.reshape(1, H),
        wfc=wfc.reshape(1, H), bfc=bfc.reshape(1, 1),
    )

    out = jax.block_until_ready(temporal_spatial_forward(x, params, NH))
    ref = jax.block_until_ready(reference_forward(x, params, NH))
    np.testing.assert_allclose(np.asarray(out), np.asarray(ref),
                               rtol=2e-3, atol=2e-3)
    assert out.shape == (B, A)
    print("KERNEL_OK")
</pallas_src>

<mosaic_0001>
module attributes {stable_mosaic.version = 11 : i64} {
  func.func @tsa_fused_kernel(%arg0: memref<128x16xf32, #tpu.memory_space<vmem>>, %arg1: memref<16x16xf32, #tpu.memory_space<vmem>>, %arg2: memref<16x128xf32, #tpu.memory_space<vmem>>, %arg3: memref<32x128xf32, #tpu.memory_space<vmem>>, %arg4: memref<1x128xf32, #tpu.memory_space<vmem>>, %arg5: memref<1x32xf32, #tpu.memory_space<vmem>>, %arg6: memref<1x32xf32, #tpu.memory_space<vmem>>, %arg7: memref<32x96xf32, #tpu.memory_space<vmem>>, %arg8: memref<1x96xf32, #tpu.memory_space<vmem>>, %arg9: memref<32x32xf32, #tpu.memory_space<vmem>>, %arg10: memref<1x32xf32, #tpu.memory_space<vmem>>, %arg11: memref<1x32xf32, #tpu.memory_space<vmem>>, %arg12: memref<1x1xf32, #tpu.memory_space<vmem>>, %arg13: memref<2x8xf32, #tpu.memory_space<vmem>>, %arg14: memref<16x8x128xf32, #tpu.memory_space<vmem>>) attributes {dimension_semantics = [], scalar_prefetch = 0 : i64, scratch_operands = 1 : i64, tpu.core_type = #tpu.core_type<tc>} {
    %c0 = arith.constant 0 : index
    %c0_0 = arith.constant 0 : index
    %0 = vector.load %arg5[%c0, %c0_0] : memref<1x32xf32, #tpu.memory_space<vmem>>, vector<1x32xf32>
    %c0_1 = arith.constant 0 : index
    %c0_2 = arith.constant 0 : index
    %1 = vector.load %arg6[%c0_1, %c0_2] : memref<1x32xf32, #tpu.memory_space<vmem>>, vector<1x32xf32>
    %c0_3 = arith.constant 0 : index
    %c0_4 = arith.constant 0 : index
    %2 = vector.load %arg0[%c0_3, %c0_4] : memref<128x16xf32, #tpu.memory_space<vmem>>, vector<128x16xf32>
    %c0_5 = arith.constant 0 : index
    %c0_6 = arith.constant 0 : index
    %3 = vector.load %arg2[%c0_5, %c0_6] : memref<16x128xf32, #tpu.memory_space<vmem>>, vector<16x128xf32>
    %cst = arith.constant dense<0.000000e+00> : vector<128x128xf32>
    %4 = tpu.matmul %2, %3, %cst {dimension_numbers = #tpu.dot_dimension_numbers<[1], [0], [0], [1], [0, 0, 1, 1], [], []>} : vector<128x16xf32>, vector<16x128xf32>, vector<128x128xf32> -> vector<128x128xf32>
    %c0_7 = arith.constant 0 : index
    %c0_8 = arith.constant 0 : index
    %5 = vector.load %arg4[%c0_7, %c0_8] : memref<1x128xf32, #tpu.memory_space<vmem>>, vector<1x128xf32>
    %6 = vector.broadcast %5 : vector<1x128xf32> to vector<128x128xf32>
    %7 = arith.addf %4, %6 : vector<128x128xf32>
    %8 = vector.shape_cast %7 : vector<128x128xf32> to vector<16x8x128xf32>
    %c0_9 = arith.constant 0 : index
    %c0_10 = arith.constant 0 : index
    %c0_11 = arith.constant 0 : index
    %9 = vector.load %arg14[%c0_9, %c0_10, %c0_11] : memref<16x8x128xf32, #tpu.memory_space<vmem>>, vector<16x8x128xf32>
    tpu.vector_store %arg14[%c0_9, %c0_10, %c0_11], %8 {strides = array<i32>} : memref<16x8x128xf32, #tpu.memory_space<vmem>>, vector<16x8x128xf32>,
    %c0_12 = arith.constant 0 : index
    %c0_13 = arith.constant 0 : index
    %10 = vector.load %arg3[%c0_12, %c0_13] : memref<32x128xf32, #tpu.memory_space<vmem>>, vector<32x128xf32>
    %cst_14 = arith.constant 0.000000e+00 : f32
    %11 = vector.broadcast %cst_14 : f32 to vector<16x32xf32>
    %cst_15 = arith.constant 0.000000e+00 : f32
    %12 = vector.broadcast %cst_15 : f32 to vector<16x32xf32>
    %c0_16 = arith.constant 0 : index
    %c0_17 = arith.constant 0 : index
    %c0_18 = arith.constant 0 : index
    %13 = vector.load %arg14[%c0_16, %c0_17, %c0_18] : memref<16x8x128xf32, #tpu.memory_space<vmem>>, vector<16x1x128xf32>
    %14 = vector.shape_cast %13 : vector<16x1x128xf32> to vector<16x128xf32>
    %cst_19 = arith.constant dense<0.000000e+00> : vector<16x128xf32>
    %15 = tpu.matmul %11, %10, %cst_19 {dimension_numbers = #tpu.dot_dimension_numbers<[1], [0], [0], [1], [0, 0, 1, 1], [], []>} : vector<16x32xf32>, vector<32x128xf32>, vector<16x128xf32> -> vector<16x128xf32>
    %16 = arith.addf %14, %15 : vector<16x128xf32>
    %17 = arith.negf %16 : vector<16x128xf32>
    %18 = math.exp %17 : vector<16x128xf32>
    %cst_20 = arith.constant 1.000000e+00 : f32
    %19 = vector.broadcast %cst_20 : f32 to vector<16x128xf32>
    %20 = arith.addf %19, %18 : vector<16x128xf32>
    %21 = arith.divf %19, %20 : vector<16x128xf32>
    %22 = vector.extract_strided_slice %21 {offsets = [0, 0], sizes = [16, 32], strides = [1, 1]} : vector<16x128xf32> to vector<16x32xf32>
    %23 = vector.extract_strided_slice %21 {offsets = [0, 32], sizes = [16, 32], strides = [1, 1]} : vector<16x128xf32> to vector<16x32xf32>
    %24 = vector.extract_strided_slice %21 {offsets = [0, 96], sizes = [16, 32], strides = [1, 1]} : vector<16x128xf32> to vector<16x32xf32>
    %25 = vector.extract_strided_slice %16 {offsets = [0, 64], sizes = [16, 32], strides = [1, 1]} : vector<16x128xf32> to vector<16x32xf32>
    %26 = math.tanh %25 : vector<16x32xf32>
    %27 = arith.mulf %23, %12 : vector<16x32xf32>
    %28 = arith.mulf %22, %26 : vector<16x32xf32>
    %29 = arith.addf %27, %28 : vector<16x32xf32>
    %30 = math.tanh %29 : vector<16x32xf32>
    %31 = arith.mulf %24, %30 : vector<16x32xf32>
    %c0_21 = arith.constant 0 : index
    %c1 = arith.constant 1 : index
    %c0_22 = arith.constant 0 : index
    %32 = vector.load %arg14[%c0_21, %c1, %c0_22] : memref<16x8x128xf32, #tpu.memory_space<vmem>>, vector<16x1x128xf32>
    %33 = vector.shape_cast %32 : vector<16x1x128xf32> to vector<16x128xf32>
    %cst_23 = arith.constant dense<0.000000e+00> : vector<16x128xf32>
    %34 = tpu.matmul %31, %10, %cst_23 {dimension_numbers = #tpu.dot_dimension_numbers<[1], [0], [0], [1], [0, 0, 1, 1], [], []>} : vector<16x32xf32>, vector<32x128xf32>, vector<16x128xf32> -> vector<16x128xf32>
    %35 = arith.addf %33, %34 : vector<16x128xf32>
    %36 = arith.negf %35 : vector<16x128xf32>
    %37 = math.exp %36 : vector<16x128xf32>
    %cst_24 = arith.constant 1.000000e+00 : f32
    %38 = vector.broadcast %cst_24 : f32 to vector<16x128xf32>
    %39 = arith.addf %38, %37 : vector<16x128xf32>
    %40 = arith.divf %38, %39 : vector<16x128xf32>
    %41 = vector.extract_strided_slice %40 {offsets = [0, 0], sizes = [16, 32], strides = [1, 1]} : vector<16x128xf32> to vector<16x32xf32>
    %42 = vector.extract_strided_slice %40 {offsets = [0, 32], sizes = [16, 32], strides = [1, 1]} : vector<16x128xf32> to vector<16x32xf32>
    %43 = vector.extract_strided_slice %40 {offsets = [0, 96], sizes = [16, 32], strides = [1, 1]} : vector<16x128xf32> to vector<16x32xf32>
    %44 = vector.extract_strided_slice %35 {offsets = [0, 64], sizes = [16, 32], strides = [1, 1]} : vector<16x128xf32> to vector<16x32xf32>
    %45 = math.tanh %44 : vector<16x32xf32>
    %46 = arith.mulf %42, %29 : vector<16x32xf32>
    %47 = arith.mulf %41, %45 : vector<16x32xf32>
    %48 = arith.addf %46, %47 : vector<16x32xf32>
    %49 = math.tanh %48 : vector<16x32xf32>
    %50 = arith.mulf %43, %49 : vector<16x32xf32>
    %c0_25 = arith.constant 0 : index
    %c2 = arith.constant 2 : index
    %c0_26 = arith.constant 0 : index
    %51 = vector.load %arg14[%c0_25, %c2, %c0_26] : memref<16x8x128xf32, #tpu.memory_space<vmem>>, vector<16x1x128xf32>
    %52 = vector.shape_cast %51 : vector<16x1x128xf32> to vector<16x128xf32>
    %cst_27 = arith.constant dense<0.000000e+00> : vector<16x128xf32>
    %53 = tpu.matmul %50, %10, %cst_27 {dimension_numbers = #tpu.dot_dimension_numbers<[1], [0], [0], [1], [0, 0, 1, 1], [], []>} : vector<16x32xf32>, vector<32x128xf32>, vector<16x128xf32> -> vector<16x128xf32>
    %54 = arith.addf %52, %53 : vector<16x128xf32>
    %55 = arith.negf %54 : vector<16x128xf32>
    %56 = math.exp %55 : vector<16x128xf32>
    %cst_28 = arith.constant 1.000000e+00 : f32
    %57 = vector.broadcast %cst_28 : f32 to vector<16x128xf32>
    %58 = arith.addf %57, %56 : vector<16x128xf32>
    %59 = arith.divf %57, %58 : vector<16x128xf32>
    %60 = vector.extract_strided_slice %59 {offsets = [0, 0], sizes = [16, 32], strides = [1, 1]} : vector<16x128xf32> to vector<16x32xf32>
    %61 = vector.extract_strided_slice %59 {offsets = [0, 32], sizes = [16, 32], strides = [1, 1]} : vector<16x128xf32> to vector<16x32xf32>
    %62 = vector.extract_strided_slice %59 {offsets = [0, 96], sizes = [16, 32], strides = [1, 1]} : vector<16x128xf32> to vector<16x32xf32>
    %63 = vector.extract_strided_slice %54 {offsets = [0, 64], sizes = [16, 32], strides = [1, 1]} : vector<16x128xf32> to vector<16x32xf32>
    %64 = math.tanh %63 : vector<16x32xf32>
    %65 = arith.mulf %61, %48 : vector<16x32xf32>
    %66 = arith.mulf %60, %64 : vector<16x32xf32>
    %67 = arith.addf %65, %66 : vector<16x32xf32>
    %68 = math.tanh %67 : vector<16x32xf32>
    %69 = arith.mulf %62, %68 : vector<16x32xf32>
    %c0_29 = arith.constant 0 : index
    %c3 = arith.constant 3 : index
    %c0_30 = arith.constant 0 : index
    %70 = vector.load %arg14[%c0_29, %c3, %c0_30] : memref<16x8x128xf32, #tpu.memory_space<vmem>>, vector<16x1x128xf32>
    %71 = vector.shape_cast %70 : vector<16x1x128xf32> to vector<16x128xf32>
    %cst_31 = arith.constant dense<0.000000e+00> : vector<16x128xf32>
    %72 = tpu.matmul %69, %10, %cst_31 {dimension_numbers = #tpu.dot_dimension_numbers<[1], [0], [0], [1], [0, 0, 1, 1], [], []>} : vector<16x32xf32>, vector<32x128xf32>, vector<16x128xf32> -> vector<16x128xf32>
    %73 = arith.addf %71, %72 : vector<16x128xf32>
    %74 = arith.negf %73 : vector<16x128xf32>
    %75 = math.exp %74 : vector<16x128xf32>
    %cst_32 = arith.constant 1.000000e+00 : f32
    %76 = vector.broadcast %cst_32 : f32 to vector<16x128xf32>
    %77 = arith.addf %76, %75 : vector<16x128xf32>
    %78 = arith.divf %76, %77 : vector<16x128xf32>
    %79 = vector.extract_strided_slice %78 {offsets = [0, 0], sizes = [16, 32], strides = [1, 1]} : vector<16x128xf32> to vector<16x32xf32>
    %80 = vector.extract_strided_slice %78 {offsets = [0, 32], sizes = [16, 32], strides = [1, 1]} : vector<16x128xf32> to vector<16x32xf32>
    %81 = vector.extract_strided_slice %78 {offsets = [0, 96], sizes = [16, 32], strides = [1, 1]} : vector<16x128xf32> to vector<16x32xf32>
    %82 = vector.extract_strided_slice %73 {offsets = [0, 64], sizes = [16, 32], strides = [1, 1]} : vector<16x128xf32> to vector<16x32xf32>
    %83 = math.tanh %82 : vector<16x32xf32>
    %84 = arith.mulf %80, %67 : vector<16x32xf32>
    %85 = arith.mulf %79, %83 : vector<16x32xf32>
    %86 = arith.addf %84, %85 : vector<16x32xf32>
    %87 = math.tanh %86 : vector<16x32xf32>
    %88 = arith.mulf %81, %87 : vector<16x32xf32>
    %c0_33 = arith.constant 0 : index
    %c4 = arith.constant 4 : index
    %c0_34 = arith.constant 0 : index
    %89 = vector.load %arg14[%c0_33, %c4, %c0_34] : memref<16x8x128xf32, #tpu.memory_space<vmem>>, vector<16x1x128xf32>
    %90 = vector.shape_cast %89 : vector<16x1x128xf32> to vector<16x128xf32>
    %cst_35 = arith.constant dense<0.000000e+00> : vector<16x128xf32>
    %91 = tpu.matmul %88, %10, %cst_35 {dimension_numbers = #tpu.dot_dimension_numbers<[1], [0], [0], [1], [0, 0, 1, 1], [], []>} : vector<16x32xf32>, vector<32x128xf32>, vector<16x128xf32> -> vector<16x128xf32>
    %92 = arith.addf %90, %91 : vector<16x128xf32>
    %93 = arith.negf %92 : vector<16x128xf32>
    %94 = math.exp %93 : vector<16x128xf32>
    %cst_36 = arith.constant 1.000000e+00 : f32
    %95 = vector.broadcast %cst_36 : f32 to vector<16x128xf32>
    %96 = arith.addf %95, %94 : vector<16x128xf32>
    %97 = arith.divf %95, %96 : vector<16x128xf32>
    %98 = vector.extract_strided_slice %97 {offsets = [0, 0], sizes = [16, 32], strides = [1, 1]} : vector<16x128xf32> to vector<16x32xf32>
    %99 = vector.extract_strided_slice %97 {offsets = [0, 32], sizes = [16, 32], strides = [1, 1]} : vector<16x128xf32> to vector<16x32xf32>
    %100 = vector.extract_strided_slice %97 {offsets = [0, 96], sizes = [16, 32], strides = [1, 1]} : vector<16x128xf32> to vector<16x32xf32>
    %101 = vector.extract_strided_slice %92 {offsets = [0, 64], sizes = [16, 32], strides = [1, 1]} : vector<16x128xf32> to vector<16x32xf32>
    %102 = math.tanh %101 : vector<16x32xf32>
    %103 = arith.mulf %99, %86 : vector<16x32xf32>
    %104 = arith.mulf %98, %102 : vector<16x32xf32>
    %105 = arith.addf %103, %104 : vector<16x32xf32>
    %106 = math.tanh %105 : vector<16x32xf32>
    %107 = arith.mulf %100, %106 : vector<16x32xf32>
    %c0_37 = arith.constant 0 : index
    %c5 = arith.constant 5 : index
    %c0_38 = arith.constant 0 : index
    %108 = vector.load %arg14[%c0_37, %c5, %c0_38] : memref<16x8x128xf32, #tpu.memory_space<vmem>>, vector<16x1x128xf32>
    %109 = vector.shape_cast %108 : vector<16x1x128xf32> to vector<16x128xf32>
    %cst_39 = arith.constant dense<0.000000e+00> : vector<16x128xf32>
    %110 = tpu.matmul %107, %10, %cst_39 {dimension_numbers = #tpu.dot_dimension_numbers<[1], [0], [0], [1], [0, 0, 1, 1], [], []>} : vector<16x32xf32>, vector<32x128xf32>, vector<16x128xf32> -> vector<16x128xf32>
    %111 = arith.addf %109, %110 : vector<16x128xf32>
    %112 = arith.negf %111 : vector<16x128xf32>
    %113 = math.exp %112 : vector<16x128xf32>
    %cst_40 = arith.constant 1.000000e+00 : f32
    %114 = vector.broadcast %cst_40 : f32 to vector<16x128xf32>
    %115 = arith.addf %114, %113 : vector<16x128xf32>
    %116 = arith.divf %114, %115 : vector<16x128xf32>
    %117 = vector.extract_strided_slice %116 {offsets = [0, 0], sizes = [16, 32], strides = [1, 1]} : vector<16x128xf32> to vector<16x32xf32>
    %118 = vector.extract_strided_slice %116 {offsets = [0, 32], sizes = [16, 32], strides = [1, 1]} : vector<16x128xf32> to vector<16x32xf32>
    %119 = vector.extract_strided_slice %116 {offsets = [0, 96], sizes = [16, 32], strides = [1, 1]} : vector<16x128xf32> to vector<16x32xf32>
    %120 = vector.extract_strided_slice %111 {offsets = [0, 64], sizes = [16, 32], strides = [1, 1]} : vector<16x128xf32> to vector<16x32xf32>
    %121 = math.tanh %120 : vector<16x32xf32>
    %122 = arith.mulf %118, %105 : vector<16x32xf32>
    %123 = arith.mulf %117, %121 : vector<16x32xf32>
    %124 = arith.addf %122, %123 : vector<16x32xf32>
    %125 = math.tanh %124 : vector<16x32xf32>
    %126 = arith.mulf %119, %125 : vector<16x32xf32>
    %c0_41 = arith.constant 0 : index
    %c6 = arith.constant 6 : index
    %c0_42 = arith.constant 0 : index
    %127 = vector.load %arg14[%c0_41, %c6, %c0_42] : memref<16x8x128xf32, #tpu.memory_space<vmem>>, vector<16x1x128xf32>
    %128 = vector.shape_cast %127 : vector<16x1x128xf32> to vector<16x128xf32>
    %cst_43 = arith.constant dense<0.000000e+00> : vector<16x128xf32>
    %129 = tpu.matmul %126, %10, %cst_43 {dimension_numbers = #tpu.dot_dimension_numbers<[1], [0], [0], [1], [0, 0, 1, 1], [], []>} : vector<16x32xf32>, vector<32x128xf32>, vector<16x128xf32> -> vector<16x128xf32>
    %130 = arith.addf %128, %129 : vector<16x128xf32>
    %131 = arith.negf %130 : vector<16x128xf32>
    %132 = math.exp %131 : vector<16x128xf32>
    %cst_44 = arith.constant 1.000000e+00 : f32
    %133 = vector.broadcast %cst_44 : f32 to vector<16x128xf32>
    %134 = arith.addf %133, %132 : vector<16x128xf32>
    %135 = arith.divf %133, %134 : vector<16x128xf32>
    %136 = vector.extract_strided_slice %135 {offsets = [0, 0], sizes = [16, 32], strides = [1, 1]} : vector<16x128xf32> to vector<16x32xf32>
    %137 = vector.extract_strided_slice %135 {offsets = [0, 32], sizes = [16, 32], strides = [1, 1]} : vector<16x128xf32> to vector<16x32xf32>
    %138 = vector.extract_strided_slice %135 {offsets = [0, 96], sizes = [16, 32], strides = [1, 1]} : vector<16x128xf32> to vector<16x32xf32>
    %139 = vector.extract_strided_slice %130 {offsets = [0, 64], sizes = [16, 32], strides = [1, 1]} : vector<16x128xf32> to vector<16x32xf32>
    %140 = math.tanh %139 : vector<16x32xf32>
    %141 = arith.mulf %137, %124 : vector<16x32xf32>
    %142 = arith.mulf %136, %140 : vector<16x32xf32>
    %143 = arith.addf %141, %142 : vector<16x32xf32>
    %144 = math.tanh %143 : vector<16x32xf32>
    %145 = arith.mulf %138, %144 : vector<16x32xf32>
    %c0_45 = arith.constant 0 : index
    %c7 = arith.constant 7 : index
    %c0_46 = arith.constant 0 : index
    %146 = vector.load %arg14[%c0_45, %c7, %c0_46] : memref<16x8x128xf32, #tpu.memory_space<vmem>>, vector<16x1x128xf32>
    %147 = vector.shape_cast %146 : vector<16x1x128xf32> to vector<16x128xf32>
    %cst_47 = arith.constant dense<0.000000e+00> : vector<16x128xf32>
    %148 = tpu.matmul %145, %10, %cst_47 {dimension_numbers = #tpu.dot_dimension_numbers<[1], [0], [0], [1], [0, 0, 1, 1], [], []>} : vector<16x32xf32>, vector<32x128xf32>, vector<16x128xf32> -> vector<16x128xf32>
    %149 = arith.addf %147, %148 : vector<16x128xf32>
    %150 = arith.negf %149 : vector<16x128xf32>
    %151 = math.exp %150 : vector<16x128xf32>
    %cst_48 = arith.constant 1.000000e+00 : f32
    %152 = vector.broadcast %cst_48 : f32 to vector<16x128xf32>
    %153 = arith.addf %152, %151 : vector<16x128xf32>
    %154 = arith.divf %152, %153 : vector<16x128xf32>
    %155 = vector.extract_strided_slice %154 {offsets = [0, 0], sizes = [16, 32], strides = [1, 1]} : vector<16x128xf32> to vector<16x32xf32>
    %156 = vector.extract_strided_slice %154 {offsets = [0, 32], sizes = [16, 32], strides = [1, 1]} : vector<16x128xf32> to vector<16x32xf32>
    %157 = vector.extract_strided_slice %154 {offsets = [0, 96], sizes = [16, 32], strides = [1, 1]} : vector<16x128xf32> to vector<16x32xf32>
    %158 = vector.extract_strided_slice %149 {offsets = [0, 64], sizes = [16, 32], strides = [1, 1]} : vector<16x128xf32> to vector<16x32xf32>
    %159 = math.tanh %158 : vector<16x32xf32>
    %160 = arith.mulf %156, %143 : vector<16x32xf32>
    %161 = arith.mulf %155, %159 : vector<16x32xf32>
    %162 = arith.addf %160, %161 : vector<16x32xf32>
    %163 = math.tanh %162 : vector<16x32xf32>
    %164 = arith.mulf %157, %163 : vector<16x32xf32>
    %cst_49 = arith.constant dense<0.000000e+00> : vector<16xf32>
    %165 = vector.multi_reduction <add>, %164, %cst_49 [1] : vector<16x32xf32> to vector<16xf32>
    %166 = vector.shape_cast %165 : vector<16xf32> to vector<16x1xf32>
    %cst_50 = arith.constant 3.200000e+01 : f32
    %167 = vector.broadcast %cst_50 : f32 to vector<16x1xf32>
    %168 = arith.divf %166, %167 : vector<16x1xf32>
    %169 = vector.broadcast %168 : vector<16x1xf32> to vector<16x32xf32>
    %170 = arith.subf %164, %169 : vector<16x32xf32>
    %171 = arith.mulf %170, %170 : vector<16x32xf32>
    %cst_51 = arith.constant dense<0.000000e+00> : vector<16xf32>
    %172 = vector.multi_reduction <add>, %171, %cst_51 [1] : vector<16x32xf32> to vector<16xf32>
    %173 = vector.shape_cast %172 : vector<16xf32> to vector<16x1xf32>
    %cst_52 = arith.constant 3.200000e+01 : f32
    %174 = vector.broadcast %cst_52 : f32 to vector<16x1xf32>
    %175 = arith.divf %173, %174 : vector<16x1xf32>
    %176 = vector.broadcast %168 : vector<16x1xf32> to vector<16x32xf32>
    %177 = arith.subf %164, %176 : vector<16x32xf32>
    %cst_53 = arith.constant 9.99999974E-6 : f32
    %178 = vector.broadcast %cst_53 : f32 to vector<16x1xf32>
    %179 = arith.addf %175, %178 : vector<16x1xf32>
    %180 = math.rsqrt %179 : vector<16x1xf32>
    %181 = vector.broadcast %180 : vector<16x1xf32> to vector<16x32xf32>
    %182 = arith.mulf %177, %181 : vector<16x32xf32>
    %183 = vector.broadcast %0 : vector<1x32xf32> to vector<16x32xf32>
    %184 = arith.mulf %182, %183 : vector<16x32xf32>
    %185 = vector.broadcast %1 : vector<1x32xf32> to vector<16x32xf32>
    %186 = arith.addf %184, %185 : vector<16x32xf32>
    %c0_54 = arith.constant 0 : index
    %c0_55 = arith.constant 0 : index
    %187 = vector.load %arg7[%c0_54, %c0_55] : memref<32x96xf32, #tpu.memory_space<vmem>>, vector<32x96xf32>
    %cst_56 = arith.constant dense<0.000000e+00> : vector<16x96xf32>
    %188 = tpu.matmul %186, %187, %cst_56 {dimension_numbers = #tpu.dot_dimension_numbers<[1], [0], [0], [1], [0, 0, 1, 1], [], []>} : vector<16x32xf32>, vector<32x96xf32>, vector<16x96xf32> -> vector<16x96xf32>
    %c0_57 = arith.constant 0 : index
    %c0_58 = arith.constant 0 : index
    %189 = vector.load %arg8[%c0_57, %c0_58] : memref<1x96xf32, #tpu.memory_space<vmem>>, vector<1x96xf32>
    %190 = vector.broadcast %189 : vector<1x96xf32> to vector<16x96xf32>
    %191 = arith.addf %188, %190 : vector<16x96xf32>
    %c0_59 = arith.constant 0 : index
    %c0_60 = arith.constant 0 : index
    %192 = vector.load %arg1[%c0_59, %c0_60] : memref<16x16xf32, #tpu.memory_space<vmem>>, vector<16x16xf32>
    %cst_61 = arith.constant 0.000000e+00 : f32
    %193 = vector.broadcast %cst_61 : f32 to vector<16x32xf32>
    %194 = vector.extract_strided_slice %191 {offsets = [0, 0], sizes = [16, 8], strides = [1, 1]} : vector<16x96xf32> to vector<16x8xf32>
    %195 = vector.extract_strided_slice %191 {offsets = [0, 32], sizes = [16, 8], strides = [1, 1]} : vector<16x96xf32> to vector<16x8xf32>
    %196 = vector.extract_strided_slice %191 {offsets = [0, 64], sizes = [16, 8], strides = [1, 1]} : vector<16x96xf32> to vector<16x8xf32>
    %197 = tpu.transpose %195, [1, 0] : vector<16x8xf32> -> vector<8x16xf32>
    %cst_62 = arith.constant dense<0.000000e+00> : vector<16x16xf32>
    %198 = tpu.matmul %194, %197, %cst_62 {dimension_numbers = #tpu.dot_dimension_numbers<[1], [0], [0], [1], [0, 0, 1, 1], [], []>} : vector<16x8xf32>, vector<8x16xf32>, vector<16x16xf32> -> vector<16x16xf32>
    %cst_63 = arith.constant 0.353553385 : f32
    %199 = vector.broadcast %cst_63 : f32 to vector<16x16xf32>
    %200 = arith.mulf %198, %199 : vector<16x16xf32>
    %201 = arith.addf %200, %192 : vector<16x16xf32>
    %cst_64 = arith.constant dense<0xFF800000> : vector<16xf32>
    %202 = vector.multi_reduction <maximumf>, %201, %cst_64 [1] : vector<16x16xf32> to vector<16xf32>
    %203 = vector.shape_cast %202 : vector<16xf32> to vector<16x1xf32>
    %204 = vector.broadcast %203 : vector<16x1xf32> to vector<16x16xf32>
    %205 = arith.subf %201, %204 : vector<16x16xf32>
    %206 = math.exp %205 : vector<16x16xf32>
    %cst_65 = arith.constant dense<0.000000e+00> : vector<16xf32>
    %207 = vector.multi_reduction <add>, %206, %cst_65 [1] : vector<16x16xf32> to vector<16xf32>
    %208 = vector.shape_cast %207 : vector<16xf32> to vector<16x1xf32>
    %209 = tpu.reciprocal %208 {approx = true} : vector<16x1xf32> -> vector<16x1xf32>
    %210 = vector.broadcast %209 : vector<16x1xf32> to vector<16x16xf32>
    %211 = arith.mulf %206, %210 : vector<16x16xf32>
    %cst_66 = arith.constant dense<0.000000e+00> : vector<16x8xf32>
    %212 = tpu.matmul %211, %196, %cst_66 {dimension_numbers = #tpu.dot_dimension_numbers<[1], [0], [0], [1], [0, 0, 1, 1], [], []>} : vector<16x16xf32>, vector<16x8xf32>, vector<16x8xf32> -> vector<16x8xf32>
    %c0_67 = arith.constant 0 : index
    %c0_68 = arith.constant 0 : index
    %213 = vector.load %arg9[%c0_67, %c0_68] : memref<32x32xf32, #tpu.memory_space<vmem>>, vector<8x32xf32>
    %cst_69 = arith.constant dense<0.000000e+00> : vector<16x32xf32>
    %214 = tpu.matmul %212, %213, %cst_69 {dimension_numbers = #tpu.dot_dimension_numbers<[1], [0], [0], [1], [0, 0, 1, 1], [], []>} : vector<16x8xf32>, vector<8x32xf32>, vector<16x32xf32> -> vector<16x32xf32>
    %215 = arith.addf %193, %214 : vector<16x32xf32>
    %216 = vector.extract_strided_slice %191 {offsets = [0, 8], sizes = [16, 8], strides = [1, 1]} : vector<16x96xf32> to vector<16x8xf32>
    %217 = vector.extract_strided_slice %191 {offsets = [0, 40], sizes = [16, 8], strides = [1, 1]} : vector<16x96xf32> to vector<16x8xf32>
    %218 = vector.extract_strided_slice %191 {offsets = [0, 72], sizes = [16, 8], strides = [1, 1]} : vector<16x96xf32> to vector<16x8xf32>
    %219 = tpu.transpose %217, [1, 0] : vector<16x8xf32> -> vector<8x16xf32>
    %cst_70 = arith.constant dense<0.000000e+00> : vector<16x16xf32>
    %220 = tpu.matmul %216, %219, %cst_70 {dimension_numbers = #tpu.dot_dimension_numbers<[1], [0], [0], [1], [0, 0, 1, 1], [], []>} : vector<16x8xf32>, vector<8x16xf32>, vector<16x16xf32> -> vector<16x16xf32>
    %cst_71 = arith.constant 0.353553385 : f32
    %221 = vector.broadcast %cst_71 : f32 to vector<16x16xf32>
    %222 = arith.mulf %220, %221 : vector<16x16xf32>
    %223 = arith.addf %222, %192 : vector<16x16xf32>
    %cst_72 = arith.constant dense<0xFF800000> : vector<16xf32>
    %224 = vector.multi_reduction <maximumf>, %223, %cst_72 [1] : vector<16x16xf32> to vector<16xf32>
    %225 = vector.shape_cast %224 : vector<16xf32> to vector<16x1xf32>
    %226 = vector.broadcast %225 : vector<16x1xf32> to vector<16x16xf32>
    %227 = arith.subf %223, %226 : vector<16x16xf32>
    %228 = math.exp %227 : vector<16x16xf32>
    %cst_73 = arith.constant dense<0.000000e+00> : vector<16xf32>
    %229 = vector.multi_reduction <add>, %228, %cst_73 [1] : vector<16x16xf32> to vector<16xf32>
    %230 = vector.shape_cast %229 : vector<16xf32> to vector<16x1xf32>
    %231 = tpu.reciprocal %230 {approx = true} : vector<16x1xf32> -> vector<16x1xf32>
    %232 = vector.broadcast %231 : vector<16x1xf32> to vector<16x16xf32>
    %233 = arith.mulf %228, %232 : vector<16x16xf32>
    %cst_74 = arith.constant dense<0.000000e+00> : vector<16x8xf32>
    %234 = tpu.matmul %233, %218, %cst_74 {dimension_numbers = #tpu.dot_dimension_numbers<[1], [0], [0], [1], [0, 0, 1, 1], [], []>} : vector<16x16xf32>, vector<16x8xf32>, vector<16x8xf32> -> vector<16x8xf32>
    %c8 = arith.constant 8 : index
    %c0_75 = arith.constant 0 : index
    %235 = vector.load %arg9[%c8, %c0_75] : memref<32x32xf32, #tpu.memory_space<vmem>>, vector<8x32xf32>
    %cst_76 = arith.constant dense<0.000000e+00> : vector<16x32xf32>
    %236 = tpu.matmul %234, %235, %cst_76 {dimension_numbers = #tpu.dot_dimension_numbers<[1], [0], [0], [1], [0, 0, 1, 1], [], []>} : vector<16x8xf32>, vector<8x32xf32>, vector<16x32xf32> -> vector<16x32xf32>
    %237 = arith.addf %215, %236 : vector<16x32xf32>
    %238 = vector.extract_strided_slice %191 {offsets = [0, 16], sizes = [16, 8], strides = [1, 1]} : vector<16x96xf32> to vector<16x8xf32>
    %239 = vector.extract_strided_slice %191 {offsets = [0, 48], sizes = [16, 8], strides = [1, 1]} : vector<16x96xf32> to vector<16x8xf32>
    %240 = vector.extract_strided_slice %191 {offsets = [0, 80], sizes = [16, 8], strides = [1, 1]} : vector<16x96xf32> to vector<16x8xf32>
    %241 = tpu.transpose %239, [1, 0] : vector<16x8xf32> -> vector<8x16xf32>
    %cst_77 = arith.constant dense<0.000000e+00> : vector<16x16xf32>
    %242 = tpu.matmul %238, %241, %cst_77 {dimension_numbers = #tpu.dot_dimension_numbers<[1], [0], [0], [1], [0, 0, 1, 1], [], []>} : vector<16x8xf32>, vector<8x16xf32>, vector<16x16xf32> -> vector<16x16xf32>
    %cst_78 = arith.constant 0.353553385 : f32
    %243 = vector.broadcast %cst_78 : f32 to vector<16x16xf32>
    %244 = arith.mulf %242, %243 : vector<16x16xf32>
    %245 = arith.addf %244, %192 : vector<16x16xf32>
    %cst_79 = arith.constant dense<0xFF800000> : vector<16xf32>
    %246 = vector.multi_reduction <maximumf>, %245, %cst_79 [1] : vector<16x16xf32> to vector<16xf32>
    %247 = vector.shape_cast %246 : vector<16xf32> to vector<16x1xf32>
    %248 = vector.broadcast %247 : vector<16x1xf32> to vector<16x16xf32>
    %249 = arith.subf %245, %248 : vector<16x16xf32>
    %250 = math.exp %249 : vector<16x16xf32>
    %cst_80 = arith.constant dense<0.000000e+00> : vector<16xf32>
    %251 = vector.multi_reduction <add>, %250, %cst_80 [1] : vector<16x16xf32> to vector<16xf32>
    %252 = vector.shape_cast %251 : vector<16xf32> to vector<16x1xf32>
    %253 = tpu.reciprocal %252 {approx = true} : vector<16x1xf32> -> vector<16x1xf32>
    %254 = vector.broadcast %253 : vector<16x1xf32> to vector<16x16xf32>
    %255 = arith.mulf %250, %254 : vector<16x16xf32>
    %cst_81 = arith.constant dense<0.000000e+00> : vector<16x8xf32>
    %256 = tpu.matmul %255, %240, %cst_81 {dimension_numbers = #tpu.dot_dimension_numbers<[1], [0], [0], [1], [0, 0, 1, 1], [], []>} : vector<16x16xf32>, vector<16x8xf32>, vector<16x8xf32> -> vector<16x8xf32>
    %c16 = arith.constant 16 : index
    %c0_82 = arith.constant 0 : index
    %257 = vector.load %arg9[%c16, %c0_82] : memref<32x32xf32, #tpu.memory_space<vmem>>, vector<8x32xf32>
    %cst_83 = arith.constant dense<0.000000e+00> : vector<16x32xf32>
    %258 = tpu.matmul %256, %257, %cst_83 {dimension_numbers = #tpu.dot_dimension_numbers<[1], [0], [0], [1], [0, 0, 1, 1], [], []>} : vector<16x8xf32>, vector<8x32xf32>, vector<16x32xf32> -> vector<16x32xf32>
    %259 = arith.addf %237, %258 : vector<16x32xf32>
    %260 = vector.extract_strided_slice %191 {offsets = [0, 24], sizes = [16, 8], strides = [1, 1]} : vector<16x96xf32> to vector<16x8xf32>
    %261 = vector.extract_strided_slice %191 {offsets = [0, 56], sizes = [16, 8], strides = [1, 1]} : vector<16x96xf32> to vector<16x8xf32>
    %262 = vector.extract_strided_slice %191 {offsets = [0, 88], sizes = [16, 8], strides = [1, 1]} : vector<16x96xf32> to vector<16x8xf32>
    %263 = tpu.transpose %261, [1, 0] : vector<16x8xf32> -> vector<8x16xf32>
    %cst_84 = arith.constant dense<0.000000e+00> : vector<16x16xf32>
    %264 = tpu.matmul %260, %263, %cst_84 {dimension_numbers = #tpu.dot_dimension_numbers<[1], [0], [0], [1], [0, 0, 1, 1], [], []>} : vector<16x8xf32>, vector<8x16xf32>, vector<16x16xf32> -> vector<16x16xf32>
    %cst_85 = arith.constant 0.353553385 : f32
    %265 = vector.broadcast %cst_85 : f32 to vector<16x16xf32>
    %266 = arith.mulf %264, %265 : vector<16x16xf32>
    %267 = arith.addf %266, %192 : vector<16x16xf32>
    %cst_86 = arith.constant dense<0xFF800000> : vector<16xf32>
    %268 = vector.multi_reduction <maximumf>, %267, %cst_86 [1] : vector<16x16xf32> to vector<16xf32>
    %269 = vector.shape_cast %268 : vector<16xf32> to vector<16x1xf32>
    %270 = vector.broadcast %269 : vector<16x1xf32> to vector<16x16xf32>
    %271 = arith.subf %267, %270 : vector<16x16xf32>
    %272 = math.exp %271 : vector<16x16xf32>
    %cst_87 = arith.constant dense<0.000000e+00> : vector<16xf32>
    %273 = vector.multi_reduction <add>, %272, %cst_87 [1] : vector<16x16xf32> to vector<16xf32>
    %274 = vector.shape_cast %273 : vector<16xf32> to vector<16x1xf32>
    %275 = tpu.reciprocal %274 {approx = true} : vector<16x1xf32> -> vector<16x1xf32>
    %276 = vector.broadcast %275 : vector<16x1xf32> to vector<16x16xf32>
    %277 = arith.mulf %272, %276 : vector<16x16xf32>
    %cst_88 = arith.constant dense<0.000000e+00> : vector<16x8xf32>
    %278 = tpu.matmul %277, %262, %cst_88 {dimension_numbers = #tpu.dot_dimension_numbers<[1], [0], [0], [1], [0, 0, 1, 1], [], []>} : vector<16x16xf32>, vector<16x8xf32>, vector<16x8xf32> -> vector<16x8xf32>
    %c24 = arith.constant 24 : index
    %c0_89 = arith.constant 0 : index
    %279 = vector.load %arg9[%c24, %c0_89] : memref<32x32xf32, #tpu.memory_space<vmem>>, vector<8x32xf32>
    %cst_90 = arith.constant dense<0.000000e+00> : vector<16x32xf32>
    %280 = tpu.matmul %278, %279, %cst_90 {dimension_numbers = #tpu.dot_dimension_numbers<[1], [0], [0], [1], [0, 0, 1, 1], [], []>} : vector<16x8xf32>, vector<8x32xf32>, vector<16x32xf32> -> vector<16x32xf32>
    %281 = arith.addf %259, %280 : vector<16x32xf32>
    %c0_91 = arith.constant 0 : index
    %c0_92 = arith.constant 0 : index
    %282 = vector.load %arg10[%c0_91, %c0_92] : memref<1x32xf32, #tpu.memory_space<vmem>>, vector<1x32xf32>
    %283 = vector.broadcast %282 : vector<1x32xf32> to vector<16x32xf32>
    %284 = arith.addf %281, %283 : vector<16x32xf32>
    %285 = arith.addf %284, %186 : vector<16x32xf32>
    %cst_93 = arith.constant dense<0.000000e+00> : vector<16xf32>
    %286 = vector.multi_reduction <add>, %285, %cst_93 [1] : vector<16x32xf32> to vector<16xf32>
    %287 = vector.shape_cast %286 : vector<16xf32> to vector<16x1xf32>
    %cst_94 = arith.constant 3.200000e+01 : f32
    %288 = vector.broadcast %cst_94 : f32 to vector<16x1xf32>
    %289 = arith.divf %287, %288 : vector<16x1xf32>
    %290 = vector.broadcast %289 : vector<16x1xf32> to vector<16x32xf32>
    %291 = arith.subf %285, %290 : vector<16x32xf32>
    %292 = arith.mulf %291, %291 : vector<16x32xf32>
    %cst_95 = arith.constant dense<0.000000e+00> : vector<16xf32>
    %293 = vector.multi_reduction <add>, %292, %cst_95 [1] : vector<16x32xf32> to vector<16xf32>
    %294 = vector.shape_cast %293 : vector<16xf32> to vector<16x1xf32>
    %cst_96 = arith.constant 3.200000e+01 : f32
    %295 = vector.broadcast %cst_96 : f32 to vector<16x1xf32>
    %296 = arith.divf %294, %295 : vector<16x1xf32>
    %297 = vector.broadcast %289 : vector<16x1xf32> to vector<16x32xf32>
    %298 = arith.subf %285, %297 : vector<16x32xf32>
    %cst_97 = arith.constant 9.99999974E-6 : f32
    %299 = vector.broadcast %cst_97 : f32 to vector<16x1xf32>
    %300 = arith.addf %296, %299 : vector<16x1xf32>
    %301 = math.rsqrt %300 : vector<16x1xf32>
    %302 = vector.broadcast %301 : vector<16x1xf32> to vector<16x32xf32>
    %303 = arith.mulf %298, %302 : vector<16x32xf32>
    %304 = vector.broadcast %0 : vector<1x32xf32> to vector<16x32xf32>
    %305 = arith.mulf %303, %304 : vector<16x32xf32>
    %306 = vector.broadcast %1 : vector<1x32xf32> to vector<16x32xf32>
    %307 = arith.addf %305, %306 : vector<16x32xf32>
    %308 = vector.shape_cast %307 : vector<16x32xf32> to vector<2x8x32xf32>
    %c0_98 = arith.constant 0 : index
    %c0_99 = arith.constant 0 : index
    %309 = vector.load %arg11[%c0_98, %c0_99] : memref<1x32xf32, #tpu.memory_space<vmem>>, vector<1x32xf32>
    %310 = vector.shape_cast %309 : vector<1x32xf32> to vector<1x1x32xf32>
    %311 = vector.broadcast %310 : vector<1x1x32xf32> to vector<2x8x32xf32>
    %312 = arith.mulf %308, %311 : vector<2x8x32xf32>
    %cst_100 = arith.constant dense<0.000000e+00> : vector<2x8xf32>
    %313 = vector.multi_reduction <add>, %312, %cst_100 [2] : vector<2x8x32xf32> to vector<2x8xf32>
    %c0_101 = arith.constant 0 : index
    %c0_102 = arith.constant 0 : index
    %314 = vector.load %arg12[%c0_101, %c0_102] : memref<1x1xf32, #tpu.memory_space<vmem>>, vector<1x1xf32>
    %315 = vector.extract %314[0, 0] : f32 from vector<1x1xf32>
    %316 = vector.broadcast %315 : f32 to vector<2x8xf32>
    %317 = arith.addf %313, %316 : vector<2x8xf32>
    %c0_103 = arith.constant 0 : index
    %c0_104 = arith.constant 0 : index
    %318 = vector.load %arg13[%c0_103, %c0_104] : memref<2x8xf32, #tpu.memory_space<vmem>>, vector<2x8xf32>
    tpu.vector_store %arg13[%c0_103, %c0_104], %317 {strides = array<i32>} : memref<2x8xf32, #tpu.memory_space<vmem>>, vector<2x8xf32>,
    return
  }
}

</mosaic_0001>

<bundles_post_ra>
// kernel: tpu_custom_call.1
= control target key start
LH: loop header
LB: loop body
LE: loop exit
PB: predicated region body
PF: predicated region fallthrough
CT: control target
= control target key end

     0   :  { %s11201_s0 = inlined_call_operand.vmem [shape: f32[128,16], index: 0, kind: input, shape index: {}]   ;;  %s11202_s1 = inlined_call_operand.vmem [shape: f32[16,16], index: 1, kind: input, shape index: {}]   ;;  %s11203_s2 = inlined_call_operand.vmem [shape: f32[16,128], index: 2, kind: input, shape index: {}]   ;;  %s11204_s3 = inlined_call_operand.vmem [shape: f32[32,128], index: 3, kind: input, shape index: {}]   ;;  %s11205_s4 = inlined_call_operand.vmem [shape: f32[1,128], index: 4, kind: input, shape index: {}]   ;;  %s11206_s5 = inlined_call_operand.vmem [shape: f32[1,32], index: 5, kind: input, shape index: {}]   ;;  %s11207_s6 = inlined_call_operand.vmem [shape: f32[1,32], index: 6, kind: input, shape index: {}]   ;;  %s11208_s7 = inlined_call_operand.vmem [shape: f32[32,96], index: 7, kind: input, shape index: {}]   ;;  %s11209_s8 = inlined_call_operand.vmem [shape: f32[1,96], index: 8, kind: input, shape index: {}]   ;;  %s11210_s9 = inlined_call_operand.vmem [shape: f32[32,32], index: 9, kind: input, shape index: {}]   ;;  %s11211_s10 = inlined_call_operand.vmem [shape: f32[1,32], index: 10, kind: input, shape index: {}]   ;;  %s11212_s11 = inlined_call_operand.vmem [shape: f32[1,32], index: 11, kind: input, shape index: {}]   ;;  %s11213_s12 = inlined_call_operand.<no memory space> [shape: f32[1,1], index: 12, kind: input, shape index: {}]   ;;  %s11214_s13 = inlined_call_operand.hbm [shape: f32[2,8], index: 13, kind: output, shape index: {}]  }
   0x1   :  { %v18_v0 = vstv %s11213_s12 }
   0x2   :  { %19 = vst [vmem:[#allocation3] sm:$0x1] %v18_v0 }
   0x3   :  { %v65_v1 = vld [vmem:[%s11203_s2] sm:$0xff]  ;;  %v66_v2 = vld [vmem:[%s11203_s2 + $0x8] sm:$0xff]  ;;  %vm74_vm0 = vcmask 130048   ;;  %v8293_v7 = vmov 0.0   ;;  %v286_v9 = vld [vmem:[%s11204_s3 + $0x10] sm:$0xff] }
   0x4   :  { %v49_v3 = vld [vmem:[%s11201_s0] sm:$0xff]  ;;  %v7027_v4 = vpack.c.bf16 %v66_v2, %v65_v1  ;;  %v285_v6 = vld [vmem:[%s11204_s3 + $0x8] sm:$0xff]  ;;  %6860 = vmatprep.mubr.f32.mxu1 %v8293_v7  ;;  %v287_v10 = vld [vmem:[%s11204_s3 + $0x18] sm:$0xff] }
   0x5   :  { %6828 = vmatprep.mubr.msk.f32.mxu0 %vm74_vm0, %v49_v3  ;;  %v284_v5 = vld [vmem:[%s11204_s3] sm:$0xff]  ;;  %v8404_v11 = vpack.c.bf16 %v287_v10, %v286_v9  ;;  %v50_v12 = vld [vmem:[%s11201_s0 + $0x8] sm:$0xff]  ;;  %v51_v13 = vld [vmem:[%s11201_s0 + $0x10] sm:$0xff] }
   0x6   :  { %v8396_v8 = vpack.c.bf16 %v285_v6, %v284_v5  ;;  %7028 = vmatprep.subr.bf16.mxu0 %v7027_v4 }
   0x7   :  { %7030 = vmatpush3.bf16.msra.mxu0 %v7027_v4 }
   0x8   :  { %7032 = vmatprep.subr.bf16.mxu1 %v8396_v8  ;;  %7064 = vmatprep.subr.bf16.mxu0 %v8396_v8 }
   0x9   :  { %7034 = vmatpush3.bf16.msra.mxu1 %v8396_v8 }
   0xa   :  { %7036 = vmatprep.subr.bf16.mxu1 %v8404_v11  ;;  %6829 = vmatmul.mubr.msk.f32.vlgmr.msra.gmra.mrb[0].mxu0 %vm74_vm0, %v50_v12 }
   0xb   :  { %20 = vsyncpa [#allocation5], 0  ;;  %6831 = vmatprep.mubr.msk.f32.mxu0 %vm74_vm0, %v51_v13  ;;  %v52_v14 = vld [vmem:[%s11201_s0 + $0x18] sm:$0xff]  ;;  %7066 = vmatpush3.bf16.msra.mxu0 %v8396_v8  ;;  %v53_v15 = vld [vmem:[%s11201_s0 + $0x20] sm:$0xff]  ;;  %vm848_vm1 = vcmask 1041409   ;;  %vm851_vm2 = vcmask 1042434  }
   0xc   :  { %7068 = vmatprep.subr.bf16.mxu0 %v8404_v11  ;;  %v54_v16 = vld [vmem:[%s11201_s0 + $0x28] sm:$0xff]  ;;  %v55_v17 = vld [vmem:[%s11201_s0 + $0x30] sm:$0xff]  ;;  %v56_v18 = vld [vmem:[%s11201_s0 + $0x38] sm:$0xff]  ;;  %vm854_vm3 = vcmask 1043459   ;;  %vm857_vm4 = vcmask 1044484   ;;  %vm860_vm5 = vcmask 1045509  }
   0xd   :  { %7038 = vmatpush3.bf16.msra.mxu1 %v8404_v11  ;;  %v57_v19 = vld [vmem:[%s11201_s0 + $0x40] sm:$0xff]  ;;  %v58_v20 = vld [vmem:[%s11201_s0 + $0x48] sm:$0xff]  ;;  %v59_v21 = vld [vmem:[%s11201_s0 + $0x50] sm:$0xff]  ;;  %vm863_vm6 = vcmask 1046534   ;;  %vm866_vm7 = vcmask 1047559   ;;  %vm304_vm8 = vcmask 261120  }
   0xe   :  { %7040 = vmatprep.subr.bf16.mxu1 %v8396_v8  ;;  %6832 = vmatmul.mubr.msk.f32.gmra.mrb[2].mxu0 %vm74_vm0, %v52_v14  ;;  %v60_v22 = vld [vmem:[%s11201_s0 + $0x58] sm:$0xff]  ;;  %v61_v23 = vld [vmem:[%s11201_s0 + $0x60] sm:$0xff]  ;;  %v62_v24 = vld [vmem:[%s11201_s0 + $0x68] sm:$0xff]  ;;  %s8296_s12 = smov 96   ;;  %vm5276_vm9 = vcmask 64512   ;;  %s8298_s28 = smov 120  }
   0xf   :  { %6834 = vmatprep.mubr.msk.f32.mxu0 %vm74_vm0, %v53_v15  ;;  %7070 = vmatpush3.bf16.msra.mxu0 %v8404_v11  ;;  %v63_v25 = vld [vmem:[%s11201_s0 + $0x70] sm:$0xff]  ;;  %v64_v26 = vld [vmem:[%s11201_s0 + $0x78] sm:$0xff]  ;;  %v8483_v27 = vld [vmem:[%s11205_s4] ss:$0 sm:$0xff]  ;;  %s8294_s0 = smov 64   ;;  %s8295_s4 = smov 32  }
  0x10   :  { %6861 = vmatmul.mubr.f32.vlgmr.msra.gmra.mrb[0].mxu1 %v8293_v7  ;;  %7080 = vmatprep.subr.bf16.mxu0 %v8396_v8  ;;  %vm11060_vm10 = vmpackc.low %vm5276_vm9, %vm5276_vm9  ;;  %s8299_s29 = smov 80   ;;  %s8300_s30 = smov 112   ;;  %vm6494_vm11 = vcmask 58368  }
  0x11   :  { %7042 = vmatpush3.bf16.msra.mxu1 %v8396_v8  ;;  %s8301_s14 = smov 56   ;;  %s8302_s15 = smov 104  }
  0x12   :  { %7044 = vmatprep.subr.bf16.mxu1 %v8404_v11  ;;  %6835 = vmatmul.mubr.msk.f32.gmra.mrb[4].mxu0 %vm74_vm0, %v54_v16  ;;  %s8305_s16 = smov 72  }
  0x13   :  { %6837 = vmatprep.mubr.msk.f32.mxu0 %vm74_vm0, %v55_v17 }
  0x15   :  { %7046 = vmatpush3.bf16.msra.mxu1 %v8404_v11 }
  0x16   :  { %7048 = vmatprep.subr.bf16.mxu1 %v8396_v8  ;;  %6838 = vmatmul.mubr.msk.f32.gmra.mrb[6].mxu0 %vm74_vm0, %v56_v18 }
  0x17   :  { %6840 = vmatprep.mubr.msk.f32.mxu0 %vm74_vm0, %v57_v19 }
  0x1a   :  { %6841 = vmatmul.mubr.msk.f32.gmra.mrb[8].mxu0 %vm74_vm0, %v58_v20 }
  0x1b   :  { %6843 = vmatprep.mubr.msk.f32.mxu0 %vm74_vm0, %v59_v21 }
  0x1e   :  { %6844 = vmatmul.mubr.msk.f32.gmra.mrb[10].mxu0 %vm74_vm0, %v60_v22 }
  0x1f   :  { %6846 = vmatprep.mubr.msk.f32.mxu0 %vm74_vm0, %v61_v23 }
  0x22   :  { %6847 = vmatmul.mubr.msk.f32.gmra.mrb[12].mxu0 %vm74_vm0, %v62_v24 }
  0x23   :  { %6849 = vmatprep.mubr.msk.f32.mxu0 %vm74_vm0, %v63_v25 }
  0x26   :  { %6850 = vmatmul.mubr.msk.f32.gmra.mrb[14].mxu0 %vm74_vm0, %v64_v26 }
  0xdd   :  { %v6830_v28 = vpop.f32.mrb[0].mxu0 }
  0xde   :  { %v195_v29 = vadd.f32 %v6830_v28, %v8483_v27  ;;  %v189_v30 = vpop.f32.mrb[1].mxu0 }
  0xdf   :  { %v190_v31 = vadd.f32 %v8483_v27, %v189_v30 }
  0xe0   :  { %269 = vst [vmem:[#allocation2 + $0x8] sm:$0xff] %v195_v29 }
  0xe1   :  { %268 = vst [vmem:[#allocation2] sm:$0xff] %v190_v31  ;;  %v6833_v32 = vpop.f32.mrb[2].mxu0 }
  0xe2   :  { %v205_v33 = vadd.f32 %v6833_v32, %v8483_v27  ;;  %v199_v34 = vpop.f32.mrb[3].mxu0 }
  0xe3   :  { %v8488_v35 = vpop.f32.mrb[0].mxu1  ;;  %v200_v36 = vadd.f32 %v8483_v27, %v199_v34 }
  0xe4   :  { %v8491_v37 = vpop.f32.mrb[1].mxu1  ;;  %271 = vst [vmem:[#allocation2 + $0x18] sm:$0xff] %v205_v33  ;;  %v392_v17 = vrot.slane %v8488_v35, 1  ;;  %v394_v23 = vrot.slane %v8488_v35, 3  ;;  %v396_v34 = vrot.slane %v8488_v35, 5 }
  0xe5   :  { %270 = vst [vmem:[#allocation2 + $0x10] sm:$0xff] %v200_v36  ;;  %v6836_v38 = vpop.f32.mrb[4].mxu0  ;;  %v385_v41 = vrot.slane %v8491_v37, 1  ;;  %v387_v48 = vrot.slane %v8491_v37, 3  ;;  %v386_v52 = vrot.slane %v8491_v37, 2  ;;  %v389_v58 = vrot.slane %v8491_v37, 5 }
  0xe6   :  { %v215_v39 = vadd.f32 %v6836_v38, %v8483_v27  ;;  %v209_v40 = vpop.f32.mrb[5].mxu0  ;;  %v388_v63 = vrot.slane %v8491_v37, 4  ;;  %v390_v6 = vrot.slane %v8491_v37, 6  ;;  %v393_v36 = vrot.slane %v8488_v35, 2 }
  0xe7   :  { %v210_v42 = vadd.f32 %v8483_v27, %v209_v40  ;;  %v289_v43 = vld [vmem:[#allocation2 + $0x8] sm:$0x1] }
  0xe8   :  { %273 = vst [vmem:[#allocation2 + $0x28] sm:$0xff] %v215_v39  ;;  %v8496_v44 = vadd.f32 %v385_v41, %v289_v43  ;;  %v288_v45 = vld [vmem:[#allocation2] sm:$0x1]  ;;  %v395_v43 = vrot.slane %v8488_v35, 4 }
  0xe9   :  { %272 = vst [vmem:[#allocation2 + $0x20] sm:$0xff] %v210_v42  ;;  %v6839_v46 = vpop.f32.mrb[6].mxu0  ;;  %v8499_v47 = vadd.f32 %v8491_v37, %v288_v45 }
  0xea   :  { %v225_v49 = vadd.f32 %v6839_v46, %v8483_v27  ;;  %v219_v50 = vpop.f32.mrb[7].mxu0  ;;  %7205 = vtanh.f32 %v8496_v44 }
  0xeb   :  { %v291_v51 = vld [vmem:[#allocation2 + $0x18] sm:$0x1]  ;;  %v220_v53 = vadd.f32 %v8483_v27, %v219_v50  ;;  %7207 = vtanh.f32 %v8499_v47 }
  0xec   :  { %v290_v54 = vld [vmem:[#allocation2 + $0x10] sm:$0x1]  ;;  %v8507_v55 = vadd.f32 %v387_v48, %v291_v51  ;;  %275 = vst [vmem:[#allocation2 + $0x38] sm:$0xff] %v225_v49  ;;  %v391_v48 = vrot.slane %v8491_v37, 7  ;;  %v397_v51 = vrot.slane %v8488_v35, 6 }
  0xed   :  { %v8509_v56 = vadd.f32 %v386_v52, %v290_v54  ;;  %274 = vst [vmem:[#allocation2 + $0x30] sm:$0xff] %v220_v53  ;;  %v6842_v57 = vpop.f32.mrb[8].mxu0 }
  0xee   :  { %7209 = vtanh.f32 %v8507_v55  ;;  %v235_v59 = vadd.f32 %v6842_v57, %v8483_v27  ;;  %v229_v60 = vpop.f32.mrb[9].mxu0  ;;  %v398_v57 = vrot.slane %v8488_v35, 7 }
  0xef   :  { %v293_v61 = vld [vmem:[#allocation2 + $0x28] sm:$0x1]  ;;  %v230_v62 = vadd.f32 %v8483_v27, %v229_v60  ;;  %7211 = vtanh.f32 %v8509_v56 }
  0xf0   :  { %v8516_v0 = vadd.f32 %v389_v58, %v293_v61  ;;  %277 = vst [vmem:[#allocation2 + $0x48] sm:$0xff] %v235_v59  ;;  %v292_v1 = vld [vmem:[#allocation2 + $0x20] sm:$0x1] }
  0xf1   :  { %276 = vst [vmem:[#allocation2 + $0x40] sm:$0xff] %v230_v62  ;;  %v6845_v2 = vpop.f32.mrb[10].mxu0  ;;  %v8521_v5 = vadd.f32 %v388_v63, %v292_v1 }
  0xf2   :  { %7213 = vtanh.f32 %v8516_v0  ;;  %v245_v3 = vadd.f32 %v6845_v2, %v8483_v27  ;;  %v239_v4 = vpop.f32.mrb[11].mxu0 }
  0xf3   :  { %v240_v7 = vadd.f32 %v8483_v27, %v239_v4  ;;  %7215 = vtanh.f32 %v8521_v5  ;;  %v295_v46 = vld [vmem:[#allocation2 + $0x38] sm:$0x1]  ;;  %v6527_v4 = vmul.f32 -1.442695, %v8499_v47 }
  0xf4   :  { %v7206_v9 = vpop.eup %7205  ;;  %279 = vst [vmem:[#allocation2 + $0x58] sm:$0xff] %v245_v3  ;;  %v294_v10 = vld [vmem:[#allocation2 + $0x30] sm:$0x1]  ;;  %v8565_v52 = vadd.f32 %v391_v48, %v295_v46  ;;  %v6528_v3 = vmul.f32 -1.442695, %v8496_v44 }
  0xf5   :  { %v7208_v12 = vpop.eup %7207  ;;  %278 = vst [vmem:[#allocation2 + $0x50] sm:$0xff] %v240_v7  ;;  %577 = vrot.lane.b32.xlu0 %v7206_v9, %s8294_s0  ;;  %v6848_v13 = vpop.f32.mrb[12].mxu0  ;;  %v8526_v14 = vadd.f32 %v390_v6, %v294_v10  ;;  %v6530_v6 = vmul.f32 -1.442695, %v8507_v55  ;;  %v6529_v7 = vmul.f32 -1.442695, %v8509_v56 }
  0xf6   :  { %v255_v15 = vadd.f32 %v6848_v13, %v8483_v27  ;;  %v249_v16 = vpop.f32.mrb[13].mxu0  ;;  %575 = vrot.lane.b32.xlu1 %v7208_v12, %s8294_s0  ;;  %v6532_v9 = vmul.f32 -1.442695, %v8516_v0  ;;  %v6531_v10 = vmul.f32 -1.442695, %v8521_v5 }
  0xf7   :  { %v250_v18 = vadd.f32 %v8483_v27, %v249_v16  ;;  %7217 = vtanh.f32 %v8526_v14  ;;  %v297_v19 = vld [vmem:[#allocation2 + $0x48] sm:$0x1]  ;;  %v6533_v44 = vmul.f32 -1.442695, %v8526_v14 }
  0xf8   :  { %v7210_v20 = vpop.eup %7209  ;;  %281 = vst [vmem:[#allocation2 + $0x68] sm:$0xff] %v255_v15  ;;  %v8535_v22 = vadd.f32 %v392_v17, %v297_v19  ;;  %v296_v26 = vld [vmem:[#allocation2 + $0x40] sm:$0x1] }
  0xf9   :  { %280 = vst [vmem:[#allocation2 + $0x60] sm:$0xff] %v250_v18  ;;  %581 = vrot.lane.b32.xlu0 %v7210_v20, %s8294_s0  ;;  %v6851_v21 = vpop.f32.mrb[14].mxu0  ;;  %v7212_v28 = vpop.eup %7211  ;;  %v8546_v33 = vadd.f32 %v8488_v35, %v296_v26 }
  0xfa   :  { %v265_v24 = vadd.f32 %v6851_v21, %v8483_v27  ;;  %v259_v25 = vpop.f32.mrb[15].mxu0  ;;  %7219 = vtanh.f32 %v8535_v22  ;;  %v6536_v55 = vmul.f32 -1.442695, %v8535_v22 }
  0xfb   :  { %v260_v29 = vadd.f32 %v8483_v27, %v259_v25  ;;  %v299_v30 = vld [vmem:[#allocation2 + $0x58] sm:$0x1]  ;;  %v6535_v5 = vmul.f32 -1.442695, %v8546_v33 }
  0xfc   :  { %v7214_v31 = vpop.eup %7213  ;;  %283 = vst [vmem:[#allocation2 + $0x78] sm:$0xff] %v265_v24  ;;  %v8540_v32 = vadd.f32 %v394_v23, %v299_v30  ;;  %v298_v27 = vld [vmem:[#allocation2 + $0x50] sm:$0x1] }
  0xfd   :  { %282 = vst [vmem:[#allocation2 + $0x70] sm:$0xff] %v260_v29  ;;  %579 = vrot.lane.b32.xlu0 %v7212_v28, %s8294_s0  ;;  %585 = vrot.lane.b32.xlu1 %v7214_v31, %s8294_s0  ;;  %v7216_v39 = vpop.eup %7215  ;;  %v8556_v45 = vadd.f32 %v393_v36, %v298_v27  ;;  %v6534_v28 = vmul.f32 -1.442695, %v8565_v52 }
  0xfe   :  { %7221 = vtanh.f32 %v8540_v32  ;;  %v6538_v56 = vmul.f32 -1.442695, %v8540_v32 }
  0xff   :  { %v301_v38 = vld [vmem:[#allocation2 + $0x68] sm:$0x1]  ;;  %7223 = vtanh.f32 %v8546_v33  ;;  %v6537_v21 = vmul.f32 -1.442695, %v8556_v45 }
 0x100   :  { %v8551_v40 = vadd.f32 %v396_v34, %v301_v38  ;;  %v300_v41 = vld [vmem:[#allocation2 + $0x60] sm:$0x1] }
 0x101   :  { %v7218_v42 = vpop.eup %7217  ;;  %583 = vrot.lane.b32.xlu0 %v7216_v39, %s8294_s0  ;;  %v8561_v49 = vadd.f32 %v395_v43, %v300_v41 }
 0x102   :  { %587 = vrot.lane.b32.xlu1 %v7218_v42, %s8294_s0  ;;  %7225 = vtanh.f32 %v8551_v40  ;;  %v6540_v18 = vmul.f32 -1.442695, %v8551_v40 }
 0x103   :  { %7227 = vtanh.f32 %v8556_v45  ;;  %v303_v53 = vld [vmem:[#allocation2 + $0x78] sm:$0x1]  ;;  %v6539_v22 = vmul.f32 -1.442695, %v8561_v49 }
 0x104   :  { %v302_v50 = vld [vmem:[#allocation2 + $0x70] sm:$0x1]  ;;  %v7220_v54 = vpop.eup %7219  ;;  %7229 = vtanh.f32 %v8561_v49  ;;  %v8574_v37 = vadd.f32 %v398_v57, %v303_v53 }
 0x105   :  { %v8569_v58 = vadd.f32 %v397_v51, %v302_v50  ;;  %7231 = vtanh.f32 %v8565_v52 }
 0x106   :  { %593 = vrot.lane.b32.xlu1 %v7220_v54, %s8294_s0  ;;  %v6542_v40 = vmul.f32 -1.442695, %v8574_v37 }
 0x107   :  { %7233 = vtanh.f32 %v8569_v58  ;;  %v6541_v31 = vmul.f32 -1.442695, %v8569_v58 }
 0x108   :  { %v7222_v59 = vpop.eup %7221  ;;  %7235 = vtanh.f32 %v8574_v37 }
 0x109   :  { %597 = vrot.lane.b32.xlu0 %v7222_v59, %s8294_s0  ;;  %v7224_v60 = vpop.eup %7223  ;;  %7237 = vpow2.f32 %v6528_v3 }
 0x10a   :  { %591 = vrot.lane.b32.xlu1 %v7224_v60, %s8294_s0  ;;  %7239 = vpow2.f32 %v6527_v4 }
 0x10b   :  { %7241 = vpow2.f32 %v6530_v6 }
 0x10c   :  { %v7226_v61 = vpop.eup %7225  ;;  %7243 = vpow2.f32 %v6529_v7 }
 0x10d   :  { %601 = vrot.lane.b32.xlu0 %v7226_v61, %s8294_s0  ;;  %v7228_v35 = vpop.eup %7227  ;;  %7245 = vpow2.f32 %v6532_v9 }
 0x10e   :  { %595 = vrot.lane.b32.xlu1 %v7228_v35, %s8294_s0  ;;  %v7230_v62 = vpop.eup %7229  ;;  %7247 = vpow2.f32 %v6531_v10 }
 0x10f   :  { %v7232_v63 = vpop.eup %7231  ;;  %7249 = vpow2.f32 %v6533_v44 }
 0x111   :  { %599 = vrot.lane.b32.xlu0 %v7230_v62, %s8294_s0  ;;  %v7234_v1 = vpop.eup %7233 }
 0x112   :  { %589 = vrot.lane.b32.xlu1 %v7232_v63, %s8294_s0  ;;  %v7236_v2 = vpop.eup %7235 }
 0x113   :  { %v7238_v12 = vpop.eup %7237 }
 0x114   :  { %v7240_v13 = vpop.eup %7239  ;;  %v480_v15 = vadd.f32 1.0, %v7238_v12 }
 0x115   :  { %603 = vrot.lane.b32.xlu0 %v7234_v1, %s8294_s0  ;;  %v7242_v47 = vpop.eup %7241  ;;  %v479_v16 = vadd.f32 1.0, %v7240_v13 }
 0x116   :  { %605 = vrot.lane.b32.xlu1 %v7236_v2, %s8294_s0  ;;  %7251 = vrcp.f32 %v480_v15  ;;  %v482_v17 = vadd.f32 1.0, %v7242_v47  ;;  %v7244_v0 = vpop.eup %7243 }
 0x117   :  { %7253 = vrcp.f32 %v479_v16  ;;  %v7246_v19 = vpop.eup %7245  ;;  %v481_v14 = vadd.f32 1.0, %v7244_v0 }
 0x118   :  { %7255 = vpow2.f32 %v6536_v55  ;;  %v7248_v20 = vpop.eup %7247  ;;  %v484_v23 = vadd.f32 1.0, %v7246_v19 }
 0x119   :  { %7257 = vpow2.f32 %v6538_v56  ;;  %v483_v24 = vadd.f32 1.0, %v7248_v20  ;;  %v7250_v25 = vpop.eup %7249 }
 0x11a   :  { %7259 = vrcp.f32 %v482_v17  ;;  %v485_v36 = vadd.f32 1.0, %v7250_v25 }
 0x11b   :  { %7261 = vpow2.f32 %v6535_v5 }
 0x11c   :  { %7263 = vpow2.f32 %v6540_v18 }
 0x11d   :  { %7265 = vrcp.f32 %v481_v14 }
 0x11e   :  { %7267 = vpow2.f32 %v6537_v21 }
 0x11f   :  { %7269 = vpow2.f32 %v6539_v22 }
 0x120   :  { %v8598_v26 = vpop.eup %7251  ;;  %7271 = vrcp.f32 %v484_v23 }
 0x121   :  { %v8601_v30 = vpop.eup %7253  ;;  %7273 = vrcp.f32 %v483_v24 }
 0x122   :  { %v7256_v34 = vpop.eup %7255  ;;  %7275 = vpow2.f32 %v6534_v28 }
 0x123   :  { %v7258_v38 = vpop.eup %7257  ;;  %7277 = vpow2.f32 %v6541_v31  ;;  %v488_v43 = vadd.f32 1.0, %v7256_v34 }
 0x124   :  { %v8607_v39 = vpop.eup %7259  ;;  %7279 = vrcp.f32 %v485_v36  ;;  %v490_v48 = vadd.f32 1.0, %v7258_v38  ;;  %v544_v38 = vmul.f32 0.0, %v8598_v26 }
 0x125   :  { %v7262_v45 = vpop.eup %7261  ;;  %7281 = vpow2.f32 %v6542_v40 }
 0x126   :  { %v7264_v46 = vpop.eup %7263  ;;  %7283 = vrcp.f32 %v488_v43  ;;  %v487_v54 = vadd.f32 1.0, %v7262_v45 }
 0x127   :  { %v8613_v49 = vpop.eup %7265  ;;  %7285 = vrcp.f32 %v490_v48  ;;  %v492_v59 = vadd.f32 1.0, %v7264_v46  ;;  %v546_v46 = vmul.f32 0.0, %v8607_v39 }
 0x128   :  { %v7268_v52 = vpop.eup %7267  ;;  %7287 = vrcp.f32 %v487_v54 }
 0x129   :  { %v7270_v57 = vpop.eup %7269  ;;  %v489_v63 = vadd.f32 1.0, %v7268_v52  ;;  %7289 = vrcp.f32 %v492_v59 }
 0x12a   :  { %v8616_v58 = vpop.eup %7271  ;;  %v491_v3 = vadd.f32 1.0, %v7270_v57 }
 0x12b   :  { %v8619_v37 = vpop.eup %7273  ;;  %7291 = vrcp.f32 %v489_v63  ;;  %v548_v57 = vmul.f32 0.0, %v8616_v58 }
 0x12c   :  { %v7276_v1 = vpop.eup %7275  ;;  %7293 = vrcp.f32 %v491_v3  ;;  %v547_v54 = vmul.f32 0.0, %v8619_v37 }
 0x12d   :  { %v7278_v2 = vpop.eup %7277  ;;  %v486_v7 = vadd.f32 1.0, %v7276_v1 }
 0x12e   :  { %v8625_v4 = vpop.eup %7279  ;;  %v493_v13 = vadd.f32 1.0, %v7278_v2 }
 0x12f   :  { %v7282_v9 = vpop.eup %7281  ;;  %7295 = vrcp.f32 %v486_v7  ;;  %v549_v1 = vmul.f32 0.0, %v8625_v4 }
 0x130   :  { %v8628_v10 = vpop.eup %7283  ;;  %v494_v16 = vadd.f32 1.0, %v7282_v9  ;;  %7297 = vrcp.f32 %v493_v13 }
 0x131   :  { %v8632_v47 = vpop.eup %7285  ;;  %v552_v7 = vmul.f32 0.0, %v8628_v10 }
 0x132   :  { %v8636_v56 = vpop.eup %7287  ;;  %7299 = vrcp.f32 %v494_v16 }
 0x133   :  { %v8639_v18 = vpop.eup %7289 }
 0x135   :  { %v8644_v14 = vpop.eup %7291 }
 0x136   :  { %v8647_v22 = vpop.eup %7293 }
 0x139   :  { %v8652_v25 = vpop.eup %7295 }
 0x13a   :  { %v8655_v31 = vpop.eup %7297 }
 0x13c   :  { %v8660_v34 = vpop.eup %7299 }
 0x167   :  { %v578_v29 = vpop.permute.xlu0 %577 }
 0x168   :  { %v624_v32 = vmul.f32 %v8598_v26, %v578_v29  ;;  %v576_v33 = vpop.permute.xlu1 %575 }
 0x169   :  { %v623_v27 = vmul.f32 %v8601_v30, %v576_v33 }
 0x16a   :  { %657 = vrot.lane.b32.xlu0 %v624_v32, %s8295_s4 }
 0x16b   :  { %v582_v41 = vpop.permute.xlu0 %581  ;;  %655 = vrot.lane.b32.xlu1 %v623_v27, %s8295_s4 }
 0x16c   :  { %v626_v42 = vmul.f32 %v8607_v39, %v582_v41  ;;  %v543_v41 = vmul.f32 0.0, %v8601_v30 }
 0x16e   :  { %661 = vrot.lane.b32.xlu0 %v626_v42, %s8295_s4 }
 0x16f   :  { %v580_v50 = vpop.permute.xlu0 %579  ;;  %v586_v51 = vpop.permute.xlu1 %585 }
 0x170   :  { %v625_v53 = vmul.f32 %v8613_v49, %v580_v50  ;;  %v628_v61 = vmul.f32 %v8616_v58, %v586_v51  ;;  %v545_v51 = vmul.f32 0.0, %v8613_v49 }
 0x172   :  { %659 = vrot.lane.b32.xlu1 %v625_v53, %s8295_s4 }
 0x173   :  { %v584_v60 = vpop.permute.xlu0 %583 }
 0x174   :  { %v627_v35 = vmul.f32 %v8619_v37, %v584_v60  ;;  %v588_v62 = vpop.permute.xlu1 %587 }
 0x175   :  { %v629_v6 = vmul.f32 %v8625_v4, %v588_v62 }
 0x176   :  { %663 = vrot.lane.b32.xlu0 %v627_v35, %s8295_s4  ;;  %665 = vrot.lane.b32.xlu1 %v628_v61, %s8295_s4 }
 0x178   :  { %v594_v12 = vpop.permute.xlu1 %593 }
 0x179   :  { %v632_v44 = vmul.f32 %v8628_v10, %v594_v12 }
 0x17a   :  { %667 = vrot.lane.b32.xlu1 %v629_v6, %s8295_s4 }
 0x17b   :  { %v598_v15 = vpop.permute.xlu0 %597  ;;  %673 = vrot.lane.b32.xlu0 %v632_v44, %s8295_s4  ;;  %v554_v44 = vmul.f32 0.0, %v8632_v47 }
 0x17c   :  { %v634_v55 = vmul.f32 %v8632_v47, %v598_v15  ;;  %v592_v17 = vpop.permute.xlu1 %591  ;;  %v551_v15 = vmul.f32 0.0, %v8636_v56 }
 0x17d   :  { %v631_v0 = vmul.f32 %v8636_v56, %v592_v17 }
 0x17f   :  { %v602_v5 = vpop.permute.xlu0 %601  ;;  %677 = vrot.lane.b32.xlu0 %v634_v55, %s8295_s4  ;;  %671 = vrot.lane.b32.xlu1 %v631_v0, %s8295_s4 }
 0x180   :  { %v636_v19 = vmul.f32 %v8639_v18, %v602_v5  ;;  %v596_v20 = vpop.permute.xlu1 %595 }
 0x181   :  { %v633_v21 = vmul.f32 %v8644_v14, %v596_v20  ;;  %v556_v20 = vmul.f32 0.0, %v8639_v18 }
 0x183   :  { %v600_v23 = vpop.permute.xlu0 %599  ;;  %681 = vrot.lane.b32.xlu0 %v636_v19, %s8295_s4  ;;  %675 = vrot.lane.b32.xlu1 %v633_v21, %s8295_s4  ;;  %v553_v21 = vmul.f32 0.0, %v8644_v14 }
 0x184   :  { %v635_v24 = vmul.f32 %v8647_v22, %v600_v23  ;;  %v590_v28 = vpop.permute.xlu1 %589 }
 0x185   :  { %v630_v29 = vmul.f32 %v8652_v25, %v590_v28 }
 0x187   :  { %v604_v32 = vpop.permute.xlu0 %603  ;;  %679 = vrot.lane.b32.xlu0 %v635_v24, %s8295_s4  ;;  %669 = vrot.lane.b32.xlu1 %v630_v29, %s8295_s4 }
 0x188   :  { %v637_v33 = vmul.f32 %v8655_v31, %v604_v32  ;;  %v606_v27 = vpop.permute.xlu1 %605 }
 0x189   :  { %v638_v36 = vmul.f32 %v8660_v34, %v606_v27  ;;  %v550_v27 = vmul.f32 0.0, %v8652_v25 }
 0x18b   :  { %683 = vrot.lane.b32.xlu0 %v637_v33, %s8295_s4  ;;  %685 = vrot.lane.b32.xlu1 %v638_v36, %s8295_s4  ;;  %v555_v33 = vmul.f32 0.0, %v8647_v22 }
 0x1dc   :  { %v658_v40 = vpop.permute.xlu0 %657 }
 0x1dd   :  { %v8667_v42 = vadd.f32 %v658_v40, %v544_v38  ;;  %v656_v43 = vpop.permute.xlu1 %655 }
 0x1de   :  { %v8669_v45 = vadd.f32 %v656_v43, %v543_v41 }
 0x1df   :  { %7301 = vtanh.f32 %v8667_v42 }
 0x1e0   :  { %7303 = vtanh.f32 %v8669_v45  ;;  %v662_v48 = vpop.permute.xlu0 %661 }
 0x1e1   :  { %v8674_v50 = vadd.f32 %v662_v48, %v546_v46  ;;  %v557_v46 = vmul.f32 0.0, %v8655_v31  ;;  %v558_v48 = vmul.f32 0.0, %v8660_v34 }
 0x1e3   :  { %7305 = vtanh.f32 %v8674_v50 }
 0x1e4   :  { %v660_v52 = vpop.permute.xlu1 %659 }
 0x1e5   :  { %v8678_v53 = vadd.f32 %v660_v52, %v545_v51 }
 0x1e7   :  { %7307 = vtanh.f32 %v8678_v53 }
 0x1e8   :  { %v664_v59 = vpop.permute.xlu0 %663  ;;  %v666_v60 = vpop.permute.xlu1 %665 }
 0x1e9   :  { %v7302_v61 = vpop.eup %7301  ;;  %v8683_v35 = vadd.f32 %v664_v59, %v547_v54  ;;  %v8685_v62 = vadd.f32 %v666_v60, %v548_v57 }
 0x1ea   :  { %v7304_v63 = vpop.eup %7303  ;;  %753 = vrot.lane.b32.xlu0 %v7302_v61, %s8294_s0 }
 0x1eb   :  { %7309 = vtanh.f32 %v8683_v35  ;;  %751 = vrot.lane.b32.xlu1 %v7304_v63, %s8294_s0 }
 0x1ec   :  { %7311 = vtanh.f32 %v8685_v62  ;;  %v668_v2 = vpop.permute.xlu1 %667 }
 0x1ed   :  { %v7306_v3 = vpop.eup %7305  ;;  %v8692_v6 = vadd.f32 %v668_v2, %v549_v1  ;;  %v674_v9 = vpop.permute.xlu0 %673 }
 0x1ee   :  { %757 = vrot.lane.b32.xlu0 %v7306_v3, %s8294_s0  ;;  %v8697_v12 = vadd.f32 %v674_v9, %v552_v7 }
 0x1ef   :  { %7313 = vtanh.f32 %v8692_v6 }
 0x1f0   :  { %7315 = vtanh.f32 %v8697_v12 }
 0x1f1   :  { %v7308_v13 = vpop.eup %7307  ;;  %v678_v16 = vpop.permute.xlu0 %677 }
 0x1f2   :  { %755 = vrot.lane.b32.xlu1 %v7308_v13, %s8294_s0  ;;  %v672_v55 = vpop.permute.xlu1 %671  ;;  %v8703_v17 = vadd.f32 %v678_v16, %v554_v44 }
 0x1f3   :  { %v8705_v0 = vadd.f32 %v672_v55, %v551_v15 }
 0x1f4   :  { %7317 = vtanh.f32 %v8703_v17 }
 0x1f5   :  { %v7310_v5 = vpop.eup %7309  ;;  %7319 = vtanh.f32 %v8705_v0  ;;  %v682_v23 = vpop.permute.xlu0 %681 }
 0x1f6   :  { %v7312_v19 = vpop.eup %7311  ;;  %759 = vrot.lane.b32.xlu0 %v7310_v5, %s8294_s0  ;;  %v676_v24 = vpop.permute.xlu1 %675  ;;  %v8713_v28 = vadd.f32 %v682_v23, %v556_v20 }
 0x1f7   :  { %761 = vrot.lane.b32.xlu1 %v7312_v19, %s8294_s0  ;;  %v8715_v29 = vadd.f32 %v676_v24, %v553_v21 }
 0x1f8   :  { %7321 = vtanh.f32 %v8713_v28 }
 0x1f9   :  { %v7314_v32 = vpop.eup %7313  ;;  %7323 = vtanh.f32 %v8715_v29  ;;  %v680_v36 = vpop.permute.xlu0 %679 }
 0x1fa   :  { %v670_v38 = vpop.permute.xlu1 %669  ;;  %v7316_v40 = vpop.eup %7315  ;;  %v8722_v41 = vadd.f32 %v680_v36, %v555_v33 }
 0x1fb   :  { %763 = vrot.lane.b32.xlu1 %v7314_v32, %s8294_s0  ;;  %v8724_v43 = vadd.f32 %v670_v38, %v550_v27  ;;  %769 = vrot.lane.b32.xlu0 %v7316_v40, %s8294_s0 }
 0x1fc   :  { %7325 = vtanh.f32 %v8722_v41 }
 0x1fd   :  { %7327 = vtanh.f32 %v8724_v43  ;;  %v684_v51 = vpop.permute.xlu0 %683 }
 0x1fe   :  { %v686_v52 = vpop.permute.xlu1 %685  ;;  %v7318_v54 = vpop.eup %7317  ;;  %v8731_v57 = vadd.f32 %v684_v51, %v557_v46 }
 0x1ff   :  { %v8733_v59 = vadd.f32 %v686_v52, %v558_v48  ;;  %v7320_v60 = vpop.eup %7319  ;;  %773 = vrot.lane.b32.xlu0 %v7318_v54, %s8294_s0 }
 0x200   :  { %7329 = vtanh.f32 %v8731_v57  ;;  %767 = vrot.lane.b32.xlu1 %v7320_v60, %s8294_s0 }
 0x201   :  { %7331 = vtanh.f32 %v8733_v59 }
 0x202   :  { %v7322_v61 = vpop.eup %7321 }
 0x203   :  { %v7324_v63 = vpop.eup %7323  ;;  %777 = vrot.lane.b32.xlu0 %v7322_v61, %s8294_s0 }
 0x204   :  { %771 = vrot.lane.b32.xlu1 %v7324_v63, %s8294_s0 }
 0x206   :  { %v7326_v1 = vpop.eup %7325 }
 0x207   :  { %v7328_v2 = vpop.eup %7327  ;;  %775 = vrot.lane.b32.xlu0 %v7326_v1, %s8294_s0 }
 0x208   :  { %765 = vrot.lane.b32.xlu1 %v7328_v2, %s8294_s0 }
 0x20a   :  { %v7330_v3 = vpop.eup %7329 }
 0x20b   :  { %v7332_v7 = vpop.eup %7331  ;;  %779 = vrot.lane.b32.xlu0 %v7330_v3, %s8294_s0 }
 0x20c   :  { %781 = vrot.lane.b32.xlu1 %v7332_v7, %s8294_s0 }
 0x25c   :  { %v754_v9 = vpop.permute.xlu0 %753 }
 0x25d   :  { %v752_v13 = vpop.permute.xlu1 %751  ;;  %v800_v19 = vmul.f32 %v8598_v26, %v754_v9 }
 0x25e   :  { %v799_v24 = vmul.f32 %v8601_v30, %v752_v13 }
 0x25f   :  { %v847_v23 = vrot.slane %v800_v19, 7 }
 0x260   :  { %v758_v15 = vpop.permute.xlu0 %757 }
 0x261   :  { %v802_v38 = vmul.f32 %v8607_v39, %v758_v15  ;;  %v849_v46 = vsel %vm848_vm1, %v847_v23, %v799_v24 }
 0x263   :  { %v853_v54 = vrot.slane %v802_v38, 5 }
 0x264   :  { %v756_v44 = vpop.permute.xlu1 %755 }
 0x265   :  { %v801_v21 = vmul.f32 %v8613_v49, %v756_v44 }
 0x267   :  { %v850_v33 = vrot.slane %v801_v21, 6 }
 0x268   :  { %v760_v16 = vpop.permute.xlu0 %759 }
 0x269   :  { %v762_v55 = vpop.permute.xlu1 %761  ;;  %v803_v27 = vmul.f32 %v8619_v37, %v760_v16  ;;  %v852_v48 = vsel %vm851_vm2, %v850_v33, %v849_v46 }
 0x26a   :  { %v804_v26 = vmul.f32 %v8616_v58, %v762_v55  ;;  %v855_v61 = vsel %vm854_vm3, %v853_v54, %v852_v48  ;;  %v824_v48 = vld [vmem:[#allocation2 + $0x49] sm:$0x1] }
 0x26b   :  { %v856_v30 = vrot.slane %v803_v27, 4 }
 0x26c   :  { %v859_v58 = vrot.slane %v804_v26, 3 }
 0x26d   :  { %v764_v5 = vpop.permute.xlu1 %763  ;;  %v770_v20 = vpop.permute.xlu0 %769  ;;  %v858_v2 = vsel %vm857_vm4, %v856_v30, %v855_v61 }
 0x26e   :  { %v808_v40 = vmul.f32 %v8628_v10, %v770_v20  ;;  %v805_v51 = vmul.f32 %v8625_v4, %v764_v5  ;;  %v861_v5 = vsel %vm860_vm5, %v859_v58, %v858_v2  ;;  %v828_v58 = vld [vmem:[#allocation2 + $0x69] sm:$0x1] }
 0x270   :  { %v868_v60 = vrot.slane %v808_v40, 7  ;;  %v862_v4 = vrot.slane %v805_v51, 2  ;;  %v823_v40 = vld [vmem:[#allocation2 + $0x41] sm:$0x1] }
 0x271   :  { %v774_v32 = vpop.permute.xlu0 %773 }
 0x272   :  { %v768_v36 = vpop.permute.xlu1 %767  ;;  %v810_v39 = vmul.f32 %v8632_v47, %v774_v32  ;;  %v864_v21 = vsel %vm863_vm6, %v862_v4, %v861_v5  ;;  %v815_v4 = vld [vmem:[#allocation2 + $0x1] sm:$0x1] }
 0x273   :  { %v807_v52 = vmul.f32 %v8636_v56, %v768_v36 }
 0x274   :  { %v872_v9 = vrot.slane %v810_v39, 5 }
 0x275   :  { %v778_v49 = vpop.permute.xlu0 %777  ;;  %v869_v56 = vsel %vm848_vm1, %v868_v60, %v807_v52  ;;  %v826_v52 = vld [vmem:[#allocation2 + $0x59] sm:$0x1] }
 0x276   :  { %v772_v37 = vpop.permute.xlu1 %771  ;;  %v812_v47 = vmul.f32 %v8639_v18, %v778_v49 }
 0x277   :  { %v809_v10 = vmul.f32 %v8644_v14, %v772_v37 }
 0x278   :  { %v876_v18 = vrot.slane %v812_v47, 3 }
 0x279   :  { %v870_v63 = vrot.slane %v809_v10, 6  ;;  %v776_v1 = vpop.permute.xlu0 %775  ;;  %v827_v10 = vld [vmem:[#allocation2 + $0x61] sm:$0x1] }
 0x27a   :  { %v811_v3 = vmul.f32 %v8647_v22, %v776_v1  ;;  %v766_v7 = vpop.permute.xlu1 %765 }
 0x27b   :  { %v871_v14 = vsel %vm851_vm2, %v870_v63, %v869_v56  ;;  %v806_v13 = vmul.f32 %v8652_v25, %v766_v7 }
 0x27c   :  { %v874_v44 = vrot.slane %v811_v3, 4  ;;  %v873_v15 = vsel %vm854_vm3, %v872_v9, %v871_v14  ;;  %v816_v3 = vld [vmem:[#allocation2 + $0x9] sm:$0x1] }
 0x27d   :  { %v865_v16 = vrot.slane %v806_v13, 1  ;;  %v780_v55 = vpop.permute.xlu0 %779  ;;  %v825_v13 = vld [vmem:[#allocation2 + $0x51] sm:$0x1] }
 0x27e   :  { %v875_v19 = vsel %vm857_vm4, %v874_v44, %v873_v15  ;;  %v813_v22 = vmul.f32 %v8655_v31, %v780_v55  ;;  %v782_v20 = vpop.permute.xlu1 %781  ;;  %v818_v15 = vld [vmem:[#allocation2 + $0x19] sm:$0x1] }
 0x27f   :  { %v814_v23 = vmul.f32 %v8660_v34, %v782_v20  ;;  %v867_v25 = vsel %vm866_vm7, %v865_v16, %v864_v21  ;;  %v877_v33 = vsel %vm860_vm5, %v876_v18, %v875_v19  ;;  %v819_v20 = vld [vmem:[#allocation2 + $0x21] sm:$0x1] }
 0x280   :  { %v878_v24 = vrot.slane %v813_v22, 2  ;;  %882 = vrot.lane.b32.xlu0 %v867_v25, %s8295_s4  ;;  %v817_v22 = vld [vmem:[#allocation2 + $0x11] sm:$0x1] }
 0x281   :  { %v880_v32 = vrot.slane %v814_v23, 1 }
 0x282   :  { %v879_v27 = vsel %vm863_vm6, %v878_v24, %v877_v33  ;;  %v829_v33 = vld [vmem:[#allocation2 + $0x71] sm:$0x1] }
 0x283   :  { %v881_v36 = vsel %vm866_vm7, %v880_v32, %v879_v27  ;;  %v820_v32 = vld [vmem:[#allocation2 + $0x29] sm:$0x1] }
 0x284   :  { %884 = vrot.lane.b32.xlu1 %v881_v36, %s8295_s4 }
 0x2f2   :  { %v883_v31 = vpop.permute.xlu0 %882 }
 0x2f3   :  { %6871 = vmatprep.mubr.msk.f32.mxu1 %vm304_vm8, %v883_v31 }
 0x2f6   :  { %v885_v38 = vpop.permute.xlu1 %884 }
 0x2f7   :  { %6872 = vmatmul.mubr.msk.f32.vlgmr.msra.gmra.mrb[2].mxu1 %vm304_vm8, %v885_v38 }
 0x2f8   :  { %7050 = vmatpush3.bf16.msra.mxu1 %v8396_v8 }
 0x2f9   :  { %7052 = vmatprep.subr.bf16.mxu1 %v8404_v11 }
 0x2fc   :  { %7054 = vmatpush3.bf16.msra.mxu1 %v8404_v11 }
 0x2fd   :  { %7056 = vmatprep.subr.bf16.mxu1 %v8396_v8 }
 0x3ca   :  { %v8783_v34 = vpop.f32.mrb[2].mxu1 }
 0x3cb   :  { %v8785_v46 = vpop.f32.mrb[3].mxu1  ;;  %v8788_v26 = vadd.f32 %v8783_v34, %v823_v40  ;;  %v974_v49 = vrot.slane %v8783_v34, 1  ;;  %v976_v30 = vrot.slane %v8783_v34, 3  ;;  %v977_v37 = vrot.slane %v8783_v34, 4 }
 0x3cc   :  { %v978_v60 = vrot.slane %v8783_v34, 5  ;;  %v967_v1 = vrot.slane %v8785_v46, 1  ;;  %v975_v56 = vrot.slane %v8783_v34, 2  ;;  %v8812_v7 = vadd.f32 %v8785_v46, %v815_v4 }
 0x3cd   :  { %7333 = vtanh.f32 %v8788_v26  ;;  %v8793_v51 = vadd.f32 %v974_v49, %v824_v48  ;;  %v8796_v54 = vadd.f32 %v976_v30, %v826_v52  ;;  %v8801_v61 = vadd.f32 %v977_v37, %v827_v10  ;;  %v821_v49 = vld [vmem:[#allocation2 + $0x31] sm:$0x1] }
 0x3ce   :  { %v8804_v63 = vadd.f32 %v978_v60, %v828_v58  ;;  %v969_v9 = vrot.slane %v8785_v46, 3  ;;  %v8815_v47 = vadd.f32 %v967_v1, %v816_v3  ;;  %v8818_v44 = vadd.f32 %v975_v56, %v825_v13  ;;  %v830_v1 = vld [vmem:[#allocation2 + $0x79] sm:$0x1] }
 0x3cf   :  { %7335 = vtanh.f32 %v8793_v51  ;;  %v968_v16 = vrot.slane %v8785_v46, 2  ;;  %v970_v55 = vrot.slane %v8785_v46, 4  ;;  %v971_v21 = vrot.slane %v8785_v46, 5 }
 0x3d0   :  { %7337 = vtanh.f32 %v8796_v54  ;;  %v8823_v5 = vadd.f32 %v969_v9, %v818_v15  ;;  %v979_v23 = vrot.slane %v8783_v34, 6  ;;  %v972_v27 = vrot.slane %v8785_v46, 6 }
 0x3d1   :  { %7339 = vtanh.f32 %v8801_v61  ;;  %v8829_v18 = vadd.f32 %v968_v16, %v817_v22  ;;  %v8832_v25 = vadd.f32 %v970_v55, %v819_v20  ;;  %v8837_v36 = vadd.f32 %v971_v21, %v820_v32 }
 0x3d2   :  { %7341 = vtanh.f32 %v8804_v63  ;;  %v8840_v31 = vadd.f32 %v979_v23, %v829_v33  ;;  %v973_v48 = vrot.slane %v8785_v46, 7  ;;  %v8845_v30 = vadd.f32 %v972_v27, %v821_v49 }
 0x3d3   :  { %7343 = vtanh.f32 %v8812_v7  ;;  %v980_v10 = vrot.slane %v8783_v34, 7  ;;  %v6554_v13 = vmul.f32 -1.442695, %v8793_v51  ;;  %v6556_v15 = vmul.f32 -1.442695, %v8796_v54 }
 0x3d4   :  { %7345 = vtanh.f32 %v8815_v47  ;;  %v6557_v55 = vmul.f32 -1.442695, %v8801_v61  ;;  %v6558_v22 = vmul.f32 -1.442695, %v8804_v63  ;;  %v6545_v21 = vmul.f32 -1.442695, %v8812_v7 }
 0x3d5   :  { %7347 = vtanh.f32 %v8818_v44  ;;  %v6548_v54 = vmul.f32 -1.442695, %v8823_v5  ;;  %v6547_v7 = vmul.f32 -1.442695, %v8829_v18 }
 0x3d6   :  { %7349 = vtanh.f32 %v8823_v5  ;;  %v6559_v5 = vmul.f32 -1.442695, %v8840_v31 }
 0x3d7   :  { %v7334_v39 = vpop.eup %7333  ;;  %7351 = vtanh.f32 %v8829_v18 }
 0x3d8   :  { %1173 = vrot.lane.b32.xlu1 %v7334_v39, %s8294_s0  ;;  %7353 = vtanh.f32 %v8832_v25  ;;  %v822_v39 = vld [vmem:[#allocation2 + $0x39] sm:$0x1] }
 0x3d9   :  { %v7336_v2 = vpop.eup %7335  ;;  %7355 = vtanh.f32 %v8837_v36  ;;  %v8852_v60 = vadd.f32 %v973_v48, %v822_v39 }
 0x3da   :  { %1175 = vrot.lane.b32.xlu0 %v7336_v2, %s8294_s0  ;;  %v7338_v14 = vpop.eup %7337  ;;  %7357 = vtanh.f32 %v8840_v31  ;;  %v8857_v2 = vadd.f32 %v980_v10, %v830_v1 }
 0x3db   :  { %v7340_v19 = vpop.eup %7339  ;;  %7359 = vtanh.f32 %v8845_v30 }
 0x3dc   :  { %v7342_v24 = vpop.eup %7341  ;;  %7361 = vtanh.f32 %v8852_v60 }
 0x3dd   :  { %v7344_v38 = vpop.eup %7343  ;;  %7363 = vtanh.f32 %v8857_v2 }
 0x3de   :  { %1179 = vrot.lane.b32.xlu0 %v7338_v14, %s8294_s0  ;;  %v7346_v40 = vpop.eup %7345  ;;  %1157 = vrot.lane.b32.xlu1 %v7344_v38, %s8294_s0  ;;  %v6553_v14 = vmul.f32 -1.442695, %v8788_v26  ;;  %v6546_v26 = vmul.f32 -1.442695, %v8815_v47  ;;  %v6549_v47 = vmul.f32 -1.442695, %v8832_v25 }
 0x3df   :  { %v7348_v52 = vpop.eup %7347  ;;  %v6551_v25 = vmul.f32 -1.442695, %v8845_v30 }
 0x3e0   :  { %v7350_v37 = vpop.eup %7349  ;;  %7365 = vpow2.f32 %v6553_v14 }
 0x3e1   :  { %v7352_v46 = vpop.eup %7351  ;;  %7367 = vpow2.f32 %v6554_v13 }
 0x3e2   :  { %1181 = vrot.lane.b32.xlu0 %v7340_v19, %s8294_s0  ;;  %1177 = vrot.lane.b32.xlu1 %v7348_v52, %s8294_s0  ;;  %v7354_v58 = vpop.eup %7353  ;;  %7369 = vpow2.f32 %v6556_v15  ;;  %v6560_v15 = vmul.f32 -1.442695, %v8857_v2 }
 0x3e3   :  { %v7356_v4 = vpop.eup %7355  ;;  %7371 = vpow2.f32 %v6557_v55 }
 0x3e4   :  { %v7358_v56 = vpop.eup %7357 }
 0x3e5   :  { %v7360_v34 = vpop.eup %7359 }
 0x3e6   :  { %1183 = vrot.lane.b32.xlu0 %v7342_v24, %s8294_s0  ;;  %1161 = vrot.lane.b32.xlu1 %v7352_v46, %s8294_s0  ;;  %v7362_v3 = vpop.eup %7361  ;;  %v6555_v24 = vmul.f32 -1.442695, %v8818_v44 }
 0x3e7   :  { %v7364_v9 = vpop.eup %7363 }
 0x3ea   :  { %1159 = vrot.lane.b32.xlu0 %v7346_v40, %s8294_s0  ;;  %1167 = vrot.lane.b32.xlu1 %v7356_v4, %s8294_s0  ;;  %v7366_v16 = vpop.eup %7365  ;;  %v6550_v40 = vmul.f32 -1.442695, %v8837_v36  ;;  %v6552_v4 = vmul.f32 -1.442695, %v8852_v60 }
 0x3eb   :  { %v1069_v19 = vadd.f32 1.0, %v7366_v16  ;;  %v7368_v20 = vpop.eup %7367 }
 0x3ec   :  { %v1070_v23 = vadd.f32 1.0, %v7368_v20  ;;  %v7370_v51 = vpop.eup %7369 }
 0x3ed   :  { %7373 = vrcp.f32 %v1069_v19  ;;  %v7372_v61 = vpop.eup %7371  ;;  %v1072_v32 = vadd.f32 1.0, %v7370_v51 }
 0x3ee   :  { %1163 = vrot.lane.b32.xlu0 %v7350_v37, %s8294_s0  ;;  %1169 = vrot.lane.b32.xlu1 %v7360_v34, %s8294_s0  ;;  %7375 = vpow2.f32 %v6558_v22  ;;  %v1073_v44 = vadd.f32 1.0, %v7372_v61 }
 0x3ef   :  { %7377 = vpow2.f32 %v6545_v21 }
 0x3f0   :  { %7379 = vpow2.f32 %v6546_v26 }
 0x3f1   :  { %7381 = vrcp.f32 %v1070_v23 }
 0x3f2   :  { %1165 = vrot.lane.b32.xlu0 %v7354_v58, %s8294_s0  ;;  %1171 = vrot.lane.b32.xlu1 %v7362_v3, %s8294_s0  ;;  %7383 = vpow2.f32 %v6555_v24 }
 0x3f3   :  { %7385 = vpow2.f32 %v6548_v54 }
 0x3f4   :  { %7387 = vrcp.f32 %v1072_v32 }
 0x3f5   :  { %7389 = vpow2.f32 %v6547_v7 }
 0x3f6   :  { %1185 = vrot.lane.b32.xlu0 %v7358_v56, %s8294_s0  ;;  %1187 = vrot.lane.b32.xlu1 %v7364_v9, %s8294_s0  ;;  %7391 = vpow2.f32 %v6549_v47 }
 0x3f7   :  { %v8876_v33 = vpop.eup %7373  ;;  %7393 = vrcp.f32 %v1073_v44 }
 0x3f8   :  { %v7376_v38 = vpop.eup %7375  ;;  %7395 = vpow2.f32 %v6559_v5 }
 0x3f9   :  { %v7378_v49 = vpop.eup %7377  ;;  %v1074_v48 = vadd.f32 1.0, %v7376_v38  ;;  %7397 = vpow2.f32 %v6550_v40 }
 0x3fa   :  { %v7380_v18 = vpop.eup %7379  ;;  %v1061_v46 = vadd.f32 1.0, %v7378_v49 }
 0x3fb   :  { %v8884_v52 = vpop.eup %7381  ;;  %7399 = vrcp.f32 %v1074_v48  ;;  %v1062_v36 = vadd.f32 1.0, %v7380_v18 }
 0x3fc   :  { %v7384_v10 = vpop.eup %7383  ;;  %7401 = vpow2.f32 %v6551_v25 }
 0x3fd   :  { %v7386_v31 = vpop.eup %7385  ;;  %7403 = vrcp.f32 %v1061_v46  ;;  %v1071_v30 = vadd.f32 1.0, %v7384_v10 }
 0x3fe   :  { %v8889_v58 = vpop.eup %7387  ;;  %7405 = vrcp.f32 %v1062_v36  ;;  %v1064_v9 = vadd.f32 1.0, %v7386_v31 }
 0x3ff   :  { %v7390_v34 = vpop.eup %7389  ;;  %7407 = vpow2.f32 %v6552_v4 }
 0x400   :  { %v7392_v3 = vpop.eup %7391  ;;  %7409 = vrcp.f32 %v1071_v30  ;;  %v1063_v60 = vadd.f32 1.0, %v7390_v34 }
 0x401   :  { %v8894_v14 = vpop.eup %7393  ;;  %7411 = vrcp.f32 %v1064_v9  ;;  %v1065_v22 = vadd.f32 1.0, %v7392_v3 }
 0x402   :  { %v7396_v55 = vpop.eup %7395  ;;  %7413 = vpow2.f32 %v6560_v15 }
 0x403   :  { %v7398_v19 = vpop.eup %7397  ;;  %7415 = vrcp.f32 %v1063_v60  ;;  %v1075_v51 = vadd.f32 1.0, %v7396_v55 }
 0x404   :  { %v1066_v23 = vadd.f32 1.0, %v7398_v19  ;;  %7417 = vrcp.f32 %v1065_v22 }
 0x405   :  { %v8899_v20 = vpop.eup %7399 }
 0x406   :  { %v7402_v2 = vpop.eup %7401  ;;  %7419 = vrcp.f32 %v1066_v23  ;;  %v1133_v23 = vmul.f32 %v8876_v33, %v8705_v0  ;;  %v1137_v0 = vmul.f32 %v8894_v14, %v8722_v41 }
 0x407   :  { %v8903_v24 = vpop.eup %7403  ;;  %7421 = vrcp.f32 %v1075_v51 }
 0x408   :  { %v8905_v61 = vpop.eup %7405 }
 0x409   :  { %v7408_v47 = vpop.eup %7407 }
 0x40a   :  { %v8910_v44 = vpop.eup %7409  ;;  %v1068_v18 = vadd.f32 1.0, %v7408_v47 }
 0x40b   :  { %v8913_v5 = vpop.eup %7411 }
 0x44a   :  { %v1174_v63 = vpop.permute.xlu1 %1173 }
 0x44b   :  { %v1213_v27 = vmul.f32 %v8876_v33, %v1174_v63 }
 0x44c   :  { %v1176_v37 = vpop.permute.xlu0 %1175 }
 0x44d   :  { %1253 = vrot.lane.b32.xlu1 %v1213_v27, %s8295_s4  ;;  %v1214_v39 = vmul.f32 %v8884_v52, %v1176_v37  ;;  %v1067_v27 = vadd.f32 1.0, %v7402_v2  ;;  %v7414_v37 = vpop.eup %7413 }
 0x44e   :  { %v8918_v25 = vpop.eup %7415 }
 0x44f   :  { %1255 = vrot.lane.b32.xlu0 %v1214_v39, %s8295_s4  ;;  %7423 = vrcp.f32 %v1067_v27  ;;  %v8921_v10 = vpop.eup %7417 }
 0x450   :  { %v1180_v1 = vpop.permute.xlu0 %1179  ;;  %v1158_v54 = vpop.permute.xlu1 %1157  ;;  %7425 = vrcp.f32 %v1068_v18 }
 0x451   :  { %v1216_v56 = vmul.f32 %v8889_v58, %v1180_v1  ;;  %v1205_v32 = vmul.f32 %v8903_v24, %v1158_v54  ;;  %v1076_v1 = vadd.f32 1.0, %v7414_v37  ;;  %v8926_v4 = vpop.eup %7419  ;;  %v1134_v54 = vmul.f32 %v8884_v52, %v8697_v12 }
 0x452   :  { %v8929_v34 = vpop.eup %7421  ;;  %v1125_v37 = vmul.f32 %v8903_v24, %v8669_v45 }
 0x453   :  { %1259 = vrot.lane.b32.xlu0 %v1216_v56, %s8295_s4  ;;  %1237 = vrot.lane.b32.xlu1 %v1205_v32, %s8295_s4  ;;  %7427 = vrcp.f32 %v1076_v1  ;;  %v1135_v1 = vmul.f32 %v8910_v44, %v8715_v29 }
 0x454   :  { %v1182_v13 = vpop.permute.xlu0 %1181  ;;  %v1178_v38 = vpop.permute.xlu1 %1177 }
 0x455   :  { %v1217_v16 = vmul.f32 %v8894_v14, %v1182_v13  ;;  %v1215_v40 = vmul.f32 %v8910_v44, %v1178_v38 }
 0x457   :  { %1261 = vrot.lane.b32.xlu0 %v1217_v16, %s8295_s4  ;;  %1257 = vrot.lane.b32.xlu1 %v1215_v40, %s8295_s4 }
 0x458   :  { %v1184_v21 = vpop.permute.xlu0 %1183  ;;  %v1162_v39 = vpop.permute.xlu1 %1161 }
 0x459   :  { %v1218_v26 = vmul.f32 %v8899_v20, %v1184_v21  ;;  %v1207_v46 = vmul.f32 %v8918_v25, %v1162_v39  ;;  %v8934_v13 = vpop.eup %7423  ;;  %v1126_v39 = vmul.f32 %v8905_v61, %v8667_v42 }
 0x45a   :  { %v8939_v55 = vpop.eup %7425 }
 0x45b   :  { %1263 = vrot.lane.b32.xlu0 %v1218_v26, %s8295_s4  ;;  %1241 = vrot.lane.b32.xlu1 %v1207_v46, %s8295_s4 }
 0x45c   :  { %v1160_v63 = vpop.permute.xlu0 %1159  ;;  %v1168_v56 = vpop.permute.xlu1 %1167 }
 0x45d   :  { %v1206_v7 = vmul.f32 %v8905_v61, %v1160_v63  ;;  %v1210_v30 = vmul.f32 %v8926_v4, %v1168_v56  ;;  %v8943_v22 = vpop.eup %7427  ;;  %v1128_v56 = vmul.f32 %v8913_v5, %v8674_v50 }
 0x45f   :  { %1239 = vrot.lane.b32.xlu0 %v1206_v7, %s8295_s4  ;;  %1247 = vrot.lane.b32.xlu1 %v1210_v30, %s8295_s4  ;;  %v1136_v7 = vmul.f32 %v8889_v58, %v8703_v17 }
 0x460   :  { %v1164_v49 = vpop.permute.xlu0 %1163  ;;  %v1170_v15 = vpop.permute.xlu1 %1169 }
 0x461   :  { %v1208_v48 = vmul.f32 %v8913_v5, %v1164_v49  ;;  %v1211_v16 = vmul.f32 %v8934_v13, %v1170_v15  ;;  %v1138_v49 = vmul.f32 %v8899_v20, %v8713_v28  ;;  %v1127_v15 = vmul.f32 %v8918_v25, %v8678_v53 }
 0x463   :  { %1243 = vrot.lane.b32.xlu0 %v1208_v48, %s8295_s4  ;;  %1249 = vrot.lane.b32.xlu1 %v1211_v16, %s8295_s4  ;;  %v1129_v16 = vmul.f32 %v8921_v10, %v8683_v35 }
 0x464   :  { %v1166_v31 = vpop.permute.xlu0 %1165  ;;  %v1172_v60 = vpop.permute.xlu1 %1171 }
 0x465   :  { %v1209_v36 = vmul.f32 %v8921_v10, %v1166_v31  ;;  %v1212_v19 = vmul.f32 %v8939_v55, %v1172_v60 }
 0x467   :  { %1245 = vrot.lane.b32.xlu0 %v1209_v36, %s8295_s4  ;;  %1251 = vrot.lane.b32.xlu1 %v1212_v19, %s8295_s4 }
 0x468   :  { %v1186_v3 = vpop.permute.xlu0 %1185  ;;  %v1188_v21 = vpop.permute.xlu1 %1187 }
 0x469   :  { %v1219_v9 = vmul.f32 %v8929_v34, %v1186_v3  ;;  %v1220_v26 = vmul.f32 %v8943_v22, %v1188_v21 }
 0x46b   :  { %1265 = vrot.lane.b32.xlu0 %v1219_v9, %s8295_s4  ;;  %1267 = vrot.lane.b32.xlu1 %v1220_v26, %s8295_s4  ;;  %v1130_v26 = vmul.f32 %v8926_v4, %v8685_v62  ;;  %v1131_v62 = vmul.f32 %v8934_v13, %v8692_v6 }
 0x4bf   :  { %v1254_v2 = vpop.permute.xlu1 %1253 }
 0x4c0   :  { %v8949_v51 = vadd.f32 %v1254_v2, %v1133_v23  ;;  %v1139_v23 = vmul.f32 %v8929_v34, %v8731_v57 }
 0x4c1   :  { %v1256_v32 = vpop.permute.xlu0 %1255 }
 0x4c2   :  { %7429 = vtanh.f32 %v8949_v51  ;;  %v8954_v63 = vadd.f32 %v1256_v32, %v1134_v54 }
 0x4c4   :  { %7431 = vtanh.f32 %v8954_v63 }
 0x4c5   :  { %v1260_v47 = vpop.permute.xlu0 %1259  ;;  %v1238_v41 = vpop.permute.xlu1 %1237 }
 0x4c6   :  { %v8959_v38 = vadd.f32 %v1260_v47, %v1136_v7  ;;  %v8978_v31 = vadd.f32 %v1238_v41, %v1125_v37  ;;  %v1140_v37 = vmul.f32 %v8943_v22, %v8733_v59 }
 0x4c8   :  { %7433 = vtanh.f32 %v8959_v38 }
 0x4c9   :  { %v1262_v12 = vpop.permute.xlu0 %1261  ;;  %v1258_v45 = vpop.permute.xlu1 %1257 }
 0x4ca   :  { %v8965_v40 = vadd.f32 %v1262_v12, %v1137_v0  ;;  %v8989_v30 = vadd.f32 %v1258_v45, %v1135_v1  ;;  %v1132_v12 = vmul.f32 %v8939_v55, %v8724_v43 }
 0x4cc   :  { %v7430_v27 = vpop.eup %7429  ;;  %7435 = vtanh.f32 %v8965_v40 }
 0x4cd   :  { %1349 = vrot.lane.b32.xlu1 %v7430_v27, %s8294_s0  ;;  %v1264_v17 = vpop.permute.xlu0 %1263  ;;  %v1242_v29 = vpop.permute.xlu1 %1241 }
 0x4ce   :  { %v7432_v48 = vpop.eup %7431  ;;  %v8970_v18 = vadd.f32 %v1264_v17, %v1138_v49  ;;  %v9000_v60 = vadd.f32 %v1242_v29, %v1127_v15 }
 0x4cf   :  { %1351 = vrot.lane.b32.xlu0 %v7432_v48, %s8294_s0 }
 0x4d0   :  { %7437 = vtanh.f32 %v8970_v18 }
 0x4d1   :  { %v1240_v36 = vpop.permute.xlu0 %1239  ;;  %7439 = vtanh.f32 %v8978_v31  ;;  %v1248_v53 = vpop.permute.xlu1 %1247 }
 0x4d2   :  { %v7434_v46 = vpop.eup %7433  ;;  %v8980_v28 = vadd.f32 %v1240_v36, %v1126_v39  ;;  %v9011_v2 = vadd.f32 %v1248_v53, %v1130_v26 }
 0x4d3   :  { %1355 = vrot.lane.b32.xlu0 %v7434_v46, %s8294_s0 }
 0x4d4   :  { %7441 = vtanh.f32 %v8980_v28 }
 0x4d5   :  { %v1244_v3 = vpop.permute.xlu0 %1243  ;;  %7443 = vtanh.f32 %v8989_v30  ;;  %v1250_v27 = vpop.permute.xlu1 %1249 }
 0x4d6   :  { %v7436_v42 = vpop.eup %7435  ;;  %v8991_v9 = vadd.f32 %v1244_v3, %v1128_v56  ;;  %v9021_v47 = vadd.f32 %v1250_v27, %v1131_v62 }
 0x4d7   :  { %1357 = vrot.lane.b32.xlu0 %v7436_v42, %s8294_s0 }
 0x4d8   :  { %7445 = vtanh.f32 %v8991_v9 }
 0x4d9   :  { %v1246_v19 = vpop.permute.xlu0 %1245  ;;  %7447 = vtanh.f32 %v9000_v60  ;;  %v1252_v49 = vpop.permute.xlu1 %1251 }
 0x4da   :  { %v7438_v50 = vpop.eup %7437  ;;  %v9002_v21 = vadd.f32 %v1246_v19, %v1129_v16  ;;  %v9028_v17 = vadd.f32 %v1252_v49, %v1132_v12 }
 0x4db   :  { %1359 = vrot.lane.b32.xlu0 %v7438_v50, %s8294_s0  ;;  %v7440_v35 = vpop.eup %7439 }
 0x4dc   :  { %7449 = vtanh.f32 %v9002_v21  ;;  %1333 = vrot.lane.b32.xlu1 %v7440_v35, %s8294_s0 }
 0x4dd   :  { %v1266_v54 = vpop.permute.xlu0 %1265  ;;  %7451 = vtanh.f32 %v9011_v2  ;;  %v1268_v41 = vpop.permute.xlu1 %1267 }
 0x4de   :  { %v7442_v32 = vpop.eup %7441  ;;  %v9014_v7 = vadd.f32 %v1266_v54, %v1139_v23  ;;  %v9035_v46 = vadd.f32 %v1268_v41, %v1140_v37 }
 0x4df   :  { %1335 = vrot.lane.b32.xlu0 %v7442_v32, %s8294_s0  ;;  %v7444_v57 = vpop.eup %7443 }
 0x4e0   :  { %7453 = vtanh.f32 %v9014_v7  ;;  %1353 = vrot.lane.b32.xlu1 %v7444_v57, %s8294_s0 }
 0x4e1   :  { %7455 = vtanh.f32 %v9021_v47 }
 0x4e2   :  { %v7446_v0 = vpop.eup %7445  ;;  %7457 = vtanh.f32 %v9028_v17 }
 0x4e3   :  { %1339 = vrot.lane.b32.xlu0 %v7446_v0, %s8294_s0  ;;  %v7448_v6 = vpop.eup %7447  ;;  %7459 = vtanh.f32 %v9035_v46 }
 0x4e4   :  { %1337 = vrot.lane.b32.xlu1 %v7448_v6, %s8294_s0 }
 0x4e6   :  { %v7450_v48 = vpop.eup %7449 }
 0x4e7   :  { %1341 = vrot.lane.b32.xlu0 %v7450_v48, %s8294_s0  ;;  %v7452_v39 = vpop.eup %7451 }
 0x4e8   :  { %1343 = vrot.lane.b32.xlu1 %v7452_v39, %s8294_s0 }
 0x4ea   :  { %v7454_v43 = vpop.eup %7453 }
 0x4eb   :  { %1361 = vrot.lane.b32.xlu0 %v7454_v43, %s8294_s0  ;;  %v7456_v36 = vpop.eup %7455 }
 0x4ec   :  { %1345 = vrot.lane.b32.xlu1 %v7456_v36, %s8294_s0  ;;  %v7458_v1 = vpop.eup %7457 }
 0x4ed   :  { %v7460_v59 = vpop.eup %7459 }
 0x4f0   :  { %1347 = vrot.lane.b32.xlu1 %v7458_v1, %s8294_s0 }
 0x4f4   :  { %1363 = vrot.lane.b32.xlu1 %v7460_v59, %s8294_s0 }
 0x53f   :  { %v1350_v3 = vpop.permute.xlu1 %1349 }
 0x541   :  { %v1352_v45 = vpop.permute.xlu0 %1351 }
 0x542   :  { %v1390_v54 = vmul.f32 %v8884_v52, %v1352_v45 }
 0x544   :  { %v1443_v37 = vrot.slane %v1390_v54, 7 }
 0x545   :  { %v1356_v56 = vpop.permute.xlu0 %1355 }
 0x549   :  { %v1358_v42 = vpop.permute.xlu0 %1357 }
 0x54d   :  { %v1360_v15 = vpop.permute.xlu0 %1359 }
 0x54e   :  { %v1334_v29 = vpop.permute.xlu1 %1333  ;;  %v1394_v59 = vmul.f32 %v8899_v20, %v1360_v15 }
 0x54f   :  { %v1381_v32 = vmul.f32 %v8903_v24, %v1334_v29  ;;  %v1389_v24 = vmul.f32 %v8876_v33, %v1350_v3 }
 0x551   :  { %v1336_v16 = vpop.permute.xlu0 %1335  ;;  %v1444_v1 = vsel %vm848_vm1, %v1443_v37, %v1389_v24  ;;  %v1408_v37 = vld [vmem:[#allocation2 + $0x5a] sm:$0x1]  ;;  %v1409_v24 = vld [vmem:[#allocation2 + $0x62] sm:$0x1] }
 0x552   :  { %v1382_v50 = vmul.f32 %v8905_v61, %v1336_v16  ;;  %v1354_v19 = vpop.permute.xlu1 %1353 }
 0x553   :  { %v1391_v57 = vmul.f32 %v8910_v44, %v1354_v19 }
 0x554   :  { %v1429_v53 = vrot.slane %v1382_v50, 7  ;;  %v1451_v50 = vrot.slane %v1394_v59, 3 }
 0x555   :  { %v1340_v26 = vpop.permute.xlu0 %1339  ;;  %v1445_v41 = vrot.slane %v1391_v57, 6  ;;  %v1405_v57 = vld [vmem:[#allocation2 + $0x42] sm:$0x1] }
 0x556   :  { %v1384_v23 = vmul.f32 %v8913_v5, %v1340_v26  ;;  %v1338_v35 = vpop.permute.xlu1 %1337  ;;  %v1430_v12 = vsel %vm848_vm1, %v1429_v53, %v1381_v32 }
 0x557   :  { %v1383_v62 = vmul.f32 %v8918_v25, %v1338_v35  ;;  %v1392_v25 = vmul.f32 %v8889_v58, %v1356_v56  ;;  %v1446_v29 = vsel %vm851_vm2, %v1445_v41, %v1444_v1  ;;  %v1397_v1 = vld [vmem:[#allocation2 + $0x2] sm:$0x1] }
 0x558   :  { %v1433_v61 = vrot.slane %v1384_v23, 5 }
 0x559   :  { %v1342_v27 = vpop.permute.xlu0 %1341  ;;  %v1431_v49 = vrot.slane %v1383_v62, 6  ;;  %v1447_v58 = vrot.slane %v1392_v25, 5 }
 0x55a   :  { %v1385_v0 = vmul.f32 %v8921_v10, %v1342_v27  ;;  %v1344_v6 = vpop.permute.xlu1 %1343  ;;  %v1393_v10 = vmul.f32 %v8894_v14, %v1358_v42 }
 0x55b   :  { %v1386_v5 = vmul.f32 %v8926_v4, %v1344_v6  ;;  %v1432_v52 = vsel %vm851_vm2, %v1431_v49, %v1430_v12  ;;  %v1448_v42 = vsel %vm854_vm3, %v1447_v58, %v1446_v29  ;;  %v1406_v49 = vld [vmem:[#allocation2 + $0x4a] sm:$0x1] }
 0x55c   :  { %v1435_v48 = vrot.slane %v1385_v0, 4  ;;  %v1434_v44 = vsel %vm854_vm3, %v1433_v61, %v1432_v52  ;;  %v1449_v3 = vrot.slane %v1393_v10, 4 }
 0x55d   :  { %v1362_v39 = vpop.permute.xlu0 %1361  ;;  %v1437_v4 = vrot.slane %v1386_v5, 3 }
 0x55e   :  { %v1346_v43 = vpop.permute.xlu1 %1345  ;;  %v1436_v36 = vsel %vm857_vm4, %v1435_v48, %v1434_v44  ;;  %v1395_v33 = vmul.f32 %v8929_v34, %v1362_v39  ;;  %v1410_v39 = vld [vmem:[#allocation2 + $0x6a] sm:$0x1] }
 0x55f   :  { %v1387_v45 = vmul.f32 %v8934_v13, %v1346_v43  ;;  %v1438_v56 = vsel %vm860_vm5, %v1437_v4, %v1436_v36  ;;  %v1450_v13 = vsel %vm857_vm4, %v1449_v3, %v1448_v42  ;;  %v1398_v4 = vld [vmem:[#allocation2 + $0xa] sm:$0x1] }
 0x560   :  { %v1453_v26 = vrot.slane %v1395_v33, 2  ;;  %v1452_v34 = vsel %vm860_vm5, %v1451_v50, %v1450_v13 }
 0x561   :  { %v1439_v16 = vrot.slane %v1387_v45, 2 }
 0x562   :  { %v1348_v14 = vpop.permute.xlu1 %1347  ;;  %v1454_v54 = vsel %vm863_vm6, %v1453_v26, %v1452_v34  ;;  %v1399_v26 = vld [vmem:[#allocation2 + $0x12] sm:$0x1] }
 0x563   :  { %v1388_v19 = vmul.f32 %v8939_v55, %v1348_v14  ;;  %v1440_v20 = vsel %vm863_vm6, %v1439_v16, %v1438_v56  ;;  %v1407_v56 = vld [vmem:[#allocation2 + $0x52] sm:$0x1]  ;;  %v1400_v16 = vld [vmem:[#allocation2 + $0x1a] sm:$0x1] }
 0x565   :  { %v1441_v15 = vrot.slane %v1388_v19, 1 }
 0x566   :  { %v1364_v53 = vpop.permute.xlu1 %1363 }
 0x567   :  { %v1396_v23 = vmul.f32 %v8943_v22, %v1364_v53  ;;  %v1442_v35 = vsel %vm866_vm7, %v1441_v15, %v1440_v20  ;;  %v1401_v20 = vld [vmem:[#allocation2 + $0x22] sm:$0x1] }
 0x568   :  { %1457 = vrot.lane.b32.xlu0 %v1442_v35, %s8295_s4  ;;  %v1402_v35 = vld [vmem:[#allocation2 + $0x2a] sm:$0x1] }
 0x569   :  { %v1455_v32 = vrot.slane %v1396_v23, 1 }
 0x56b   :  { %v1456_v55 = vsel %vm866_vm7, %v1455_v32, %v1454_v54  ;;  %v1411_v54 = vld [vmem:[#allocation2 + $0x72] sm:$0x1] }
 0x56c   :  { %1459 = vrot.lane.b32.xlu1 %v1456_v55, %s8295_s4 }
 0x5da   :  { %v1458_v62 = vpop.permute.xlu0 %1457 }
 0x5db   :  { %6882 = vmatprep.mubr.msk.f32.mxu1 %vm304_vm8, %v1458_v62 }
 0x5de   :  { %v1460_v27 = vpop.permute.xlu1 %1459 }
 0x5df   :  { %6883 = vmatmul.mubr.msk.f32.vlgmr.msra.gmra.mrb[4].mxu1 %vm304_vm8, %v1460_v27 }
 0x5e0   :  { %7058 = vmatpush3.bf16.msra.mxu1 %v8396_v8 }
 0x5e1   :  { %7060 = vmatprep.subr.bf16.mxu1 %v8404_v11 }
 0x5e4   :  { %7062 = vmatpush3.bf16.msra.mxu1 %v8404_v11 }
 0x5e5   :  { %7072 = vmatprep.subr.bf16.mxu1 %v8396_v8 }
 0x6b2   :  { %v9081_v22 = vpop.f32.mrb[4].mxu1 }
 0x6b3   :  { %v9083_v0 = vpop.f32.mrb[5].mxu1  ;;  %v9086_v12 = vadd.f32 %v9081_v22, %v1405_v57  ;;  %v1549_v61 = vrot.slane %v9081_v22, 1  ;;  %v1551_v6 = vrot.slane %v9081_v22, 3  ;;  %v1552_v5 = vrot.slane %v9081_v22, 4 }
 0x6b4   :  { %v1553_v25 = vrot.slane %v9081_v22, 5  ;;  %v1542_v43 = vrot.slane %v9083_v0, 1  ;;  %v1550_v59 = vrot.slane %v9081_v22, 2  ;;  %v9110_v45 = vadd.f32 %v9083_v0, %v1397_v1 }
 0x6b5   :  { %7461 = vtanh.f32 %v9086_v12  ;;  %v9091_v48 = vadd.f32 %v1549_v61, %v1406_v49  ;;  %v9094_v41 = vadd.f32 %v1551_v6, %v1408_v37  ;;  %v9099_v44 = vadd.f32 %v1552_v5, %v1409_v24  ;;  %v1403_v61 = vld [vmem:[#allocation2 + $0x32] sm:$0x1] }
 0x6b6   :  { %v9102_v10 = vadd.f32 %v1553_v25, %v1410_v39  ;;  %v1544_v29 = vrot.slane %v9083_v0, 3  ;;  %v9113_v33 = vadd.f32 %v1542_v43, %v1398_v4  ;;  %v9116_v3 = vadd.f32 %v1550_v59, %v1407_v56  ;;  %v1412_v43 = vld [vmem:[#allocation2 + $0x7a] sm:$0x1] }
 0x6b7   :  { %7463 = vtanh.f32 %v9091_v48  ;;  %v1543_v14 = vrot.slane %v9083_v0, 2  ;;  %v1545_v42 = vrot.slane %v9083_v0, 4  ;;  %v1546_v15 = vrot.slane %v9083_v0, 5 }
 0x6b8   :  { %7465 = vtanh.f32 %v9094_v41  ;;  %v9121_v50 = vadd.f32 %v1544_v29, %v1400_v16  ;;  %v1554_v53 = vrot.slane %v9081_v22, 6  ;;  %v1547_v32 = vrot.slane %v9083_v0, 6 }
 0x6b9   :  { %7467 = vtanh.f32 %v9099_v44  ;;  %v9127_v13 = vadd.f32 %v1543_v14, %v1399_v26  ;;  %v9130_v34 = vadd.f32 %v1545_v42, %v1401_v20  ;;  %v9135_v55 = vadd.f32 %v1546_v15, %v1402_v35 }
 0x6ba   :  { %7469 = vtanh.f32 %v9102_v10  ;;  %v9138_v62 = vadd.f32 %v1554_v53, %v1411_v54  ;;  %v1548_v49 = vrot.slane %v9083_v0, 7  ;;  %v9143_v6 = vadd.f32 %v1547_v32, %v1403_v61 }
 0x6bb   :  { %7471 = vtanh.f32 %v9110_v45  ;;  %v1555_v24 = vrot.slane %v9081_v22, 7  ;;  %v6572_v56 = vmul.f32 -1.442695, %v9091_v48  ;;  %v6574_v16 = vmul.f32 -1.442695, %v9094_v41 }
 0x6bc   :  { %7473 = vtanh.f32 %v9113_v33  ;;  %v6575_v42 = vmul.f32 -1.442695, %v9099_v44  ;;  %v6576_v26 = vmul.f32 -1.442695, %v9102_v10  ;;  %v6563_v15 = vmul.f32 -1.442695, %v9110_v45 }
 0x6bd   :  { %7475 = vtanh.f32 %v9116_v3  ;;  %v6566_v41 = vmul.f32 -1.442695, %v9121_v50  ;;  %v6565_v45 = vmul.f32 -1.442695, %v9127_v13 }
 0x6be   :  { %7477 = vtanh.f32 %v9121_v50  ;;  %v6577_v50 = vmul.f32 -1.442695, %v9138_v62 }
 0x6bf   :  { %v7462_v52 = vpop.eup %7461  ;;  %7479 = vtanh.f32 %v9127_v13 }
 0x6c0   :  { %1748 = vrot.lane.b32.xlu1 %v7462_v52, %s8294_s0  ;;  %7481 = vtanh.f32 %v9130_v34  ;;  %v1404_v52 = vld [vmem:[#allocation2 + $0x3a] sm:$0x1] }
 0x6c1   :  { %v7464_v36 = vpop.eup %7463  ;;  %7483 = vtanh.f32 %v9135_v55  ;;  %v9150_v25 = vadd.f32 %v1548_v49, %v1404_v52 }
 0x6c2   :  { %1750 = vrot.lane.b32.xlu0 %v7464_v36, %s8294_s0  ;;  %v7466_v58 = vpop.eup %7465  ;;  %7485 = vtanh.f32 %v9138_v62  ;;  %v9155_v36 = vadd.f32 %v1555_v24, %v1412_v43 }
 0x6c3   :  { %v7468_v19 = vpop.eup %7467  ;;  %7487 = vtanh.f32 %v9143_v6 }
 0x6c4   :  { %v7470_v23 = vpop.eup %7469  ;;  %7489 = vtanh.f32 %v9150_v25 }
 0x6c5   :  { %v7472_v27 = vpop.eup %7471  ;;  %7491 = vtanh.f32 %v9155_v36 }
 0x6c6   :  { %1754 = vrot.lane.b32.xlu0 %v7466_v58, %s8294_s0  ;;  %v7474_v57 = vpop.eup %7473  ;;  %1732 = vrot.lane.b32.xlu1 %v7472_v27, %s8294_s0  ;;  %v6571_v58 = vmul.f32 -1.442695, %v9086_v12  ;;  %v6564_v12 = vmul.f32 -1.442695, %v9113_v33  ;;  %v6567_v33 = vmul.f32 -1.442695, %v9130_v34 }
 0x6c7   :  { %v7476_v37 = vpop.eup %7475  ;;  %v6569_v34 = vmul.f32 -1.442695, %v9143_v6 }
 0x6c8   :  { %v7478_v5 = vpop.eup %7477  ;;  %7493 = vpow2.f32 %v6571_v58 }
 0x6c9   :  { %v7480_v0 = vpop.eup %7479  ;;  %7495 = vpow2.f32 %v6572_v56 }
 0x6ca   :  { %1756 = vrot.lane.b32.xlu0 %v7468_v19, %s8294_s0  ;;  %1752 = vrot.lane.b32.xlu1 %v7476_v37, %s8294_s0  ;;  %v7482_v39 = vpop.eup %7481  ;;  %7497 = vpow2.f32 %v6574_v16  ;;  %v6578_v16 = vmul.f32 -1.442695, %v9155_v36 }
 0x6cb   :  { %v7484_v1 = vpop.eup %7483  ;;  %7499 = vpow2.f32 %v6575_v42 }
 0x6cc   :  { %v7486_v59 = vpop.eup %7485 }
 0x6cd   :  { %v7488_v22 = vpop.eup %7487 }
 0x6ce   :  { %1758 = vrot.lane.b32.xlu0 %v7470_v23, %s8294_s0  ;;  %1736 = vrot.lane.b32.xlu1 %v7480_v0, %s8294_s0  ;;  %v7490_v4 = vpop.eup %7489  ;;  %v6573_v23 = vmul.f32 -1.442695, %v9116_v3 }
 0x6cf   :  { %v7492_v29 = vpop.eup %7491 }
 0x6d2   :  { %1734 = vrot.lane.b32.xlu0 %v7474_v57, %s8294_s0  ;;  %1742 = vrot.lane.b32.xlu1 %v7484_v1, %s8294_s0  ;;  %v7494_v14 = vpop.eup %7493  ;;  %v6568_v57 = vmul.f32 -1.442695, %v9135_v55  ;;  %v6570_v1 = vmul.f32 -1.442695, %v9150_v25 }
 0x6d3   :  { %v1644_v19 = vadd.f32 1.0, %v7494_v14  ;;  %v7496_v20 = vpop.eup %7495 }
 0x6d4   :  { %v1645_v53 = vadd.f32 1.0, %v7496_v20  ;;  %v7498_v48 = vpop.eup %7497 }
 0x6d5   :  { %7501 = vrcp.f32 %v1644_v19  ;;  %v7500_v44 = vpop.eup %7499  ;;  %v1647_v35 = vadd.f32 1.0, %v7498_v48 }
 0x6d6   :  { %1738 = vrot.lane.b32.xlu0 %v7478_v5, %s8294_s0  ;;  %1744 = vrot.lane.b32.xlu1 %v7488_v22, %s8294_s0  ;;  %7503 = vpow2.f32 %v6576_v26  ;;  %v1648_v3 = vadd.f32 1.0, %v7500_v44 }
 0x6d7   :  { %7505 = vpow2.f32 %v6563_v15 }
 0x6d8   :  { %7507 = vpow2.f32 %v6564_v12 }
 0x6d9   :  { %7509 = vrcp.f32 %v1645_v53 }
 0x6da   :  { %1740 = vrot.lane.b32.xlu0 %v7482_v39, %s8294_s0  ;;  %1746 = vrot.lane.b32.xlu1 %v7490_v4, %s8294_s0  ;;  %7511 = vpow2.f32 %v6573_v23 }
 0x6db   :  { %7513 = vpow2.f32 %v6566_v41 }
 0x6dc   :  { %7515 = vrcp.f32 %v1647_v35 }
 0x6dd   :  { %7517 = vpow2.f32 %v6565_v45 }
 0x6de   :  { %1760 = vrot.lane.b32.xlu0 %v7486_v59, %s8294_s0  ;;  %1762 = vrot.lane.b32.xlu1 %v7492_v29, %s8294_s0  ;;  %7519 = vpow2.f32 %v6567_v33 }
 0x6df   :  { %v9174_v54 = vpop.eup %7501  ;;  %7521 = vrcp.f32 %v1648_v3 }
 0x6e0   :  { %v7504_v27 = vpop.eup %7503  ;;  %7523 = vpow2.f32 %v6577_v50 }
 0x6e1   :  { %v7506_v61 = vpop.eup %7505  ;;  %v1649_v49 = vadd.f32 1.0, %v7504_v27  ;;  %7525 = vpow2.f32 %v6568_v57 }
 0x6e2   :  { %v7508_v13 = vpop.eup %7507  ;;  %v1636_v0 = vadd.f32 1.0, %v7506_v61 }
 0x6e3   :  { %v9182_v37 = vpop.eup %7509  ;;  %7527 = vrcp.f32 %v1649_v49  ;;  %v1637_v55 = vadd.f32 1.0, %v7508_v13 }
 0x6e4   :  { %v7512_v24 = vpop.eup %7511  ;;  %7529 = vpow2.f32 %v6569_v34 }
 0x6e5   :  { %v7514_v62 = vpop.eup %7513  ;;  %7531 = vrcp.f32 %v1636_v0  ;;  %v1646_v6 = vadd.f32 1.0, %v7512_v24 }
 0x6e6   :  { %v9187_v39 = vpop.eup %7515  ;;  %7533 = vrcp.f32 %v1637_v55  ;;  %v1639_v29 = vadd.f32 1.0, %v7514_v62 }
 0x6e7   :  { %v7518_v22 = vpop.eup %7517  ;;  %7535 = vpow2.f32 %v6570_v1 }
 0x6e8   :  { %v7520_v4 = vpop.eup %7519  ;;  %7537 = vrcp.f32 %v1646_v6  ;;  %v1638_v25 = vadd.f32 1.0, %v7518_v22 }
 0x6e9   :  { %v9192_v58 = vpop.eup %7521  ;;  %7539 = vrcp.f32 %v1639_v29  ;;  %v1640_v26 = vadd.f32 1.0, %v7520_v4 }
 0x6ea   :  { %v7524_v42 = vpop.eup %7523  ;;  %7541 = vpow2.f32 %v6578_v16 }
 0x6eb   :  { %v7526_v19 = vpop.eup %7525  ;;  %7543 = vrcp.f32 %v1638_v25  ;;  %v1650_v48 = vadd.f32 1.0, %v7524_v42 }
 0x6ec   :  { %v1641_v53 = vadd.f32 1.0, %v7526_v19  ;;  %7545 = vrcp.f32 %v1640_v26 }
 0x6ed   :  { %v9197_v20 = vpop.eup %7527 }
 0x6ee   :  { %v7530_v36 = vpop.eup %7529  ;;  %7547 = vrcp.f32 %v1641_v53  ;;  %v1708_v53 = vmul.f32 %v9174_v54, %v8949_v51  ;;  %v1712_v51 = vmul.f32 %v9192_v58, %v8965_v40 }
 0x6ef   :  { %v9201_v23 = vpop.eup %7531  ;;  %7549 = vrcp.f32 %v1650_v48 }
 0x6f0   :  { %v9203_v44 = vpop.eup %7533 }
 0x6f1   :  { %v7536_v33 = vpop.eup %7535 }
 0x6f2   :  { %v9208_v3 = vpop.eup %7537  ;;  %v1643_v13 = vadd.f32 1.0, %v7536_v33 }
 0x6f3   :  { %v9211_v50 = vpop.eup %7539 }
 0x732   :  { %v1749_v10 = vpop.permute.xlu1 %1748 }
 0x733   :  { %v1788_v32 = vmul.f32 %v9174_v54, %v1749_v10 }
 0x734   :  { %v1751_v5 = vpop.permute.xlu0 %1750 }
 0x735   :  { %1828 = vrot.lane.b32.xlu1 %v1788_v32, %s8295_s4  ;;  %v1789_v52 = vmul.f32 %v9182_v37, %v1751_v5  ;;  %v1642_v32 = vadd.f32 1.0, %v7530_v36  ;;  %v7542_v5 = vpop.eup %7541 }
 0x736   :  { %v9216_v34 = vpop.eup %7543 }
 0x737   :  { %1830 = vrot.lane.b32.xlu0 %v1789_v52, %s8295_s4  ;;  %7551 = vrcp.f32 %v1642_v32  ;;  %v9219_v24 = vpop.eup %7545 }
 0x738   :  { %v1755_v43 = vpop.permute.xlu0 %1754  ;;  %v1733_v41 = vpop.permute.xlu1 %1732  ;;  %7553 = vrcp.f32 %v1643_v13 }
 0x739   :  { %v1791_v59 = vmul.f32 %v9187_v39, %v1755_v43  ;;  %v1780_v35 = vmul.f32 %v9201_v23, %v1733_v41  ;;  %v1651_v43 = vadd.f32 1.0, %v7542_v5  ;;  %v9224_v1 = vpop.eup %7547  ;;  %v1709_v41 = vmul.f32 %v9182_v37, %v8954_v63 }
 0x73a   :  { %v9227_v22 = vpop.eup %7549  ;;  %v1700_v5 = vmul.f32 %v9201_v23, %v8978_v31 }
 0x73b   :  { %1834 = vrot.lane.b32.xlu0 %v1791_v59, %s8295_s4  ;;  %1812 = vrot.lane.b32.xlu1 %v1780_v35, %s8295_s4  ;;  %7555 = vrcp.f32 %v1651_v43  ;;  %v1710_v43 = vmul.f32 %v9208_v3, %v8989_v30 }
 0x73c   :  { %v1757_v56 = vpop.permute.xlu0 %1756  ;;  %v1753_v27 = vpop.permute.xlu1 %1752 }
 0x73d   :  { %v1792_v14 = vmul.f32 %v9192_v58, %v1757_v56  ;;  %v1790_v57 = vmul.f32 %v9208_v3, %v1753_v27 }
 0x73f   :  { %1836 = vrot.lane.b32.xlu0 %v1792_v14, %s8295_s4  ;;  %1832 = vrot.lane.b32.xlu1 %v1790_v57, %s8295_s4 }
 0x740   :  { %v1759_v15 = vpop.permute.xlu0 %1758  ;;  %v1737_v52 = vpop.permute.xlu1 %1736 }
 0x741   :  { %v1793_v12 = vmul.f32 %v9197_v20, %v1759_v15  ;;  %v1782_v0 = vmul.f32 %v9216_v34, %v1737_v52  ;;  %v9232_v56 = vpop.eup %7551  ;;  %v1701_v52 = vmul.f32 %v9203_v44, %v8980_v28 }
 0x742   :  { %v9237_v42 = vpop.eup %7553 }
 0x743   :  { %1838 = vrot.lane.b32.xlu0 %v1793_v12, %s8295_s4  ;;  %1816 = vrot.lane.b32.xlu1 %v1782_v0, %s8295_s4 }
 0x744   :  { %v1735_v10 = vpop.permute.xlu0 %1734  ;;  %v1743_v59 = vpop.permute.xlu1 %1742 }
 0x745   :  { %v1781_v45 = vmul.f32 %v9203_v44, %v1735_v10  ;;  %v1785_v6 = vmul.f32 %v9224_v1, %v1743_v59  ;;  %v9241_v26 = vpop.eup %7555  ;;  %v1703_v59 = vmul.f32 %v9211_v50, %v8991_v9 }
 0x747   :  { %1814 = vrot.lane.b32.xlu0 %v1781_v45, %s8295_s4  ;;  %1822 = vrot.lane.b32.xlu1 %v1785_v6, %s8295_s4  ;;  %v1711_v45 = vmul.f32 %v9187_v39, %v8959_v38 }
 0x748   :  { %v1739_v61 = vpop.permute.xlu0 %1738  ;;  %v1745_v16 = vpop.permute.xlu1 %1744 }
 0x749   :  { %v1783_v49 = vmul.f32 %v9211_v50, %v1739_v61  ;;  %v1786_v14 = vmul.f32 %v9232_v56, %v1745_v16  ;;  %v1713_v61 = vmul.f32 %v9197_v20, %v8970_v18  ;;  %v1702_v16 = vmul.f32 %v9216_v34, %v9000_v60 }
 0x74b   :  { %1818 = vrot.lane.b32.xlu0 %v1783_v49, %s8295_s4  ;;  %1824 = vrot.lane.b32.xlu1 %v1786_v14, %s8295_s4  ;;  %v1704_v14 = vmul.f32 %v9219_v24, %v9002_v21 }
 0x74c   :  { %v1741_v62 = vpop.permute.xlu0 %1740  ;;  %v1747_v25 = vpop.permute.xlu1 %1746 }
 0x74d   :  { %v1784_v55 = vmul.f32 %v9219_v24, %v1741_v62  ;;  %v1787_v19 = vmul.f32 %v9237_v42, %v1747_v25 }
 0x74f   :  { %1820 = vrot.lane.b32.xlu0 %v1784_v55, %s8295_s4  ;;  %1826 = vrot.lane.b32.xlu1 %v1787_v19, %s8295_s4 }
 0x750   :  { %v1761_v4 = vpop.permute.xlu0 %1760  ;;  %v1763_v15 = vpop.permute.xlu1 %1762 }
 0x751   :  { %v1794_v29 = vmul.f32 %v9227_v22, %v1761_v4  ;;  %v1795_v12 = vmul.f32 %v9241_v26, %v1763_v15 }
 0x753   :  { %1840 = vrot.lane.b32.xlu0 %v1794_v29, %s8295_s4  ;;  %1842 = vrot.lane.b32.xlu1 %v1795_v12, %s8295_s4  ;;  %v1705_v12 = vmul.f32 %v9224_v1, %v9011_v2  ;;  %v1706_v2 = vmul.f32 %v9232_v56, %v9021_v47 }
 0x7a7   :  { %v1829_v36 = vpop.permute.xlu1 %1828 }
 0x7a8   :  { %v9247_v48 = vadd.f32 %v1829_v36, %v1708_v53  ;;  %v1714_v53 = vmul.f32 %v9227_v22, %v9014_v7 }
 0x7a9   :  { %v1831_v35 = vpop.permute.xlu0 %1830 }
 0x7aa   :  { %7557 = vtanh.f32 %v9247_v48  ;;  %v9252_v10 = vadd.f32 %v1831_v35, %v1709_v41 }
 0x7ac   :  { %7559 = vtanh.f32 %v9252_v10 }
 0x7ad   :  { %v1835_v33 = vpop.permute.xlu0 %1834  ;;  %v1813_v40 = vpop.permute.xlu1 %1812 }
 0x7ae   :  { %v9257_v27 = vadd.f32 %v1835_v33, %v1711_v45  ;;  %v9276_v62 = vadd.f32 %v1813_v40, %v1700_v5  ;;  %v1715_v5 = vmul.f32 %v9241_v26, %v9035_v46 }
 0x7b0   :  { %7561 = vtanh.f32 %v9257_v27 }
 0x7b1   :  { %v1837_v63 = vpop.permute.xlu0 %1836  ;;  %v1833_v31 = vpop.permute.xlu1 %1832 }
 0x7b2   :  { %v9263_v57 = vadd.f32 %v1837_v63, %v1712_v51  ;;  %v9287_v6 = vadd.f32 %v1833_v31, %v1710_v43  ;;  %v1707_v63 = vmul.f32 %v9237_v42, %v9028_v17 }
 0x7b4   :  { %v7558_v32 = vpop.eup %7557  ;;  %7563 = vtanh.f32 %v9263_v57 }
 0x7b5   :  { %1924 = vrot.lane.b32.xlu1 %v7558_v32, %s8294_s0  ;;  %v1839_v38 = vpop.permute.xlu0 %1838  ;;  %v1817_v30 = vpop.permute.xlu1 %1816 }
 0x7b6   :  { %v7560_v49 = vpop.eup %7559  ;;  %v9268_v13 = vadd.f32 %v1839_v38, %v1713_v61  ;;  %v9298_v25 = vadd.f32 %v1817_v30, %v1702_v16 }
 0x7b7   :  { %1926 = vrot.lane.b32.xlu0 %v7560_v49, %s8294_s0 }
 0x7b8   :  { %7565 = vtanh.f32 %v9268_v13 }
 0x7b9   :  { %v1815_v55 = vpop.permute.xlu0 %1814  ;;  %7567 = vtanh.f32 %v9276_v62  ;;  %v1823_v60 = vpop.permute.xlu1 %1822 }
 0x7ba   :  { %v7562_v0 = vpop.eup %7561  ;;  %v9278_v18 = vadd.f32 %v1815_v55, %v1701_v52  ;;  %v9309_v36 = vadd.f32 %v1823_v60, %v1705_v12 }
 0x7bb   :  { %1930 = vrot.lane.b32.xlu0 %v7562_v0, %s8294_s0 }
 0x7bc   :  { %7569 = vtanh.f32 %v9278_v18 }
 0x7bd   :  { %v1819_v4 = vpop.permute.xlu0 %1818  ;;  %7571 = vtanh.f32 %v9287_v6  ;;  %v1825_v32 = vpop.permute.xlu1 %1824 }
 0x7be   :  { %v7564_v28 = vpop.eup %7563  ;;  %v9289_v29 = vadd.f32 %v1819_v4, %v1703_v59  ;;  %v9319_v33 = vadd.f32 %v1825_v32, %v1706_v2 }
 0x7bf   :  { %1932 = vrot.lane.b32.xlu0 %v7564_v28, %s8294_s0 }
 0x7c0   :  { %7573 = vtanh.f32 %v9289_v29 }
 0x7c1   :  { %v1821_v19 = vpop.permute.xlu0 %1820  ;;  %7575 = vtanh.f32 %v9298_v25  ;;  %v1827_v61 = vpop.permute.xlu1 %1826 }
 0x7c2   :  { %v7566_v9 = vpop.eup %7565  ;;  %v9300_v15 = vadd.f32 %v1821_v19, %v1704_v14  ;;  %v9326_v38 = vadd.f32 %v1827_v61, %v1707_v63 }
 0x7c3   :  { %1934 = vrot.lane.b32.xlu0 %v7566_v9, %s8294_s0  ;;  %v7568_v21 = vpop.eup %7567 }
 0x7c4   :  { %7577 = vtanh.f32 %v9300_v15  ;;  %1908 = vrot.lane.b32.xlu1 %v7568_v21, %s8294_s0 }
 0x7c5   :  { %v1841_v41 = vpop.permute.xlu0 %1840  ;;  %7579 = vtanh.f32 %v9309_v36  ;;  %v1843_v40 = vpop.permute.xlu1 %1842 }
 0x7c6   :  { %v7570_v35 = vpop.eup %7569  ;;  %v9312_v45 = vadd.f32 %v1841_v41, %v1714_v53  ;;  %v9333_v0 = vadd.f32 %v1843_v40, %v1715_v5 }
 0x7c7   :  { %1910 = vrot.lane.b32.xlu0 %v7570_v35, %s8294_s0  ;;  %v7572_v7 = vpop.eup %7571 }
 0x7c8   :  { %7581 = vtanh.f32 %v9312_v45  ;;  %1928 = vrot.lane.b32.xlu1 %v7572_v7, %s8294_s0 }
 0x7c9   :  { %7583 = vtanh.f32 %v9319_v33 }
 0x7ca   :  { %v7574_v51 = vpop.eup %7573  ;;  %7585 = vtanh.f32 %v9326_v38 }
 0x7cb   :  { %1914 = vrot.lane.b32.xlu0 %v7574_v51, %s8294_s0  ;;  %v7576_v47 = vpop.eup %7575  ;;  %7587 = vtanh.f32 %v9333_v0 }
 0x7cc   :  { %1912 = vrot.lane.b32.xlu1 %v7576_v47, %s8294_s0 }
 0x7ce   :  { %v7578_v49 = vpop.eup %7577 }
 0x7cf   :  { %1916 = vrot.lane.b32.xlu0 %v7578_v49, %s8294_s0  ;;  %v7580_v52 = vpop.eup %7579 }
 0x7d0   :  { %1918 = vrot.lane.b32.xlu1 %v7580_v52, %s8294_s0 }
 0x7d2   :  { %v7582_v17 = vpop.eup %7581 }
 0x7d3   :  { %1936 = vrot.lane.b32.xlu0 %v7582_v17, %s8294_s0  ;;  %v7584_v55 = vpop.eup %7583 }
 0x7d4   :  { %1920 = vrot.lane.b32.xlu1 %v7584_v55, %s8294_s0  ;;  %v7586_v43 = vpop.eup %7585 }
 0x7d5   :  { %v7588_v46 = vpop.eup %7587 }
 0x7d8   :  { %1922 = vrot.lane.b32.xlu1 %v7586_v43, %s8294_s0 }
 0x7dc   :  { %1938 = vrot.lane.b32.xlu1 %v7588_v46, %s8294_s0 }
 0x827   :  { %v1925_v4 = vpop.permute.xlu1 %1924 }
 0x829   :  { %v1927_v31 = vpop.permute.xlu0 %1926 }
 0x82a   :  { %v1965_v41 = vmul.f32 %v9182_v37, %v1927_v31 }
 0x82c   :  { %v2018_v5 = vrot.slane %v1965_v41, 7 }
 0x82d   :  { %v1931_v59 = vpop.permute.xlu0 %1930 }
 0x831   :  { %v1933_v28 = vpop.permute.xlu0 %1932 }
 0x835   :  { %v1935_v16 = vpop.permute.xlu0 %1934 }
 0x836   :  { %v1909_v30 = vpop.permute.xlu1 %1908  ;;  %v1969_v46 = vmul.f32 %v9197_v20, %v1935_v16 }
 0x837   :  { %v1956_v35 = vmul.f32 %v9201_v23, %v1909_v30  ;;  %v1964_v23 = vmul.f32 %v9174_v54, %v1925_v4 }
 0x839   :  { %v1911_v14 = vpop.permute.xlu0 %1910  ;;  %v2019_v43 = vsel %vm848_vm1, %v2018_v5, %v1964_v23  ;;  %v1983_v5 = vld [vmem:[#allocation2 + $0x5b] sm:$0x1]  ;;  %v1984_v23 = vld [vmem:[#allocation2 + $0x63] sm:$0x1] }
 0x83a   :  { %v1957_v9 = vmul.f32 %v9203_v44, %v1911_v14  ;;  %v1929_v19 = vpop.permute.xlu1 %1928 }
 0x83b   :  { %v1966_v7 = vmul.f32 %v9208_v3, %v1929_v19 }
 0x83c   :  { %v2004_v60 = vrot.slane %v1957_v9, 7  ;;  %v2026_v9 = vrot.slane %v1969_v46, 3 }
 0x83d   :  { %v1915_v12 = vpop.permute.xlu0 %1914  ;;  %v2020_v40 = vrot.slane %v1966_v7, 6  ;;  %v1980_v7 = vld [vmem:[#allocation2 + $0x43] sm:$0x1] }
 0x83e   :  { %v1959_v53 = vmul.f32 %v9211_v50, %v1915_v12  ;;  %v1913_v21 = vpop.permute.xlu1 %1912  ;;  %v2005_v63 = vsel %vm848_vm1, %v2004_v60, %v1956_v35 }
 0x83f   :  { %v1958_v2 = vmul.f32 %v9216_v34, %v1913_v21  ;;  %v1967_v34 = vmul.f32 %v9187_v39, %v1931_v59  ;;  %v2021_v30 = vsel %vm851_vm2, %v2020_v40, %v2019_v43  ;;  %v1972_v43 = vld [vmem:[#allocation2 + $0x3] sm:$0x1] }
 0x840   :  { %v2008_v44 = vrot.slane %v1959_v53, 5 }
 0x841   :  { %v1917_v32 = vpop.permute.xlu0 %1916  ;;  %v2006_v61 = vrot.slane %v1958_v2, 6  ;;  %v2022_v39 = vrot.slane %v1967_v34, 5 }
 0x842   :  { %v1960_v51 = vmul.f32 %v9219_v24, %v1917_v32  ;;  %v1919_v47 = vpop.permute.xlu1 %1918  ;;  %v1968_v24 = vmul.f32 %v9192_v58, %v1933_v28 }
 0x843   :  { %v1961_v50 = vmul.f32 %v9224_v1, %v1919_v47  ;;  %v2007_v37 = vsel %vm851_vm2, %v2006_v61, %v2005_v63  ;;  %v2023_v28 = vsel %vm854_vm3, %v2022_v39, %v2021_v30  ;;  %v1981_v61 = vld [vmem:[#allocation2 + $0x4b] sm:$0x1] }
 0x844   :  { %v2010_v49 = vrot.slane %v1960_v51, 4  ;;  %v2009_v3 = vsel %vm854_vm3, %v2008_v44, %v2007_v37  ;;  %v2024_v4 = vrot.slane %v1968_v24, 4 }
 0x845   :  { %v1937_v52 = vpop.permute.xlu0 %1936  ;;  %v2012_v1 = vrot.slane %v1961_v50, 3 }
 0x846   :  { %v1921_v17 = vpop.permute.xlu1 %1920  ;;  %v2011_v55 = vsel %vm857_vm4, %v2010_v49, %v2009_v3  ;;  %v1970_v54 = vmul.f32 %v9227_v22, %v1937_v52  ;;  %v1985_v52 = vld [vmem:[#allocation2 + $0x6b] sm:$0x1] }
 0x847   :  { %v1962_v31 = vmul.f32 %v9232_v56, %v1921_v17  ;;  %v2013_v59 = vsel %vm860_vm5, %v2012_v1, %v2011_v55  ;;  %v2025_v56 = vsel %vm857_vm4, %v2024_v4, %v2023_v28  ;;  %v1973_v1 = vld [vmem:[#allocation2 + $0xb] sm:$0x1] }
 0x848   :  { %v2028_v12 = vrot.slane %v1970_v54, 2  ;;  %v2027_v22 = vsel %vm860_vm5, %v2026_v9, %v2025_v56 }
 0x849   :  { %v2014_v14 = vrot.slane %v1962_v31, 2 }
 0x84a   :  { %v1923_v58 = vpop.permute.xlu1 %1922  ;;  %v2029_v41 = vsel %vm863_vm6, %v2028_v12, %v2027_v22  ;;  %v1974_v12 = vld [vmem:[#allocation2 + $0x13] sm:$0x1] }
 0x84b   :  { %v1963_v19 = vmul.f32 %v9237_v42, %v1923_v58  ;;  %v2015_v20 = vsel %vm863_vm6, %v2014_v14, %v2013_v59  ;;  %v1982_v59 = vld [vmem:[#allocation2 + $0x53] sm:$0x1]  ;;  %v1975_v14 = vld [vmem:[#allocation2 + $0x1b] sm:$0x1] }
 0x84d   :  { %v2016_v16 = vrot.slane %v1963_v19, 1 }
 0x84e   :  { %v1939_v60 = vpop.permute.xlu1 %1938 }
 0x84f   :  { %v1971_v53 = vmul.f32 %v9241_v26, %v1939_v60  ;;  %v2017_v21 = vsel %vm866_vm7, %v2016_v16, %v2015_v20  ;;  %v1976_v20 = vld [vmem:[#allocation2 + $0x23] sm:$0x1] }
 0x850   :  { %2032 = vrot.lane.b32.xlu0 %v2017_v21, %s8295_s4  ;;  %v1977_v21 = vld [vmem:[#allocation2 + $0x2b] sm:$0x1] }
 0x851   :  { %v2030_v35 = vrot.slane %v1971_v53, 1 }
 0x853   :  { %v2031_v42 = vsel %vm866_vm7, %v2030_v35, %v2029_v41  ;;  %v1986_v41 = vld [vmem:[#allocation2 + $0x73] sm:$0x1] }
 0x854   :  { %2034 = vrot.lane.b32.xlu1 %v2031_v42, %s8295_s4 }
 0x8c2   :  { %v2033_v2 = vpop.permute.xlu0 %2032 }
 0x8c3   :  { %6893 = vmatprep.mubr.msk.f32.mxu1 %vm304_vm8, %v2033_v2 }
 0x8c6   :  { %v2035_v32 = vpop.permute.xlu1 %2034 }
 0x8c7   :  { %6894 = vmatmul.mubr.msk.f32.vlgmr.msra.gmra.mrb[6].mxu1 %vm304_vm8, %v2035_v32 }
 0x8c8   :  { %7074 = vmatpush3.bf16.msra.mxu1 %v8396_v8 }
 0x8c9   :  { %7076 = vmatprep.subr.bf16.mxu1 %v8404_v11 }
 0x8cc   :  { %7078 = vmatpush3.bf16.msra.mxu1 %v8404_v11 }
 0x8cd   :  { %7088 = vmatprep.subr.bf16.mxu1 %v8396_v8 }
 0x99a   :  { %v9379_v26 = vpop.f32.mrb[6].mxu1 }
 0x99b   :  { %v9381_v51 = vpop.f32.mrb[7].mxu1  ;;  %v9384_v63 = vadd.f32 %v9379_v26, %v1980_v7  ;;  %v2124_v44 = vrot.slane %v9379_v26, 1  ;;  %v2126_v47 = vrot.slane %v9379_v26, 3  ;;  %v2127_v50 = vrot.slane %v9379_v26, 4 }
 0x99c   :  { %v2128_v34 = vrot.slane %v9379_v26, 5  ;;  %v2117_v17 = vrot.slane %v9381_v51, 1  ;;  %v2125_v46 = vrot.slane %v9379_v26, 2  ;;  %v9408_v31 = vadd.f32 %v9381_v51, %v1972_v43 }
 0x99d   :  { %7589 = vtanh.f32 %v9384_v63  ;;  %v9389_v49 = vadd.f32 %v2124_v44, %v1981_v61  ;;  %v9392_v40 = vadd.f32 %v2126_v47, %v1983_v5  ;;  %v9397_v3 = vadd.f32 %v2127_v50, %v1984_v23  ;;  %v1978_v44 = vld [vmem:[#allocation2 + $0x33] sm:$0x1] }
 0x99e   :  { %v9400_v24 = vadd.f32 %v2128_v34, %v1985_v52  ;;  %v2119_v30 = vrot.slane %v9381_v51, 3  ;;  %v9411_v54 = vadd.f32 %v2117_v17, %v1973_v1  ;;  %v9414_v4 = vadd.f32 %v2125_v46, %v1982_v59  ;;  %v1987_v17 = vld [vmem:[#allocation2 + $0x7b] sm:$0x1] }
 0x99f   :  { %7591 = vtanh.f32 %v9389_v49  ;;  %v2118_v58 = vrot.slane %v9381_v51, 2  ;;  %v2120_v28 = vrot.slane %v9381_v51, 4  ;;  %v2121_v16 = vrot.slane %v9381_v51, 5 }
 0x9a0   :  { %7593 = vtanh.f32 %v9392_v40  ;;  %v9419_v9 = vadd.f32 %v2119_v30, %v1975_v14  ;;  %v2129_v60 = vrot.slane %v9379_v26, 6  ;;  %v2122_v35 = vrot.slane %v9381_v51, 6 }
 0x9a1   :  { %7595 = vtanh.f32 %v9397_v3  ;;  %v9425_v56 = vadd.f32 %v2118_v58, %v1974_v12  ;;  %v9428_v22 = vadd.f32 %v2120_v28, %v1976_v20  ;;  %v9433_v42 = vadd.f32 %v2121_v16, %v1977_v21 }
 0x9a2   :  { %7597 = vtanh.f32 %v9400_v24  ;;  %v9436_v2 = vadd.f32 %v2129_v60, %v1986_v41  ;;  %v2123_v61 = vrot.slane %v9381_v51, 7  ;;  %v9441_v47 = vadd.f32 %v2122_v35, %v1978_v44 }
 0x9a3   :  { %7599 = vtanh.f32 %v9408_v31  ;;  %v2130_v23 = vrot.slane %v9379_v26, 7  ;;  %v6590_v59 = vmul.f32 -1.442695, %v9389_v49  ;;  %v6592_v14 = vmul.f32 -1.442695, %v9392_v40 }
 0x9a4   :  { %7601 = vtanh.f32 %v9411_v54  ;;  %v6593_v28 = vmul.f32 -1.442695, %v9397_v3  ;;  %v6594_v12 = vmul.f32 -1.442695, %v9400_v24  ;;  %v6581_v16 = vmul.f32 -1.442695, %v9408_v31 }
 0x9a5   :  { %7603 = vtanh.f32 %v9414_v4  ;;  %v6584_v40 = vmul.f32 -1.442695, %v9419_v9  ;;  %v6583_v31 = vmul.f32 -1.442695, %v9425_v56 }
 0x9a6   :  { %7605 = vtanh.f32 %v9419_v9  ;;  %v6595_v9 = vmul.f32 -1.442695, %v9436_v2 }
 0x9a7   :  { %v7590_v37 = vpop.eup %7589  ;;  %7607 = vtanh.f32 %v9425_v56 }
 0x9a8   :  { %2323 = vrot.lane.b32.xlu1 %v7590_v37, %s8294_s0  ;;  %7609 = vtanh.f32 %v9428_v22  ;;  %v1979_v37 = vld [vmem:[#allocation2 + $0x3b] sm:$0x1] }
 0x9a9   :  { %v7592_v55 = vpop.eup %7591  ;;  %7611 = vtanh.f32 %v9433_v42  ;;  %v9448_v34 = vadd.f32 %v2123_v61, %v1979_v37 }
 0x9aa   :  { %2325 = vrot.lane.b32.xlu0 %v7592_v55, %s8294_s0  ;;  %v7594_v39 = vpop.eup %7593  ;;  %7613 = vtanh.f32 %v9436_v2  ;;  %v9453_v55 = vadd.f32 %v2130_v23, %v1987_v17 }
 0x9ab   :  { %v7596_v19 = vpop.eup %7595  ;;  %7615 = vtanh.f32 %v9441_v47 }
 0x9ac   :  { %v7598_v53 = vpop.eup %7597  ;;  %7617 = vtanh.f32 %v9448_v34 }
 0x9ad   :  { %v7600_v32 = vpop.eup %7599  ;;  %7619 = vtanh.f32 %v9453_v55 }
 0x9ae   :  { %2329 = vrot.lane.b32.xlu0 %v7594_v39, %s8294_s0  ;;  %v7602_v7 = vpop.eup %7601  ;;  %2307 = vrot.lane.b32.xlu1 %v7600_v32, %s8294_s0  ;;  %v6589_v39 = vmul.f32 -1.442695, %v9384_v63  ;;  %v6582_v63 = vmul.f32 -1.442695, %v9411_v54  ;;  %v6585_v54 = vmul.f32 -1.442695, %v9428_v22 }
 0x9af   :  { %v7604_v5 = vpop.eup %7603  ;;  %v6587_v22 = vmul.f32 -1.442695, %v9441_v47 }
 0x9b0   :  { %v7606_v50 = vpop.eup %7605  ;;  %7621 = vpow2.f32 %v6589_v39 }
 0x9b1   :  { %v7608_v51 = vpop.eup %7607  ;;  %7623 = vpow2.f32 %v6590_v59 }
 0x9b2   :  { %2331 = vrot.lane.b32.xlu0 %v7596_v19, %s8294_s0  ;;  %2327 = vrot.lane.b32.xlu1 %v7604_v5, %s8294_s0  ;;  %v7610_v52 = vpop.eup %7609  ;;  %7625 = vpow2.f32 %v6592_v14  ;;  %v6596_v14 = vmul.f32 -1.442695, %v9453_v55 }
 0x9b3   :  { %v7612_v43 = vpop.eup %7611  ;;  %7627 = vpow2.f32 %v6593_v28 }
 0x9b4   :  { %v7614_v46 = vpop.eup %7613 }
 0x9b5   :  { %v7616_v26 = vpop.eup %7615 }
 0x9b6   :  { %2333 = vrot.lane.b32.xlu0 %v7598_v53, %s8294_s0  ;;  %2311 = vrot.lane.b32.xlu1 %v7608_v51, %s8294_s0  ;;  %v7618_v1 = vpop.eup %7617  ;;  %v6591_v53 = vmul.f32 -1.442695, %v9414_v4 }
 0x9b7   :  { %v7620_v30 = vpop.eup %7619 }
 0x9ba   :  { %2309 = vrot.lane.b32.xlu0 %v7602_v7, %s8294_s0  ;;  %2317 = vrot.lane.b32.xlu1 %v7612_v43, %s8294_s0  ;;  %v7622_v58 = vpop.eup %7621  ;;  %v6586_v7 = vmul.f32 -1.442695, %v9433_v42  ;;  %v6588_v43 = vmul.f32 -1.442695, %v9448_v34 }
 0x9bb   :  { %v2219_v19 = vadd.f32 1.0, %v7622_v58  ;;  %v7624_v20 = vpop.eup %7623 }
 0x9bc   :  { %v2220_v60 = vadd.f32 1.0, %v7624_v20  ;;  %v7626_v49 = vpop.eup %7625 }
 0x9bd   :  { %7629 = vrcp.f32 %v2219_v19  ;;  %v7628_v3 = vpop.eup %7627  ;;  %v2222_v21 = vadd.f32 1.0, %v7626_v49 }
 0x9be   :  { %2313 = vrot.lane.b32.xlu0 %v7606_v50, %s8294_s0  ;;  %2319 = vrot.lane.b32.xlu1 %v7616_v26, %s8294_s0  ;;  %7631 = vpow2.f32 %v6594_v12  ;;  %v2223_v4 = vadd.f32 1.0, %v7628_v3 }
 0x9bf   :  { %7633 = vpow2.f32 %v6581_v16 }
 0x9c0   :  { %7635 = vpow2.f32 %v6582_v63 }
 0x9c1   :  { %7637 = vrcp.f32 %v2220_v60 }
 0x9c2   :  { %2315 = vrot.lane.b32.xlu0 %v7610_v52, %s8294_s0  ;;  %2321 = vrot.lane.b32.xlu1 %v7618_v1, %s8294_s0  ;;  %7639 = vpow2.f32 %v6591_v53 }
 0x9c3   :  { %7641 = vpow2.f32 %v6584_v40 }
 0x9c4   :  { %7643 = vrcp.f32 %v2222_v21 }
 0x9c5   :  { %7645 = vpow2.f32 %v6583_v31 }
 0x9c6   :  { %2335 = vrot.lane.b32.xlu0 %v7614_v46, %s8294_s0  ;;  %2337 = vrot.lane.b32.xlu1 %v7620_v30, %s8294_s0  ;;  %7647 = vpow2.f32 %v6585_v54 }
 0x9c7   :  { %v9472_v41 = vpop.eup %7629  ;;  %7649 = vrcp.f32 %v2223_v4 }
 0x9c8   :  { %v7632_v32 = vpop.eup %7631  ;;  %7651 = vpow2.f32 %v6595_v9 }
 0x9c9   :  { %v7634_v44 = vpop.eup %7633  ;;  %v2224_v61 = vadd.f32 1.0, %v7632_v32  ;;  %7653 = vpow2.f32 %v6586_v7 }
 0x9ca   :  { %v7636_v56 = vpop.eup %7635  ;;  %v2211_v51 = vadd.f32 1.0, %v7634_v44 }
 0x9cb   :  { %v9480_v5 = vpop.eup %7637  ;;  %7655 = vrcp.f32 %v2224_v61  ;;  %v2212_v42 = vadd.f32 1.0, %v7636_v56 }
 0x9cc   :  { %v7640_v23 = vpop.eup %7639  ;;  %7657 = vpow2.f32 %v6587_v22 }
 0x9cd   :  { %v7642_v2 = vpop.eup %7641  ;;  %7659 = vrcp.f32 %v2211_v51  ;;  %v2221_v47 = vadd.f32 1.0, %v7640_v23 }
 0x9ce   :  { %v9485_v52 = vpop.eup %7643  ;;  %7661 = vrcp.f32 %v2212_v42  ;;  %v2214_v30 = vadd.f32 1.0, %v7642_v2 }
 0x9cf   :  { %v7646_v26 = vpop.eup %7645  ;;  %7663 = vpow2.f32 %v6588_v43 }
 0x9d0   :  { %v7648_v1 = vpop.eup %7647  ;;  %7665 = vrcp.f32 %v2221_v47  ;;  %v2213_v34 = vadd.f32 1.0, %v7646_v26 }
 0x9d1   :  { %v9490_v39 = vpop.eup %7649  ;;  %7667 = vrcp.f32 %v2214_v30  ;;  %v2215_v12 = vadd.f32 1.0, %v7648_v1 }
 0x9d2   :  { %v7652_v28 = vpop.eup %7651  ;;  %7669 = vpow2.f32 %v6596_v14 }
 0x9d3   :  { %v7654_v19 = vpop.eup %7653  ;;  %7671 = vrcp.f32 %v2213_v34  ;;  %v2225_v49 = vadd.f32 1.0, %v7652_v28 }
 0x9d4   :  { %v2216_v60 = vadd.f32 1.0, %v7654_v19  ;;  %7673 = vrcp.f32 %v2215_v12 }
 0x9d5   :  { %v9495_v20 = vpop.eup %7655 }
 0x9d6   :  { %v7658_v55 = vpop.eup %7657  ;;  %7675 = vrcp.f32 %v2216_v60  ;;  %v2283_v60 = vmul.f32 %v9472_v41, %v9247_v48  ;;  %v2287_v48 = vmul.f32 %v9490_v39, %v9263_v57 }
 0x9d7   :  { %v9499_v53 = vpop.eup %7659  ;;  %7677 = vrcp.f32 %v2225_v49 }
 0x9d8   :  { %v9501_v3 = vpop.eup %7661 }
 0x9d9   :  { %v7664_v54 = vpop.eup %7663 }
 0x9da   :  { %v9506_v4 = vpop.eup %7665  ;;  %v2218_v56 = vadd.f32 1.0, %v7664_v54 }
 0x9db   :  { %v9509_v9 = vpop.eup %7667 }
 0xa1a   :  { %v2324_v24 = vpop.permute.xlu1 %2323 }
 0xa1b   :  { %v2363_v35 = vmul.f32 %v9472_v41, %v2324_v24 }
 0xa1c   :  { %v2326_v50 = vpop.permute.xlu0 %2325 }
 0xa1d   :  { %2403 = vrot.lane.b32.xlu1 %v2363_v35, %s8295_s4  ;;  %v2364_v37 = vmul.f32 %v9480_v5, %v2326_v50  ;;  %v2217_v35 = vadd.f32 1.0, %v7658_v55  ;;  %v7670_v50 = vpop.eup %7669 }
 0xa1e   :  { %v9514_v22 = vpop.eup %7671 }
 0xa1f   :  { %2405 = vrot.lane.b32.xlu0 %v2364_v37, %s8295_s4  ;;  %7679 = vrcp.f32 %v2217_v35  ;;  %v9517_v23 = vpop.eup %7673 }
 0xa20   :  { %v2330_v17 = vpop.permute.xlu0 %2329  ;;  %v2308_v40 = vpop.permute.xlu1 %2307  ;;  %7681 = vrcp.f32 %v2218_v56 }
 0xa21   :  { %v2366_v46 = vmul.f32 %v9485_v52, %v2330_v17  ;;  %v2355_v21 = vmul.f32 %v9499_v53, %v2308_v40  ;;  %v2226_v17 = vadd.f32 1.0, %v7670_v50  ;;  %v9522_v43 = vpop.eup %7675  ;;  %v2284_v40 = vmul.f32 %v9480_v5, %v9252_v10 }
 0xa22   :  { %v9525_v26 = vpop.eup %7677  ;;  %v2275_v50 = vmul.f32 %v9499_v53, %v9276_v62 }
 0xa23   :  { %2409 = vrot.lane.b32.xlu0 %v2366_v46, %s8295_s4  ;;  %2387 = vrot.lane.b32.xlu1 %v2355_v21, %s8295_s4  ;;  %7683 = vrcp.f32 %v2226_v17  ;;  %v2285_v17 = vmul.f32 %v9506_v4, %v9287_v6 }
 0xa24   :  { %v2332_v59 = vpop.permute.xlu0 %2331  ;;  %v2328_v32 = vpop.permute.xlu1 %2327 }
 0xa25   :  { %v2367_v58 = vmul.f32 %v9490_v39, %v2332_v59  ;;  %v2365_v7 = vmul.f32 %v9506_v4, %v2328_v32 }
 0xa27   :  { %2411 = vrot.lane.b32.xlu0 %v2367_v58, %s8295_s4  ;;  %2407 = vrot.lane.b32.xlu1 %v2365_v7, %s8295_s4 }
 0xa28   :  { %v2334_v16 = vpop.permute.xlu0 %2333  ;;  %v2312_v37 = vpop.permute.xlu1 %2311 }
 0xa29   :  { %v2368_v63 = vmul.f32 %v9495_v20, %v2334_v16  ;;  %v2357_v51 = vmul.f32 %v9514_v22, %v2312_v37  ;;  %v9530_v59 = vpop.eup %7679  ;;  %v2276_v37 = vmul.f32 %v9501_v3, %v9278_v18 }
 0xa2a   :  { %v9535_v28 = vpop.eup %7681 }
 0xa2b   :  { %2413 = vrot.lane.b32.xlu0 %v2368_v63, %s8295_s4  ;;  %2391 = vrot.lane.b32.xlu1 %v2357_v51, %s8295_s4 }
 0xa2c   :  { %v2310_v24 = vpop.permute.xlu0 %2309  ;;  %v2318_v46 = vpop.permute.xlu1 %2317 }
 0xa2d   :  { %v2356_v31 = vmul.f32 %v9501_v3, %v2310_v24  ;;  %v2360_v47 = vmul.f32 %v9522_v43, %v2318_v46  ;;  %v9539_v12 = vpop.eup %7683  ;;  %v2278_v46 = vmul.f32 %v9509_v9, %v9289_v29 }
 0xa2f   :  { %2389 = vrot.lane.b32.xlu0 %v2356_v31, %s8295_s4  ;;  %2397 = vrot.lane.b32.xlu1 %v2360_v47, %s8295_s4  ;;  %v2286_v31 = vmul.f32 %v9485_v52, %v9257_v27 }
 0xa30   :  { %v2314_v44 = vpop.permute.xlu0 %2313  ;;  %v2320_v14 = vpop.permute.xlu1 %2319 }
 0xa31   :  { %v2358_v61 = vmul.f32 %v9509_v9, %v2314_v44  ;;  %v2361_v58 = vmul.f32 %v9530_v59, %v2320_v14  ;;  %v2288_v44 = vmul.f32 %v9495_v20, %v9268_v13  ;;  %v2277_v14 = vmul.f32 %v9514_v22, %v9298_v25 }
 0xa33   :  { %2393 = vrot.lane.b32.xlu0 %v2358_v61, %s8295_s4  ;;  %2399 = vrot.lane.b32.xlu1 %v2361_v58, %s8295_s4  ;;  %v2279_v58 = vmul.f32 %v9517_v23, %v9300_v15 }
 0xa34   :  { %v2316_v2 = vpop.permute.xlu0 %2315  ;;  %v2322_v34 = vpop.permute.xlu1 %2321 }
 0xa35   :  { %v2359_v42 = vmul.f32 %v9517_v23, %v2316_v2  ;;  %v2362_v19 = vmul.f32 %v9535_v28, %v2322_v34 }
 0xa37   :  { %2395 = vrot.lane.b32.xlu0 %v2359_v42, %s8295_s4  ;;  %2401 = vrot.lane.b32.xlu1 %v2362_v19, %s8295_s4 }
 0xa38   :  { %v2336_v1 = vpop.permute.xlu0 %2335  ;;  %v2338_v16 = vpop.permute.xlu1 %2337 }
 0xa39   :  { %v2369_v30 = vmul.f32 %v9525_v26, %v2336_v1  ;;  %v2370_v63 = vmul.f32 %v9539_v12, %v2338_v16 }
 0xa3b   :  { %2415 = vrot.lane.b32.xlu0 %v2369_v30, %s8295_s4  ;;  %2417 = vrot.lane.b32.xlu1 %v2370_v63, %s8295_s4  ;;  %v2280_v63 = vmul.f32 %v9522_v43, %v9309_v36  ;;  %v2281_v36 = vmul.f32 %v9530_v59, %v9319_v33 }
 0xa8f   :  { %v2404_v55 = vpop.permute.xlu1 %2403 }
 0xa90   :  { %v9545_v49 = vadd.f32 %v2404_v55, %v2283_v60  ;;  %v2289_v60 = vmul.f32 %v9525_v26, %v9312_v45 }
 0xa91   :  { %v2406_v21 = vpop.permute.xlu0 %2405 }
 0xa92   :  { %7685 = vtanh.f32 %v9545_v49  ;;  %v9550_v24 = vadd.f32 %v2406_v21, %v2284_v40 }
 0xa94   :  { %7687 = vtanh.f32 %v9550_v24 }
 0xa95   :  { %v2410_v54 = vpop.permute.xlu0 %2409  ;;  %v2388_v57 = vpop.permute.xlu1 %2387 }
 0xa96   :  { %v9555_v32 = vadd.f32 %v2410_v54, %v2286_v31  ;;  %v9574_v2 = vadd.f32 %v2388_v57, %v2275_v50  ;;  %v2290_v50 = vmul.f32 %v9539_v12, %v9333_v0 }
 0xa98   :  { %7689 = vtanh.f32 %v9555_v32 }
 0xa99   :  { %v2412_v10 = vpop.permute.xlu0 %2411  ;;  %v2408_v62 = vpop.permute.xlu1 %2407 }
 0xa9a   :  { %v9561_v7 = vadd.f32 %v2412_v10, %v2287_v48  ;;  %v9585_v47 = vadd.f32 %v2408_v62, %v2285_v17  ;;  %v2282_v10 = vmul.f32 %v9535_v28, %v9326_v38 }
 0xa9c   :  { %v7686_v35 = vpop.eup %7685  ;;  %7691 = vtanh.f32 %v9561_v7 }
 0xa9d   :  { %2499 = vrot.lane.b32.xlu1 %v7686_v35, %s8294_s0  ;;  %v2414_v27 = vpop.permute.xlu0 %2413  ;;  %v2392_v6 = vpop.permute.xlu1 %2391 }
 0xa9e   :  { %v7688_v61 = vpop.eup %7687  ;;  %v9566_v56 = vadd.f32 %v2414_v27, %v2288_v44  ;;  %v9596_v34 = vadd.f32 %v2392_v6, %v2277_v14 }
 0xa9f   :  { %2501 = vrot.lane.b32.xlu0 %v7688_v61, %s8294_s0 }
 0xaa0   :  { %7693 = vtanh.f32 %v9566_v56 }
 0xaa1   :  { %v2390_v42 = vpop.permute.xlu0 %2389  ;;  %7695 = vtanh.f32 %v9574_v2  ;;  %v2398_v25 = vpop.permute.xlu1 %2397 }
 0xaa2   :  { %v7690_v51 = vpop.eup %7689  ;;  %v9576_v13 = vadd.f32 %v2390_v42, %v2276_v37  ;;  %v9607_v55 = vadd.f32 %v2398_v25, %v2280_v63 }
 0xaa3   :  { %2505 = vrot.lane.b32.xlu0 %v7690_v51, %s8294_s0 }
 0xaa4   :  { %7697 = vtanh.f32 %v9576_v13 }
 0xaa5   :  { %v2394_v1 = vpop.permute.xlu0 %2393  ;;  %7699 = vtanh.f32 %v9585_v47  ;;  %v2400_v35 = vpop.permute.xlu1 %2399 }
 0xaa6   :  { %v7692_v18 = vpop.eup %7691  ;;  %v9587_v30 = vadd.f32 %v2394_v1, %v2278_v46  ;;  %v9617_v54 = vadd.f32 %v2400_v35, %v2281_v36 }
 0xaa7   :  { %2507 = vrot.lane.b32.xlu0 %v7692_v18, %s8294_s0 }
 0xaa8   :  { %7701 = vtanh.f32 %v9587_v30 }
 0xaa9   :  { %v2396_v19 = vpop.permute.xlu0 %2395  ;;  %7703 = vtanh.f32 %v9596_v34  ;;  %v2402_v44 = vpop.permute.xlu1 %2401 }
 0xaaa   :  { %v7694_v29 = vpop.eup %7693  ;;  %v9598_v16 = vadd.f32 %v2396_v19, %v2279_v58  ;;  %v9624_v27 = vadd.f32 %v2402_v44, %v2282_v10 }
 0xaab   :  { %2509 = vrot.lane.b32.xlu0 %v7694_v29, %s8294_s0  ;;  %v7696_v15 = vpop.eup %7695 }
 0xaac   :  { %7705 = vtanh.f32 %v9598_v16  ;;  %2483 = vrot.lane.b32.xlu1 %v7696_v15, %s8294_s0 }
 0xaad   :  { %v2416_v40 = vpop.permute.xlu0 %2415  ;;  %7707 = vtanh.f32 %v9607_v55  ;;  %v2418_v57 = vpop.permute.xlu1 %2417 }
 0xaae   :  { %v7698_v21 = vpop.eup %7697  ;;  %v9610_v31 = vadd.f32 %v2416_v40, %v2289_v60  ;;  %v9631_v51 = vadd.f32 %v2418_v57, %v2290_v50 }
 0xaaf   :  { %2485 = vrot.lane.b32.xlu0 %v7698_v21, %s8294_s0  ;;  %v7700_v45 = vpop.eup %7699 }
 0xab0   :  { %7709 = vtanh.f32 %v9610_v31  ;;  %2503 = vrot.lane.b32.xlu1 %v7700_v45, %s8294_s0 }
 0xab1   :  { %7711 = vtanh.f32 %v9617_v54 }
 0xab2   :  { %v7702_v48 = vpop.eup %7701  ;;  %7713 = vtanh.f32 %v9624_v27 }
 0xab3   :  { %2489 = vrot.lane.b32.xlu0 %v7702_v48, %s8294_s0  ;;  %v7704_v33 = vpop.eup %7703  ;;  %7715 = vtanh.f32 %v9631_v51 }
 0xab4   :  { %2487 = vrot.lane.b32.xlu1 %v7704_v33, %s8294_s0 }
 0xab6   :  { %v7706_v61 = vpop.eup %7705 }
 0xab7   :  { %2491 = vrot.lane.b32.xlu0 %v7706_v61, %s8294_s0  ;;  %v7708_v37 = vpop.eup %7707 }
 0xab8   :  { %2493 = vrot.lane.b32.xlu1 %v7708_v37, %s8294_s0 }
 0xaba   :  { %v7710_v38 = vpop.eup %7709 }
 0xabb   :  { %2511 = vrot.lane.b32.xlu0 %v7710_v38, %s8294_s0  ;;  %v7712_v42 = vpop.eup %7711 }
 0xabc   :  { %2495 = vrot.lane.b32.xlu1 %v7712_v42, %s8294_s0  ;;  %v7714_v17 = vpop.eup %7713 }
 0xabd   :  { %v7716_v0 = vpop.eup %7715 }
 0xac0   :  { %2497 = vrot.lane.b32.xlu1 %v7714_v17, %s8294_s0 }
 0xac4   :  { %2513 = vrot.lane.b32.xlu1 %v7716_v0, %s8294_s0 }
 0xb0f   :  { %v2500_v1 = vpop.permute.xlu1 %2499 }
 0xb11   :  { %v2502_v62 = vpop.permute.xlu0 %2501 }
 0xb12   :  { %v2540_v40 = vmul.f32 %v9480_v5, %v2502_v62 }
 0xb14   :  { %v2593_v50 = vrot.slane %v2540_v40, 7 }
 0xb15   :  { %v2506_v46 = vpop.permute.xlu0 %2505 }
 0xb19   :  { %v2508_v18 = vpop.permute.xlu0 %2507 }
 0xb1d   :  { %v2510_v14 = vpop.permute.xlu0 %2509 }
 0xb1e   :  { %v2484_v6 = vpop.permute.xlu1 %2483  ;;  %v2544_v0 = vmul.f32 %v9495_v20, %v2510_v14 }
 0xb1f   :  { %v2531_v21 = vmul.f32 %v9499_v53, %v2484_v6  ;;  %v2539_v53 = vmul.f32 %v9472_v41, %v2500_v1 }
 0xb21   :  { %v2486_v58 = vpop.permute.xlu0 %2485  ;;  %v2594_v17 = vsel %vm848_vm1, %v2593_v50, %v2539_v53  ;;  %v2558_v50 = vld [vmem:[#allocation2 + $0x5c] sm:$0x1]  ;;  %v2559_v53 = vld [vmem:[#allocation2 + $0x64] sm:$0x1] }
 0xb22   :  { %v2532_v29 = vmul.f32 %v9501_v3, %v2486_v58  ;;  %v2504_v19 = vpop.permute.xlu1 %2503 }
 0xb23   :  { %v2541_v45 = vmul.f32 %v9506_v4, %v2504_v19 }
 0xb24   :  { %v2579_v25 = vrot.slane %v2532_v29, 7  ;;  %v2601_v29 = vrot.slane %v2544_v0, 3 }
 0xb25   :  { %v2490_v63 = vpop.permute.xlu0 %2489  ;;  %v2595_v57 = vrot.slane %v2541_v45, 6  ;;  %v2555_v45 = vld [vmem:[#allocation2 + $0x44] sm:$0x1] }
 0xb26   :  { %v2534_v60 = vmul.f32 %v9509_v9, %v2490_v63  ;;  %v2488_v15 = vpop.permute.xlu1 %2487  ;;  %v2580_v10 = vsel %vm848_vm1, %v2579_v25, %v2531_v21 }
 0xb27   :  { %v2533_v36 = vmul.f32 %v9514_v22, %v2488_v15  ;;  %v2542_v22 = vmul.f32 %v9485_v52, %v2506_v46  ;;  %v2596_v6 = vsel %vm851_vm2, %v2595_v57, %v2594_v17  ;;  %v2547_v17 = vld [vmem:[#allocation2 + $0x4] sm:$0x1] }
 0xb28   :  { %v2583_v3 = vrot.slane %v2534_v60, 5 }
 0xb29   :  { %v2492_v35 = vpop.permute.xlu0 %2491  ;;  %v2581_v44 = vrot.slane %v2533_v36, 6  ;;  %v2597_v52 = vrot.slane %v2542_v22, 5 }
 0xb2a   :  { %v2535_v48 = vmul.f32 %v9517_v23, %v2492_v35  ;;  %v2494_v33 = vpop.permute.xlu1 %2493  ;;  %v2543_v23 = vmul.f32 %v9490_v39, %v2508_v18 }
 0xb2b   :  { %v2536_v9 = vmul.f32 %v9522_v43, %v2494_v33  ;;  %v2582_v5 = vsel %vm851_vm2, %v2581_v44, %v2580_v10  ;;  %v2598_v18 = vsel %vm854_vm3, %v2597_v52, %v2596_v6  ;;  %v2556_v44 = vld [vmem:[#allocation2 + $0x4c] sm:$0x1] }
 0xb2c   :  { %v2585_v61 = vrot.slane %v2535_v48, 4  ;;  %v2584_v4 = vsel %vm854_vm3, %v2583_v3, %v2582_v5  ;;  %v2599_v1 = vrot.slane %v2543_v23, 4 }
 0xb2d   :  { %v2512_v37 = vpop.permute.xlu0 %2511  ;;  %v2587_v43 = vrot.slane %v2536_v9, 3 }
 0xb2e   :  { %v2496_v38 = vpop.permute.xlu1 %2495  ;;  %v2586_v42 = vsel %vm857_vm4, %v2585_v61, %v2584_v4  ;;  %v2545_v41 = vmul.f32 %v9525_v26, %v2512_v37  ;;  %v2560_v37 = vld [vmem:[#allocation2 + $0x6c] sm:$0x1] }
 0xb2f   :  { %v2537_v62 = vmul.f32 %v9530_v59, %v2496_v38  ;;  %v2588_v46 = vsel %vm860_vm5, %v2587_v43, %v2586_v42  ;;  %v2600_v59 = vsel %vm857_vm4, %v2599_v1, %v2598_v18  ;;  %v2548_v43 = vld [vmem:[#allocation2 + $0xc] sm:$0x1] }
 0xb30   :  { %v2603_v63 = vrot.slane %v2545_v41, 2  ;;  %v2602_v26 = vsel %vm860_vm5, %v2601_v29, %v2600_v59 }
 0xb31   :  { %v2589_v58 = vrot.slane %v2537_v62, 2 }
 0xb32   :  { %v2498_v39 = vpop.permute.xlu1 %2497  ;;  %v2604_v40 = vsel %vm863_vm6, %v2603_v63, %v2602_v26  ;;  %v2549_v63 = vld [vmem:[#allocation2 + $0x14] sm:$0x1] }
 0xb33   :  { %v2538_v19 = vmul.f32 %v9535_v28, %v2498_v39  ;;  %v2590_v20 = vsel %vm863_vm6, %v2589_v58, %v2588_v46  ;;  %v2557_v46 = vld [vmem:[#allocation2 + $0x54] sm:$0x1]  ;;  %v2550_v58 = vld [vmem:[#allocation2 + $0x1c] sm:$0x1] }
 0xb35   :  { %v2591_v14 = vrot.slane %v2538_v19, 1 }
 0xb36   :  { %v2514_v25 = vpop.permute.xlu1 %2513 }
 0xb37   :  { %v2546_v60 = vmul.f32 %v9539_v12, %v2514_v25  ;;  %v2592_v15 = vsel %vm866_vm7, %v2591_v14, %v2590_v20  ;;  %v2551_v20 = vld [vmem:[#allocation2 + $0x24] sm:$0x1] }
 0xb38   :  { %2607 = vrot.lane.b32.xlu0 %v2592_v15, %s8295_s4  ;;  %v2552_v15 = vld [vmem:[#allocation2 + $0x2c] sm:$0x1] }
 0xb39   :  { %v2605_v21 = vrot.slane %v2546_v60, 1 }
 0xb3b   :  { %v2606_v28 = vsel %vm866_vm7, %v2605_v21, %v2604_v40  ;;  %v2561_v40 = vld [vmem:[#allocation2 + $0x74] sm:$0x1] }
 0xb3c   :  { %2609 = vrot.lane.b32.xlu1 %v2606_v28, %s8295_s4 }
 0xbaa   :  { %v2608_v36 = vpop.permute.xlu0 %2607 }
 0xbab   :  { %6904 = vmatprep.mubr.msk.f32.mxu0 %vm304_vm8, %v2608_v36 }
 0xbae   :  { %v2610_v35 = vpop.permute.xlu1 %2609 }
 0xbaf   :  { %6905 = vmatmul.mubr.msk.f32.vlgmr.msra.gmra.mrb[16].mxu0 %vm304_vm8, %v2610_v35 }
 0xbb0   :  { %7082 = vmatpush3.bf16.msra.mxu0 %v8396_v8 }
 0xbb1   :  { %7084 = vmatprep.subr.bf16.mxu0 %v8404_v11 }
 0xbb4   :  { %7086 = vmatpush3.bf16.msra.mxu0 %v8404_v11 }
 0xc82   :  { %v9676_v12 = vpop.f32.mrb[16].mxu0 }
 0xc83   :  { %v9678_v48 = vpop.f32.mrb[17].mxu0  ;;  %v9681_v10 = vadd.f32 %v9676_v12, %v2555_v45  ;;  %v2699_v3 = vrot.slane %v9676_v12, 1  ;;  %v2701_v33 = vrot.slane %v9676_v12, 3  ;;  %v2702_v9 = vrot.slane %v9676_v12, 4 }
 0xc84   :  { %v2703_v22 = vrot.slane %v9676_v12, 5  ;;  %v2692_v38 = vrot.slane %v9678_v48, 1  ;;  %v2700_v0 = vrot.slane %v9676_v12, 2  ;;  %v9705_v62 = vadd.f32 %v9678_v48, %v2547_v17 }
 0xc85   :  { %7717 = vtanh.f32 %v9681_v10  ;;  %v9686_v61 = vadd.f32 %v2699_v3, %v2556_v44  ;;  %v9689_v57 = vadd.f32 %v2701_v33, %v2558_v50  ;;  %v9694_v4 = vadd.f32 %v2702_v9, %v2559_v53  ;;  %v2553_v3 = vld [vmem:[#allocation2 + $0x34] sm:$0x1] }
 0xc86   :  { %v9697_v23 = vadd.f32 %v2703_v22, %v2560_v37  ;;  %v2694_v6 = vrot.slane %v9678_v48, 3  ;;  %v9708_v41 = vadd.f32 %v2692_v38, %v2548_v43  ;;  %v9711_v1 = vadd.f32 %v2700_v0, %v2557_v46  ;;  %v2562_v38 = vld [vmem:[#allocation2 + $0x7c] sm:$0x1] }
 0xc87   :  { %7719 = vtanh.f32 %v9686_v61  ;;  %v2693_v39 = vrot.slane %v9678_v48, 2  ;;  %v2695_v18 = vrot.slane %v9678_v48, 4  ;;  %v2696_v14 = vrot.slane %v9678_v48, 5 }
 0xc88   :  { %7721 = vtanh.f32 %v9689_v57  ;;  %v9716_v29 = vadd.f32 %v2694_v6, %v2550_v58  ;;  %v2704_v25 = vrot.slane %v9676_v12, 6  ;;  %v2697_v21 = vrot.slane %v9678_v48, 6 }
 0xc89   :  { %7723 = vtanh.f32 %v9694_v4  ;;  %v9722_v59 = vadd.f32 %v2693_v39, %v2549_v63  ;;  %v9725_v26 = vadd.f32 %v2695_v18, %v2551_v20  ;;  %v9730_v28 = vadd.f32 %v2696_v14, %v2552_v15 }
 0xc8a   :  { %7725 = vtanh.f32 %v9697_v23  ;;  %v9733_v36 = vadd.f32 %v2704_v25, %v2561_v40  ;;  %v2698_v44 = vrot.slane %v9678_v48, 7  ;;  %v9738_v33 = vadd.f32 %v2697_v21, %v2553_v3 }
 0xc8b   :  { %7727 = vtanh.f32 %v9705_v62  ;;  %v2705_v53 = vrot.slane %v9676_v12, 7  ;;  %v6608_v46 = vmul.f32 -1.442695, %v9686_v61  ;;  %v6610_v58 = vmul.f32 -1.442695, %v9689_v57 }
 0xc8c   :  { %7729 = vtanh.f32 %v9708_v41  ;;  %v6611_v18 = vmul.f32 -1.442695, %v9694_v4  ;;  %v6612_v63 = vmul.f32 -1.442695, %v9697_v23  ;;  %v6599_v14 = vmul.f32 -1.442695, %v9705_v62 }
 0xc8d   :  { %7731 = vtanh.f32 %v9711_v1  ;;  %v6602_v57 = vmul.f32 -1.442695, %v9716_v29  ;;  %v6601_v62 = vmul.f32 -1.442695, %v9722_v59 }
 0xc8e   :  { %7733 = vtanh.f32 %v9716_v29  ;;  %v6613_v29 = vmul.f32 -1.442695, %v9733_v36 }
 0xc8f   :  { %v7718_v5 = vpop.eup %7717  ;;  %7735 = vtanh.f32 %v9722_v59 }
 0xc90   :  { %2898 = vrot.lane.b32.xlu1 %v7718_v5, %s8294_s0  ;;  %7737 = vtanh.f32 %v9725_v26  ;;  %v2554_v5 = vld [vmem:[#allocation2 + $0x3c] sm:$0x1] }
 0xc91   :  { %v7720_v42 = vpop.eup %7719  ;;  %7739 = vtanh.f32 %v9730_v28  ;;  %v9745_v22 = vadd.f32 %v2698_v44, %v2554_v5 }
 0xc92   :  { %2900 = vrot.lane.b32.xlu0 %v7720_v42, %s8294_s0  ;;  %v7722_v52 = vpop.eup %7721  ;;  %7741 = vtanh.f32 %v9733_v36  ;;  %v9750_v42 = vadd.f32 %v2705_v53, %v2562_v38 }
 0xc93   :  { %v7724_v19 = vpop.eup %7723  ;;  %7743 = vtanh.f32 %v9738_v33 }
 0xc94   :  { %v7726_v60 = vpop.eup %7725  ;;  %7745 = vtanh.f32 %v9745_v22 }
 0xc95   :  { %v7728_v35 = vpop.eup %7727  ;;  %7747 = vtanh.f32 %v9750_v42 }
 0xc96   :  { %2904 = vrot.lane.b32.xlu0 %v7722_v52, %s8294_s0  ;;  %v7730_v45 = vpop.eup %7729  ;;  %2882 = vrot.lane.b32.xlu1 %v7728_v35, %s8294_s0  ;;  %v6607_v52 = vmul.f32 -1.442695, %v9681_v10  ;;  %v6600_v10 = vmul.f32 -1.442695, %v9708_v41  ;;  %v6603_v41 = vmul.f32 -1.442695, %v9725_v26 }
 0xc97   :  { %v7732_v50 = vpop.eup %7731  ;;  %v6605_v26 = vmul.f32 -1.442695, %v9738_v33 }
 0xc98   :  { %v7734_v9 = vpop.eup %7733  ;;  %7749 = vpow2.f32 %v6607_v52 }
 0xc99   :  { %v7736_v48 = vpop.eup %7735  ;;  %7751 = vpow2.f32 %v6608_v46 }
 0xc9a   :  { %2906 = vrot.lane.b32.xlu0 %v7724_v19, %s8294_s0  ;;  %2902 = vrot.lane.b32.xlu1 %v7732_v50, %s8294_s0  ;;  %v7738_v37 = vpop.eup %7737  ;;  %7753 = vpow2.f32 %v6610_v58  ;;  %v6614_v58 = vmul.f32 -1.442695, %v9750_v42 }
 0xc9b   :  { %v7740_v17 = vpop.eup %7739  ;;  %7755 = vpow2.f32 %v6611_v18 }
 0xc9c   :  { %v7742_v0 = vpop.eup %7741 }
 0xc9d   :  { %v7744_v12 = vpop.eup %7743 }
 0xc9e   :  { %2908 = vrot.lane.b32.xlu0 %v7726_v60, %s8294_s0  ;;  %2886 = vrot.lane.b32.xlu1 %v7736_v48, %s8294_s0  ;;  %v7746_v43 = vpop.eup %7745  ;;  %v6609_v60 = vmul.f32 -1.442695, %v9711_v1 }
 0xc9f   :  { %v7748_v6 = vpop.eup %7747 }
 0xca2   :  { %2884 = vrot.lane.b32.xlu0 %v7730_v45, %s8294_s0  ;;  %2892 = vrot.lane.b32.xlu1 %v7740_v17, %s8294_s0  ;;  %v7750_v39 = vpop.eup %7749  ;;  %v6604_v45 = vmul.f32 -1.442695, %v9730_v28  ;;  %v6606_v17 = vmul.f32 -1.442695, %v9745_v22 }
 0xca3   :  { %v2794_v19 = vadd.f32 1.0, %v7750_v39  ;;  %v7752_v20 = vpop.eup %7751 }
 0xca4   :  { %v2795_v25 = vadd.f32 1.0, %v7752_v20  ;;  %v7754_v61 = vpop.eup %7753 }
 0xca5   :  { %7757 = vrcp.f32 %v2794_v19  ;;  %v7756_v4 = vpop.eup %7755  ;;  %v2797_v15 = vadd.f32 1.0, %v7754_v61 }
 0xca6   :  { %2888 = vrot.lane.b32.xlu0 %v7734_v9, %s8294_s0  ;;  %2894 = vrot.lane.b32.xlu1 %v7744_v12, %s8294_s0  ;;  %7759 = vpow2.f32 %v6612_v63  ;;  %v2798_v1 = vadd.f32 1.0, %v7756_v4 }
 0xca7   :  { %7761 = vpow2.f32 %v6599_v14 }
 0xca8   :  { %7763 = vpow2.f32 %v6600_v10 }
 0xca9   :  { %7765 = vrcp.f32 %v2795_v25 }
 0xcaa   :  { %2890 = vrot.lane.b32.xlu0 %v7738_v37, %s8294_s0  ;;  %2896 = vrot.lane.b32.xlu1 %v7746_v43, %s8294_s0  ;;  %7767 = vpow2.f32 %v6609_v60 }
 0xcab   :  { %7769 = vpow2.f32 %v6602_v57 }
 0xcac   :  { %7771 = vrcp.f32 %v2797_v15 }
 0xcad   :  { %7773 = vpow2.f32 %v6601_v62 }
 0xcae   :  { %2910 = vrot.lane.b32.xlu0 %v7742_v0, %s8294_s0  ;;  %2912 = vrot.lane.b32.xlu1 %v7748_v6, %s8294_s0  ;;  %7775 = vpow2.f32 %v6603_v41 }
 0xcaf   :  { %v9769_v40 = vpop.eup %7757  ;;  %7777 = vrcp.f32 %v2798_v1 }
 0xcb0   :  { %v7760_v35 = vpop.eup %7759  ;;  %7779 = vpow2.f32 %v6613_v29 }
 0xcb1   :  { %v7762_v3 = vpop.eup %7761  ;;  %v2799_v44 = vadd.f32 1.0, %v7760_v35  ;;  %7781 = vpow2.f32 %v6604_v45 }
 0xcb2   :  { %v7764_v59 = vpop.eup %7763  ;;  %v2786_v48 = vadd.f32 1.0, %v7762_v3 }
 0xcb3   :  { %v9777_v50 = vpop.eup %7765  ;;  %7783 = vrcp.f32 %v2799_v44  ;;  %v2787_v28 = vadd.f32 1.0, %v7764_v59 }
 0xcb4   :  { %v7768_v53 = vpop.eup %7767  ;;  %7785 = vpow2.f32 %v6605_v26 }
 0xcb5   :  { %v7770_v36 = vpop.eup %7769  ;;  %7787 = vrcp.f32 %v2786_v48  ;;  %v2796_v33 = vadd.f32 1.0, %v7768_v53 }
 0xcb6   :  { %v9782_v37 = vpop.eup %7771  ;;  %7789 = vrcp.f32 %v2787_v28  ;;  %v2789_v6 = vadd.f32 1.0, %v7770_v36 }
 0xcb7   :  { %v7774_v12 = vpop.eup %7773  ;;  %7791 = vpow2.f32 %v6606_v17 }
 0xcb8   :  { %v7776_v43 = vpop.eup %7775  ;;  %7793 = vrcp.f32 %v2796_v33  ;;  %v2788_v22 = vadd.f32 1.0, %v7774_v12 }
 0xcb9   :  { %v9787_v52 = vpop.eup %7777  ;;  %7795 = vrcp.f32 %v2789_v6  ;;  %v2790_v63 = vadd.f32 1.0, %v7776_v43 }
 0xcba   :  { %v7780_v18 = vpop.eup %7779  ;;  %7797 = vpow2.f32 %v6614_v58 }
 0xcbb   :  { %v7782_v19 = vpop.eup %7781  ;;  %7799 = vrcp.f32 %v2788_v22  ;;  %v2800_v61 = vadd.f32 1.0, %v7780_v18 }
 0xcbc   :  { %v2791_v25 = vadd.f32 1.0, %v7782_v19  ;;  %7801 = vrcp.f32 %v2790_v63 }
 0xcbd   :  { %v9792_v20 = vpop.eup %7783 }
 0xcbe   :  { %v7786_v42 = vpop.eup %7785  ;;  %7803 = vrcp.f32 %v2791_v25  ;;  %v2858_v25 = vmul.f32 %v9769_v40, %v9545_v49  ;;  %v2862_v49 = vmul.f32 %v9787_v52, %v9561_v7 }
 0xcbf   :  { %v9796_v60 = vpop.eup %7787  ;;  %7805 = vrcp.f32 %v2800_v61 }
 0xcc0   :  { %v9798_v4 = vpop.eup %7789 }
 0xcc1   :  { %v7792_v41 = vpop.eup %7791 }
 0xcc2   :  { %v9803_v1 = vpop.eup %7793  ;;  %v2793_v59 = vadd.f32 1.0, %v7792_v41 }
 0xcc3   :  { %v9806_v29 = vpop.eup %7795 }
 0xd02   :  { %v2899_v23 = vpop.permute.xlu1 %2898 }
 0xd03   :  { %v2938_v21 = vmul.f32 %v9769_v40, %v2899_v23 }
 0xd04   :  { %v2901_v9 = vpop.permute.xlu0 %2900 }
 0xd05   :  { %2978 = vrot.lane.b32.xlu1 %v2938_v21, %s8295_s4  ;;  %v2939_v5 = vmul.f32 %v9777_v50, %v2901_v9  ;;  %v2792_v21 = vadd.f32 1.0, %v7786_v42  ;;  %v7798_v9 = vpop.eup %7797 }
 0xd06   :  { %v9811_v26 = vpop.eup %7799 }
 0xd07   :  { %2980 = vrot.lane.b32.xlu0 %v2939_v5, %s8295_s4  ;;  %7807 = vrcp.f32 %v2792_v21  ;;  %v9814_v53 = vpop.eup %7801 }
 0xd08   :  { %v2905_v38 = vpop.permute.xlu0 %2904  ;;  %v2883_v57 = vpop.permute.xlu1 %2882  ;;  %7809 = vrcp.f32 %v2793_v59 }
 0xd09   :  { %v2941_v0 = vmul.f32 %v9782_v37, %v2905_v38  ;;  %v2930_v15 = vmul.f32 %v9796_v60, %v2883_v57  ;;  %v2801_v38 = vadd.f32 1.0, %v7798_v9  ;;  %v9819_v17 = vpop.eup %7803  ;;  %v2859_v57 = vmul.f32 %v9777_v50, %v9550_v24 }
 0xd0a   :  { %v9822_v12 = vpop.eup %7805  ;;  %v2850_v9 = vmul.f32 %v9796_v60, %v9574_v2 }
 0xd0b   :  { %2984 = vrot.lane.b32.xlu0 %v2941_v0, %s8295_s4  ;;  %2962 = vrot.lane.b32.xlu1 %v2930_v15, %s8295_s4  ;;  %7811 = vrcp.f32 %v2801_v38  ;;  %v2860_v38 = vmul.f32 %v9803_v1, %v9585_v47 }
 0xd0c   :  { %v2907_v46 = vpop.permute.xlu0 %2906  ;;  %v2903_v35 = vpop.permute.xlu1 %2902 }
 0xd0d   :  { %v2942_v39 = vmul.f32 %v9787_v52, %v2907_v46  ;;  %v2940_v45 = vmul.f32 %v9803_v1, %v2903_v35 }
 0xd0f   :  { %2986 = vrot.lane.b32.xlu0 %v2942_v39, %s8295_s4  ;;  %2982 = vrot.lane.b32.xlu1 %v2940_v45, %s8295_s4 }
 0xd10   :  { %v2909_v14 = vpop.permute.xlu0 %2908  ;;  %v2887_v5 = vpop.permute.xlu1 %2886 }
 0xd11   :  { %v2943_v10 = vmul.f32 %v9792_v20, %v2909_v14  ;;  %v2932_v48 = vmul.f32 %v9811_v26, %v2887_v5  ;;  %v9827_v46 = vpop.eup %7807  ;;  %v2851_v5 = vmul.f32 %v9798_v4, %v9576_v13 }
 0xd12   :  { %v9832_v18 = vpop.eup %7809 }
 0xd13   :  { %2988 = vrot.lane.b32.xlu0 %v2943_v10, %s8295_s4  ;;  %2966 = vrot.lane.b32.xlu1 %v2932_v48, %s8295_s4 }
 0xd14   :  { %v2885_v23 = vpop.permute.xlu0 %2884  ;;  %v2893_v0 = vpop.permute.xlu1 %2892 }
 0xd15   :  { %v2931_v62 = vmul.f32 %v9798_v4, %v2885_v23  ;;  %v2935_v33 = vmul.f32 %v9819_v17, %v2893_v0  ;;  %v9836_v63 = vpop.eup %7811  ;;  %v2853_v0 = vmul.f32 %v9806_v29, %v9587_v30 }
 0xd17   :  { %2964 = vrot.lane.b32.xlu0 %v2931_v62, %s8295_s4  ;;  %2972 = vrot.lane.b32.xlu1 %v2935_v33, %s8295_s4  ;;  %v2861_v62 = vmul.f32 %v9782_v37, %v9555_v32 }
 0xd18   :  { %v2889_v3 = vpop.permute.xlu0 %2888  ;;  %v2895_v58 = vpop.permute.xlu1 %2894 }
 0xd19   :  { %v2933_v44 = vmul.f32 %v9806_v29, %v2889_v3  ;;  %v2936_v39 = vmul.f32 %v9827_v46, %v2895_v58  ;;  %v2863_v3 = vmul.f32 %v9792_v20, %v9566_v56  ;;  %v2852_v58 = vmul.f32 %v9811_v26, %v9596_v34 }
 0xd1b   :  { %2968 = vrot.lane.b32.xlu0 %v2933_v44, %s8295_s4  ;;  %2974 = vrot.lane.b32.xlu1 %v2936_v39, %s8295_s4  ;;  %v2854_v39 = vmul.f32 %v9814_v53, %v9598_v16 }
 0xd1c   :  { %v2891_v36 = vpop.permute.xlu0 %2890  ;;  %v2897_v22 = vpop.permute.xlu1 %2896 }
 0xd1d   :  { %v2934_v28 = vmul.f32 %v9814_v53, %v2891_v36  ;;  %v2937_v19 = vmul.f32 %v9832_v18, %v2897_v22 }
 0xd1f   :  { %2970 = vrot.lane.b32.xlu0 %v2934_v28, %s8295_s4  ;;  %2976 = vrot.lane.b32.xlu1 %v2937_v19, %s8295_s4 }
 0xd20   :  { %v2911_v43 = vpop.permute.xlu0 %2910  ;;  %v2913_v14 = vpop.permute.xlu1 %2912 }
 0xd21   :  { %v2944_v6 = vmul.f32 %v9822_v12, %v2911_v43  ;;  %v2945_v10 = vmul.f32 %v9836_v63, %v2913_v14 }
 0xd23   :  { %2990 = vrot.lane.b32.xlu0 %v2944_v6, %s8295_s4  ;;  %2992 = vrot.lane.b32.xlu1 %v2945_v10, %s8295_s4  ;;  %v2855_v10 = vmul.f32 %v9819_v17, %v9607_v55  ;;  %v2856_v55 = vmul.f32 %v9827_v46, %v9617_v54 }
 0xd77   :  { %v2979_v42 = vpop.permute.xlu1 %2978 }
 0xd78   :  { %v9842_v61 = vadd.f32 %v2979_v42, %v2858_v25  ;;  %v2864_v25 = vmul.f32 %v9822_v12, %v9610_v31 }
 0xd79   :  { %v2981_v15 = vpop.permute.xlu0 %2980 }
 0xd7a   :  { %7813 = vtanh.f32 %v9842_v61  ;;  %v9847_v23 = vadd.f32 %v2981_v15, %v2859_v57 }
 0xd7c   :  { %7815 = vtanh.f32 %v9847_v23 }
 0xd7d   :  { %v2985_v41 = vpop.permute.xlu0 %2984  ;;  %v2963_v7 = vpop.permute.xlu1 %2962 }
 0xd7e   :  { %v9852_v35 = vadd.f32 %v2985_v41, %v2861_v62  ;;  %v9871_v36 = vadd.f32 %v2963_v7, %v2850_v9  ;;  %v2865_v9 = vmul.f32 %v9836_v63, %v9631_v51 }
 0xd80   :  { %7817 = vtanh.f32 %v9852_v35 }
 0xd81   :  { %v2987_v24 = vpop.permute.xlu0 %2986  ;;  %v2983_v2 = vpop.permute.xlu1 %2982 }
 0xd82   :  { %v9858_v45 = vadd.f32 %v2987_v24, %v2862_v49  ;;  %v9882_v33 = vadd.f32 %v2983_v2, %v2860_v38  ;;  %v2857_v24 = vmul.f32 %v9832_v18, %v9624_v27 }
 0xd84   :  { %v7814_v21 = vpop.eup %7813  ;;  %7819 = vtanh.f32 %v9858_v45 }
 0xd85   :  { %3074 = vrot.lane.b32.xlu1 %v7814_v21, %s8294_s0  ;;  %v2989_v32 = vpop.permute.xlu0 %2988  ;;  %v2967_v47 = vpop.permute.xlu1 %2966 }
 0xd86   :  { %v7816_v44 = vpop.eup %7815  ;;  %v9863_v59 = vadd.f32 %v2989_v32, %v2863_v3  ;;  %v9893_v22 = vadd.f32 %v2967_v47, %v2852_v58 }
 0xd87   :  { %3076 = vrot.lane.b32.xlu0 %v7816_v44, %s8294_s0 }
 0xd88   :  { %7821 = vtanh.f32 %v9863_v59 }
 0xd89   :  { %v2965_v28 = vpop.permute.xlu0 %2964  ;;  %7823 = vtanh.f32 %v9871_v36  ;;  %v2973_v34 = vpop.permute.xlu1 %2972 }
 0xd8a   :  { %v7818_v48 = vpop.eup %7817  ;;  %v9873_v56 = vadd.f32 %v2965_v28, %v2851_v5  ;;  %v9904_v42 = vadd.f32 %v2973_v34, %v2855_v10 }
 0xd8b   :  { %3080 = vrot.lane.b32.xlu0 %v7818_v48, %s8294_s0 }
 0xd8c   :  { %7825 = vtanh.f32 %v9873_v56 }
 0xd8d   :  { %v2969_v43 = vpop.permute.xlu0 %2968  ;;  %7827 = vtanh.f32 %v9882_v33  ;;  %v2975_v21 = vpop.permute.xlu1 %2974 }
 0xd8e   :  { %v7820_v13 = vpop.eup %7819  ;;  %v9884_v6 = vadd.f32 %v2969_v43, %v2853_v0  ;;  %v9914_v41 = vadd.f32 %v2975_v21, %v2856_v55 }
 0xd8f   :  { %3082 = vrot.lane.b32.xlu0 %v7820_v13, %s8294_s0 }
 0xd90   :  { %7829 = vtanh.f32 %v9884_v6 }
 0xd91   :  { %v2971_v19 = vpop.permute.xlu0 %2970  ;;  %7831 = vtanh.f32 %v9893_v22  ;;  %v2977_v3 = vpop.permute.xlu1 %2976 }
 0xd92   :  { %v7822_v30 = vpop.eup %7821  ;;  %v9895_v14 = vadd.f32 %v2971_v19, %v2854_v39  ;;  %v9921_v32 = vadd.f32 %v2977_v3, %v2857_v24 }
 0xd93   :  { %3084 = vrot.lane.b32.xlu0 %v7822_v30, %s8294_s0  ;;  %v7824_v16 = vpop.eup %7823 }
 0xd94   :  { %7833 = vtanh.f32 %v9895_v14  ;;  %3058 = vrot.lane.b32.xlu1 %v7824_v16, %s8294_s0 }
 0xd95   :  { %v2991_v57 = vpop.permute.xlu0 %2990  ;;  %7835 = vtanh.f32 %v9904_v42  ;;  %v2993_v7 = vpop.permute.xlu1 %2992 }
 0xd96   :  { %v7826_v15 = vpop.eup %7825  ;;  %v9907_v62 = vadd.f32 %v2991_v57, %v2864_v25  ;;  %v9928_v48 = vadd.f32 %v2993_v7, %v2865_v9 }
 0xd97   :  { %3060 = vrot.lane.b32.xlu0 %v7826_v15, %s8294_s0  ;;  %v7828_v31 = vpop.eup %7827 }
 0xd98   :  { %7837 = vtanh.f32 %v9907_v62  ;;  %3078 = vrot.lane.b32.xlu1 %v7828_v31, %s8294_s0 }
 0xd99   :  { %7839 = vtanh.f32 %v9914_v41 }
 0xd9a   :  { %v7830_v49 = vpop.eup %7829  ;;  %7841 = vtanh.f32 %v9921_v32 }
 0xd9b   :  { %3064 = vrot.lane.b32.xlu0 %v7830_v49, %s8294_s0  ;;  %v7832_v54 = vpop.eup %7831  ;;  %7843 = vtanh.f32 %v9928_v48 }
 0xd9c   :  { %3062 = vrot.lane.b32.xlu1 %v7832_v54, %s8294_s0 }
 0xd9e   :  { %v7834_v44 = vpop.eup %7833 }
 0xd9f   :  { %3066 = vrot.lane.b32.xlu0 %v7834_v44, %s8294_s0  ;;  %v7836_v5 = vpop.eup %7835 }
 0xda0   :  { %3068 = vrot.lane.b32.xlu1 %v7836_v5, %s8294_s0 }
 0xda2   :  { %v7838_v27 = vpop.eup %7837 }
 0xda3   :  { %3086 = vrot.lane.b32.xlu0 %v7838_v27, %s8294_s0  ;;  %v7840_v28 = vpop.eup %7839 }
 0xda4   :  { %3070 = vrot.lane.b32.xlu1 %v7840_v28, %s8294_s0  ;;  %v7842_v38 = vpop.eup %7841 }
 0xda5   :  { %v7844_v51 = vpop.eup %7843 }
 0xda8   :  { %3072 = vrot.lane.b32.xlu1 %v7842_v38, %s8294_s0 }
 0xdac   :  { %3088 = vrot.lane.b32.xlu1 %v7844_v51, %s8294_s0 }
 0xdf7   :  { %v3075_v43 = vpop.permute.xlu1 %3074 }
 0xdf9   :  { %v3077_v2 = vpop.permute.xlu0 %3076 }
 0xdfa   :  { %v3115_v57 = vmul.f32 %v9777_v50, %v3077_v2 }
 0xdfc   :  { %v3168_v9 = vrot.slane %v3115_v57, 7 }
 0xdfd   :  { %v3081_v0 = vpop.permute.xlu0 %3080 }
 0xe01   :  { %v3083_v13 = vpop.permute.xlu0 %3082 }
 0xe05   :  { %v3085_v58 = vpop.permute.xlu0 %3084 }
 0xe06   :  { %v3059_v47 = vpop.permute.xlu1 %3058  ;;  %v3119_v51 = vmul.f32 %v9792_v20, %v3085_v58 }
 0xe07   :  { %v3106_v15 = vmul.f32 %v9796_v60, %v3059_v47  ;;  %v3114_v60 = vmul.f32 %v9769_v40, %v3075_v43 }
 0xe09   :  { %v3061_v39 = vpop.permute.xlu0 %3060  ;;  %v3169_v38 = vsel %vm848_vm1, %v3168_v9, %v3114_v60 }
 0xe0a   :  { %v3107_v30 = vmul.f32 %v9798_v4, %v3061_v39  ;;  %v3079_v19 = vpop.permute.xlu1 %3078 }
 0xe0b   :  { %v3116_v31 = vmul.f32 %v9803_v1, %v3079_v19 }
 0xe0c   :  { %v3154_v34 = vrot.slane %v3107_v30, 7  ;;  %v3176_v30 = vrot.slane %v3119_v51, 3 }
 0xe0d   :  { %v3065_v10 = vpop.permute.xlu0 %3064  ;;  %v3170_v7 = vrot.slane %v3116_v31, 6  ;;  %v3130_v31 = vld [vmem:[#allocation2 + $0x45] sm:$0x1] }
 0xe0e   :  { %v3109_v25 = vmul.f32 %v9806_v29, %v3065_v10  ;;  %v3063_v16 = vpop.permute.xlu1 %3062  ;;  %v3155_v24 = vsel %vm848_vm1, %v3154_v34, %v3106_v15 }
 0xe0f   :  { %v3108_v55 = vmul.f32 %v9811_v26, %v3063_v16  ;;  %v3117_v26 = vmul.f32 %v9782_v37, %v3081_v0  ;;  %v3171_v47 = vsel %vm851_vm2, %v3170_v7, %v3169_v38  ;;  %v3134_v7 = vld [vmem:[#allocation2 + $0x65] sm:$0x1]  ;;  %v3123_v38 = vld [vmem:[#allocation2 + $0xd] sm:$0x1] }
 0xe10   :  { %v3158_v4 = vrot.slane %v3109_v25, 5 }
 0xe11   :  { %v3067_v21 = vpop.permute.xlu0 %3066  ;;  %v3156_v3 = vrot.slane %v3108_v55, 6  ;;  %v3172_v37 = vrot.slane %v3117_v26, 5  ;;  %v3135_v26 = vld [vmem:[#allocation2 + $0x6d] sm:$0x1] }
 0xe12   :  { %v3110_v49 = vmul.f32 %v9814_v53, %v3067_v21  ;;  %v3069_v54 = vpop.permute.xlu1 %3068  ;;  %v3118_v53 = vmul.f32 %v9787_v52, %v3083_v13 }
 0xe13   :  { %v3111_v29 = vmul.f32 %v9819_v17, %v3069_v54  ;;  %v3157_v50 = vsel %vm851_vm2, %v3156_v3, %v3155_v24  ;;  %v3173_v13 = vsel %vm854_vm3, %v3172_v37, %v3171_v47  ;;  %v3131_v3 = vld [vmem:[#allocation2 + $0x4d] sm:$0x1] }
 0xe14   :  { %v3160_v44 = vrot.slane %v3110_v49, 4  ;;  %v3159_v1 = vsel %vm854_vm3, %v3158_v4, %v3157_v50  ;;  %v3174_v43 = vrot.slane %v3118_v53, 4 }
 0xe15   :  { %v3087_v5 = vpop.permute.xlu0 %3086  ;;  %v3162_v17 = vrot.slane %v3111_v29, 3 }
 0xe16   :  { %v3071_v27 = vpop.permute.xlu1 %3070  ;;  %v3161_v28 = vsel %vm857_vm4, %v3160_v44, %v3159_v1  ;;  %v3120_v40 = vmul.f32 %v9822_v12, %v3087_v5  ;;  %v3133_v44 = vld [vmem:[#allocation2 + $0x5d] sm:$0x1] }
 0xe17   :  { %v3112_v2 = vmul.f32 %v9827_v46, %v3071_v27  ;;  %v3163_v0 = vsel %vm860_vm5, %v3162_v17, %v3161_v28  ;;  %v3175_v46 = vsel %vm857_vm4, %v3174_v43, %v3173_v13  ;;  %v3122_v27 = vld [vmem:[#allocation2 + $0x5] sm:$0x1] }
 0xe18   :  { %v3178_v10 = vrot.slane %v3120_v40, 2  ;;  %v3177_v12 = vsel %vm860_vm5, %v3176_v30, %v3175_v46  ;;  %v3132_v40 = vld [vmem:[#allocation2 + $0x55] sm:$0x1] }
 0xe19   :  { %v3164_v39 = vrot.slane %v3112_v2, 2  ;;  %v3124_v30 = vld [vmem:[#allocation2 + $0x15] sm:$0x1] }
 0xe1a   :  { %v3073_v52 = vpop.permute.xlu1 %3072  ;;  %v3179_v57 = vsel %vm863_vm6, %v3178_v10, %v3177_v12  ;;  %v3127_v12 = vld [vmem:[#allocation2 + $0x2d] sm:$0x1] }
 0xe1b   :  { %v3113_v19 = vmul.f32 %v9832_v18, %v3073_v52  ;;  %v3165_v20 = vsel %vm863_vm6, %v3164_v39, %v3163_v0  ;;  %v3125_v0 = vld [vmem:[#allocation2 + $0x1d] sm:$0x1] }
 0xe1d   :  { %v3166_v58 = vrot.slane %v3113_v19, 1  ;;  %v3126_v19 = vld [vmem:[#allocation2 + $0x25] sm:$0x1] }
 0xe1e   :  { %v3089_v34 = vpop.permute.xlu1 %3088 }
 0xe1f   :  { %v3121_v25 = vmul.f32 %v9836_v63, %v3089_v34  ;;  %v3167_v16 = vsel %vm866_vm7, %v3166_v58, %v3165_v20 }
 0xe20   :  { %3182 = vrot.lane.b32.xlu0 %v3167_v16, %s8295_s4 }
 0xe21   :  { %v3180_v15 = vrot.slane %v3121_v25, 1  ;;  %v3136_v25 = vld [vmem:[#allocation2 + $0x75] sm:$0x1] }
 0xe23   :  { %v3181_v18 = vsel %vm866_vm7, %v3180_v15, %v3179_v57 }
 0xe24   :  { %3184 = vrot.lane.b32.xlu1 %v3181_v18, %s8295_s4 }
 0xe92   :  { %v3183_v55 = vpop.permute.xlu0 %3182 }
 0xe93   :  { %6915 = vmatprep.mubr.msk.f32.mxu1 %vm304_vm8, %v3183_v55 }
 0xe96   :  { %v3185_v21 = vpop.permute.xlu1 %3184 }
 0xe97   :  { %6916 = vmatmul.mubr.msk.f32.vlgmr.msra.gmra.mrb[8].mxu1 %vm304_vm8, %v3185_v21  ;;  %v3128_v21 = vld [vmem:[#allocation2 + $0x35] sm:$0x1] }
 0xe98   :  { %7090 = vmatpush3.bf16.msra.mxu1 %v8396_v8 }
 0xe99   :  { %7092 = vmatprep.subr.bf16.mxu1 %v8404_v11 }
 0xe9c   :  { %7094 = vmatpush3.bf16.msra.mxu1 %v8404_v11 }
 0xf6a   :  { %v9973_v63 = vpop.f32.mrb[8].mxu1 }
 0xf6b   :  { %v9975_v49 = vpop.f32.mrb[9].mxu1  ;;  %v9978_v24 = vadd.f32 %v9973_v63, %v3130_v31  ;;  %v3274_v4 = vrot.slane %v9973_v63, 1  ;;  %v3276_v54 = vrot.slane %v9973_v63, 3  ;;  %v3277_v11 = vrot.slane %v9973_v63, 4 }
 0xf6c   :  { %v3278_v50 = vrot.slane %v9973_v63, 5  ;;  %v3267_v5 = vrot.slane %v9975_v49, 1  ;;  %v3275_v28 = vrot.slane %v9973_v63, 2  ;;  %v10002_v51 = vadd.f32 %v9975_v49, %v3122_v27 }
 0xf6d   :  { %7845 = vtanh.f32 %v9978_v24  ;;  %v9983_v8 = vadd.f32 %v3274_v4, %v3131_v3  ;;  %v9986_v9 = vadd.f32 %v3276_v54, %v3133_v44  ;;  %v9991_v60 = vadd.f32 %v3277_v11, %v3134_v7  ;;  %v3129_v44 = vld [vmem:[#allocation2 + $0x3d] sm:$0x1] }
 0xf6e   :  { %v9994_v1 = vadd.f32 %v3278_v50, %v3135_v26  ;;  %v3269_v17 = vrot.slane %v9975_v49, 3  ;;  %v10005_v2 = vadd.f32 %v3267_v5, %v3123_v38  ;;  %v10008_v37 = vadd.f32 %v3275_v28, %v3132_v40  ;;  %v3137_v50 = vld [vmem:[#allocation2 + $0x7d] sm:$0x1] }
 0xf6f   :  { %7847 = vtanh.f32 %v9983_v8  ;;  %v3268_v43 = vrot.slane %v9975_v49, 2  ;;  %v3270_v39 = vrot.slane %v9975_v49, 4  ;;  %v3271_v10 = vrot.slane %v9975_v49, 5 }
 0xf70   :  { %7849 = vtanh.f32 %v9986_v9  ;;  %v10013_v52 = vadd.f32 %v3269_v17, %v3125_v0  ;;  %v3279_v58 = vrot.slane %v9973_v63, 6  ;;  %v3272_v16 = vrot.slane %v9975_v49, 6 }
 0xf71   :  { %7851 = vtanh.f32 %v9991_v60  ;;  %v10019_v20 = vadd.f32 %v3268_v43, %v3124_v30  ;;  %v10022_v46 = vadd.f32 %v3270_v39, %v3126_v19  ;;  %v10027_v57 = vadd.f32 %v3271_v10, %v3127_v12 }
 0xf72   :  { %7853 = vtanh.f32 %v9994_v1  ;;  %v10030_v15 = vadd.f32 %v3279_v58, %v3136_v25  ;;  %v3273_v31 = vrot.slane %v9975_v49, 7  ;;  %v10035_v4 = vadd.f32 %v3272_v16, %v3128_v21 }
 0xf73   :  { %7855 = vtanh.f32 %v10002_v51  ;;  %v3280_v11 = vrot.slane %v9973_v63, 7  ;;  %v6625_v38 = vmul.f32 -1.442695, %v9978_v24  ;;  %v6626_v17 = vmul.f32 -1.442695, %v9983_v8 }
 0xf74   :  { %7857 = vtanh.f32 %v10005_v2  ;;  %v6629_v0 = vmul.f32 -1.442695, %v9991_v60  ;;  %v6630_v39 = vmul.f32 -1.442695, %v9994_v1  ;;  %v6617_v30 = vmul.f32 -1.442695, %v10002_v51 }
 0xf75   :  { %7859 = vtanh.f32 %v10008_v37  ;;  %v10047_v26 = vadd.f32 %v3280_v11, %v3137_v50  ;;  %v6618_v24 = vmul.f32 -1.442695, %v10005_v2  ;;  %v6627_v10 = vmul.f32 -1.442695, %v10008_v37 }
 0xf76   :  { %7861 = vtanh.f32 %v10013_v52  ;;  %v6619_v51 = vmul.f32 -1.442695, %v10019_v20  ;;  %v6621_v2 = vmul.f32 -1.442695, %v10022_v46  ;;  %v6622_v16 = vmul.f32 -1.442695, %v10027_v57 }
 0xf77   :  { %v7846_v29 = vpop.eup %7845  ;;  %7863 = vtanh.f32 %v10019_v20 }
 0xf78   :  { %3473 = vrot.lane.b32.xlu1 %v7846_v29, %s8294_s0  ;;  %7865 = vtanh.f32 %v10022_v46  ;;  %v10042_v29 = vadd.f32 %v3273_v31, %v3129_v44  ;;  %v6623_v46 = vmul.f32 -1.442695, %v10035_v4 }
 0xf79   :  { %v7848_v53 = vpop.eup %7847  ;;  %7867 = vtanh.f32 %v10027_v57 }
 0xf7a   :  { %3475 = vrot.lane.b32.xlu0 %v7848_v53, %s8294_s0  ;;  %v7850_v47 = vpop.eup %7849  ;;  %7869 = vtanh.f32 %v10030_v15 }
 0xf7b   :  { %v7852_v13 = vpop.eup %7851  ;;  %7871 = vtanh.f32 %v10035_v4 }
 0xf7c   :  { %v7854_v34 = vpop.eup %7853  ;;  %7873 = vtanh.f32 %v10042_v29 }
 0xf7d   :  { %v7856_v18 = vpop.eup %7855  ;;  %7875 = vtanh.f32 %v10047_v26 }
 0xf7e   :  { %3479 = vrot.lane.b32.xlu0 %v7850_v47, %s8294_s0  ;;  %v7858_v55 = vpop.eup %7857  ;;  %3457 = vrot.lane.b32.xlu1 %v7856_v18, %s8294_s0  ;;  %7877 = vpow2.f32 %v6625_v38  ;;  %v6628_v47 = vmul.f32 -1.442695, %v9986_v9  ;;  %v6620_v9 = vmul.f32 -1.442695, %v10013_v52  ;;  %v6631_v52 = vmul.f32 -1.442695, %v10030_v15 }
 0xf7f   :  { %v7860_v3 = vpop.eup %7859  ;;  %7879 = vpow2.f32 %v6626_v17  ;;  %v6632_v38 = vmul.f32 -1.442695, %v10047_v26 }
 0xf80   :  { %v7862_v54 = vpop.eup %7861  ;;  %7881 = vpow2.f32 %v6628_v47 }
 0xf81   :  { %v7864_v49 = vpop.eup %7863  ;;  %7883 = vpow2.f32 %v6629_v0 }
 0xf82   :  { %3481 = vrot.lane.b32.xlu0 %v7852_v13, %s8294_s0  ;;  %3477 = vrot.lane.b32.xlu1 %v7860_v3, %s8294_s0  ;;  %v7866_v7 = vpop.eup %7865 }
 0xf83   :  { %v7868_v5 = vpop.eup %7867 }
 0xf84   :  { %v7870_v53 = vpop.eup %7869 }
 0xf85   :  { %v7872_v63 = vpop.eup %7871 }
 0xf86   :  { %3483 = vrot.lane.b32.xlu0 %v7854_v34, %s8294_s0  ;;  %3461 = vrot.lane.b32.xlu1 %v7864_v49, %s8294_s0  ;;  %v7874_v27 = vpop.eup %7873 }
 0xf87   :  { %v7876_v28 = vpop.eup %7875 }
 0xf88   :  { %v7878_v40 = vpop.eup %7877 }
 0xf89   :  { %v3369_v43 = vadd.f32 1.0, %v7878_v40  ;;  %v7880_v13 = vpop.eup %7879 }
 0xf8a   :  { %3459 = vrot.lane.b32.xlu0 %v7858_v55, %s8294_s0  ;;  %3467 = vrot.lane.b32.xlu1 %v7868_v5, %s8294_s0  ;;  %v3370_v19 = vadd.f32 1.0, %v7880_v13  ;;  %v7882_v8 = vpop.eup %7881 }
 0xf8b   :  { %7885 = vrcp.f32 %v3369_v43  ;;  %v7884_v60 = vpop.eup %7883  ;;  %v3372_v58 = vadd.f32 1.0, %v7882_v8 }
 0xf8c   :  { %7887 = vpow2.f32 %v6630_v39  ;;  %v3373_v37 = vadd.f32 1.0, %v7884_v60 }
 0xf8d   :  { %7889 = vpow2.f32 %v6617_v30 }
 0xf8e   :  { %3463 = vrot.lane.b32.xlu0 %v7862_v54, %s8294_s0  ;;  %3469 = vrot.lane.b32.xlu1 %v7872_v63, %s8294_s0  ;;  %7891 = vpow2.f32 %v6618_v24 }
 0xf8f   :  { %7893 = vrcp.f32 %v3370_v19 }
 0xf90   :  { %7895 = vpow2.f32 %v6627_v10 }
 0xf91   :  { %7897 = vpow2.f32 %v6620_v9 }
 0xf92   :  { %3465 = vrot.lane.b32.xlu0 %v7866_v7, %s8294_s0  ;;  %3471 = vrot.lane.b32.xlu1 %v7874_v27, %s8294_s0  ;;  %7899 = vrcp.f32 %v3372_v58  ;;  %v6624_v7 = vmul.f32 -1.442695, %v10042_v29 }
 0xf93   :  { %7901 = vpow2.f32 %v6619_v51 }
 0xf94   :  { %7903 = vpow2.f32 %v6621_v2 }
 0xf95   :  { %v10066_v34 = vpop.eup %7885  ;;  %7905 = vrcp.f32 %v3373_v37 }
 0xf96   :  { %3485 = vrot.lane.b32.xlu0 %v7870_v53, %s8294_s0  ;;  %3487 = vrot.lane.b32.xlu1 %v7876_v28, %s8294_s0  ;;  %v7888_v25 = vpop.eup %7887  ;;  %7907 = vpow2.f32 %v6631_v52 }
 0xf97   :  { %v7890_v18 = vpop.eup %7889  ;;  %v3374_v55 = vadd.f32 1.0, %v7888_v25  ;;  %7909 = vpow2.f32 %v6622_v16 }
 0xf98   :  { %v7892_v20 = vpop.eup %7891  ;;  %v3361_v44 = vadd.f32 1.0, %v7890_v18 }
 0xf99   :  { %v10074_v21 = vpop.eup %7893  ;;  %7911 = vrcp.f32 %v3374_v55  ;;  %v3362_v57 = vadd.f32 1.0, %v7892_v20 }
 0xf9a   :  { %v7896_v54 = vpop.eup %7895  ;;  %7913 = vpow2.f32 %v6623_v46 }
 0xf9b   :  { %v7898_v15 = vpop.eup %7897  ;;  %7915 = vrcp.f32 %v3361_v44  ;;  %v3371_v4 = vadd.f32 1.0, %v7896_v54 }
 0xf9c   :  { %v10079_v11 = vpop.eup %7899  ;;  %7917 = vrcp.f32 %v3362_v57  ;;  %v3364_v63 = vadd.f32 1.0, %v7898_v15 }
 0xf9d   :  { %v7902_v5 = vpop.eup %7901  ;;  %7919 = vpow2.f32 %v6624_v7 }
 0xf9e   :  { %v7904_v53 = vpop.eup %7903  ;;  %7921 = vrcp.f32 %v3371_v4  ;;  %v3363_v29 = vadd.f32 1.0, %v7902_v5 }
 0xf9f   :  { %v10084_v27 = vpop.eup %7905  ;;  %7923 = vrcp.f32 %v3364_v63  ;;  %v3365_v0 = vadd.f32 1.0, %v7904_v53 }
 0xfa0   :  { %v7908_v47 = vpop.eup %7907  ;;  %7925 = vpow2.f32 %v6632_v38 }
 0xfa1   :  { %v7910_v40 = vpop.eup %7909  ;;  %7927 = vrcp.f32 %v3363_v29  ;;  %v3375_v24 = vadd.f32 1.0, %v7908_v47 }
 0xfa2   :  { %v3366_v30 = vadd.f32 1.0, %v7910_v40  ;;  %7929 = vrcp.f32 %v3365_v0 }
 0xfa3   :  { %v10089_v43 = vpop.eup %7911 }
 0xfa4   :  { %v7914_v26 = vpop.eup %7913  ;;  %7931 = vrcp.f32 %v3366_v30 }
 0xfa5   :  { %v10093_v19 = vpop.eup %7915  ;;  %7933 = vrcp.f32 %v3375_v24 }
 0xfa6   :  { %v10095_v10 = vpop.eup %7917 }
 0xfa7   :  { %v7920_v51 = vpop.eup %7919 }
 0xfa8   :  { %v3368_v18 = vadd.f32 1.0, %v7920_v51 }
 0xfea   :  { %v3474_v1 = vpop.permute.xlu1 %3473 }
 0xfeb   :  { %v3513_v12 = vmul.f32 %v10066_v34, %v3474_v1  ;;  %v3367_v1 = vadd.f32 1.0, %v7914_v26  ;;  %v3434_v26 = vmul.f32 %v10074_v21, %v9847_v23 }
 0xfec   :  { %v3476_v31 = vpop.permute.xlu0 %3475 }
 0xfed   :  { %3553 = vrot.lane.b32.xlu1 %v3513_v12, %s8295_s4  ;;  %v3514_v3 = vmul.f32 %v10074_v21, %v3476_v31  ;;  %v10100_v12 = vpop.eup %7921  ;;  %7935 = vrcp.f32 %v3367_v1 }
 0xfee   :  { %v10103_v37 = vpop.eup %7923  ;;  %7937 = vrcp.f32 %v3368_v18  ;;  %v3426_v18 = vmul.f32 %v10095_v10, %v9873_v56 }
 0xfef   :  { %3555 = vrot.lane.b32.xlu0 %v3514_v3, %s8295_s4  ;;  %v7926_v55 = vpop.eup %7925 }
 0xff0   :  { %v3480_v49 = vpop.permute.xlu0 %3479  ;;  %v3458_v8 = vpop.permute.xlu1 %3457  ;;  %v3376_v15 = vadd.f32 1.0, %v7926_v55 }
 0xff1   :  { %v3516_v50 = vmul.f32 %v10079_v11, %v3480_v49  ;;  %v3505_v9 = vmul.f32 %v10093_v19, %v3458_v8  ;;  %v10108_v20 = vpop.eup %7927 }
 0xff2   :  { %v10111_v46 = vpop.eup %7929  ;;  %7939 = vrcp.f32 %v3376_v15 }
 0xff3   :  { %3559 = vrot.lane.b32.xlu0 %v3516_v50, %s8295_s4  ;;  %3537 = vrot.lane.b32.xlu1 %v3505_v9, %s8295_s4  ;;  %v10116_v57 = vpop.eup %7931  ;;  %v3436_v9 = vmul.f32 %v10079_v11, %v9852_v35 }
 0xff4   :  { %v3482_v28 = vpop.permute.xlu0 %3481  ;;  %v3478_v2 = vpop.permute.xlu1 %3477 }
 0xff5   :  { %v3517_v17 = vmul.f32 %v10084_v27, %v3482_v28  ;;  %v3515_v25 = vmul.f32 %v10100_v12, %v3478_v2  ;;  %v10119_v7 = vpop.eup %7933  ;;  %v3438_v2 = vmul.f32 %v10089_v43, %v9863_v59 }
 0xff7   :  { %3561 = vrot.lane.b32.xlu0 %v3517_v17, %s8295_s4  ;;  %3557 = vrot.lane.b32.xlu1 %v3515_v25, %s8295_s4  ;;  %v10124_v53 = vpop.eup %7935 }
 0xff8   :  { %v3484_v39 = vpop.permute.xlu0 %3483  ;;  %v3462_v31 = vpop.permute.xlu1 %3461 }
 0xff9   :  { %v3518_v13 = vmul.f32 %v10089_v43, %v3484_v39  ;;  %v3507_v3 = vmul.f32 %v10108_v20, %v3462_v31  ;;  %v10129_v38 = vpop.eup %7937  ;;  %v3433_v39 = vmul.f32 %v10066_v34, %v9842_v61  ;;  %v3437_v61 = vmul.f32 %v10084_v27, %v9858_v45 }
 0xffb   :  { %3563 = vrot.lane.b32.xlu0 %v3518_v13, %s8295_s4  ;;  %3541 = vrot.lane.b32.xlu1 %v3507_v3, %s8295_s4 }
 0xffc   :  { %v3460_v60 = vpop.permute.xlu0 %3459  ;;  %v3468_v49 = vpop.permute.xlu1 %3467 }
 0xffd   :  { %v3506_v58 = vmul.f32 %v10095_v10, %v3460_v60  ;;  %v3510_v50 = vmul.f32 %v10116_v57, %v3468_v49  ;;  %v10133_v29 = vpop.eup %7939 }
 0xfff   :  { %3539 = vrot.lane.b32.xlu0 %v3506_v58, %s8295_s4  ;;  %3547 = vrot.lane.b32.xlu1 %v3510_v50, %s8295_s4 }
0x1000   :  { %v3464_v52 = vpop.permute.xlu0 %3463  ;;  %v3470_v63 = vpop.permute.xlu1 %3469 }
0x1001   :  { %v3508_v16 = vmul.f32 %v10103_v37, %v3464_v52  ;;  %v3511_v28 = vmul.f32 %v10124_v53, %v3470_v63 }
0x1003   :  { %3543 = vrot.lane.b32.xlu0 %v3508_v16, %s8295_s4  ;;  %3549 = vrot.lane.b32.xlu1 %v3511_v28, %s8295_s4  ;;  %v3425_v16 = vmul.f32 %v10093_v19, %v9871_v36 }
0x1004   :  { %v3466_v54 = vpop.permute.xlu0 %3465  ;;  %v3472_v17 = vpop.permute.xlu1 %3471 }
0x1005   :  { %v3509_v44 = vmul.f32 %v10111_v46, %v3466_v54  ;;  %v3512_v47 = vmul.f32 %v10129_v38, %v3472_v17  ;;  %v3435_v54 = vmul.f32 %v10100_v12, %v9882_v33 }
0x1007   :  { %3545 = vrot.lane.b32.xlu0 %v3509_v44, %s8295_s4  ;;  %3551 = vrot.lane.b32.xlu1 %v3512_v47, %s8295_s4  ;;  %v3428_v44 = vmul.f32 %v10103_v37, %v9884_v6  ;;  %v3430_v47 = vmul.f32 %v10116_v57, %v9904_v42  ;;  %v3431_v42 = vmul.f32 %v10124_v53, %v9914_v41 }
0x1008   :  { %v3486_v5 = vpop.permute.xlu0 %3485  ;;  %v3488_v40 = vpop.permute.xlu1 %3487 }
0x1009   :  { %v3519_v4 = vmul.f32 %v10119_v7, %v3486_v5  ;;  %v3520_v0 = vmul.f32 %v10133_v29, %v3488_v40  ;;  %v3427_v5 = vmul.f32 %v10108_v20, %v9893_v22  ;;  %v3439_v40 = vmul.f32 %v10119_v7, %v9907_v62 }
0x100b   :  { %3565 = vrot.lane.b32.xlu0 %v3519_v4, %s8295_s4  ;;  %3567 = vrot.lane.b32.xlu1 %v3520_v0, %s8295_s4  ;;  %v3429_v4 = vmul.f32 %v10111_v46, %v9895_v14 }
0x105f   :  { %v3554_v13 = vpop.permute.xlu1 %3553 }
0x1060   :  { %v10139_v30 = vadd.f32 %v3554_v13, %v3433_v39 }
0x1061   :  { %v3556_v24 = vpop.permute.xlu0 %3555 }
0x1062   :  { %7941 = vtanh.f32 %v10139_v30  ;;  %v10144_v8 = vadd.f32 %v3556_v24, %v3434_v26 }
0x1064   :  { %7943 = vtanh.f32 %v10144_v8 }
0x1065   :  { %v3560_v58 = vpop.permute.xlu0 %3559  ;;  %v3538_v45 = vpop.permute.xlu1 %3537 }
0x1066   :  { %v10149_v1 = vadd.f32 %v3560_v58, %v3436_v9  ;;  %v10168_v31 = vadd.f32 %v3538_v45, %v3425_v16  ;;  %v3432_v58 = vmul.f32 %v10129_v38, %v9921_v32 }
0x1068   :  { %7945 = vtanh.f32 %v10149_v1 }
0x1069   :  { %v3562_v23 = vpop.permute.xlu0 %3561  ;;  %v3558_v36 = vpop.permute.xlu1 %3557 }
0x106a   :  { %v10155_v51 = vadd.f32 %v3562_v23, %v3437_v61  ;;  %v10179_v15 = vadd.f32 %v3558_v36, %v3435_v54 }
0x106c   :  { %v7942_v60 = vpop.eup %7941  ;;  %7947 = vtanh.f32 %v10155_v51 }
0x106d   :  { %3649 = vrot.lane.b32.xlu1 %v7942_v60, %s8294_s0  ;;  %v3564_v35 = vpop.permute.xlu0 %3563  ;;  %v3542_v33 = vpop.permute.xlu1 %3541 }
0x106e   :  { %v7944_v25 = vpop.eup %7943  ;;  %v10160_v52 = vadd.f32 %v3564_v35, %v3438_v2  ;;  %v10190_v63 = vadd.f32 %v3542_v33, %v3427_v5  ;;  %v3440_v35 = vmul.f32 %v10133_v29, %v9928_v48 }
0x106f   :  { %3651 = vrot.lane.b32.xlu0 %v7944_v25, %s8294_s0 }
0x1070   :  { %7949 = vtanh.f32 %v10160_v52 }
0x1071   :  { %v3540_v3 = vpop.permute.xlu0 %3539  ;;  %7951 = vtanh.f32 %v10168_v31  ;;  %v3548_v22 = vpop.permute.xlu1 %3547 }
0x1072   :  { %v7946_v55 = vpop.eup %7945  ;;  %v10170_v59 = vadd.f32 %v3540_v3, %v3426_v18  ;;  %v10201_v0 = vadd.f32 %v3548_v22, %v3430_v47 }
0x1073   :  { %3655 = vrot.lane.b32.xlu0 %v7946_v55, %s8294_s0 }
0x1074   :  { %7953 = vtanh.f32 %v10170_v59 }
0x1075   :  { %v3544_v49 = vpop.permute.xlu0 %3543  ;;  %7955 = vtanh.f32 %v10179_v15  ;;  %v3550_v24 = vpop.permute.xlu1 %3549 }
0x1076   :  { %v7948_v56 = vpop.eup %7947  ;;  %v10181_v50 = vadd.f32 %v3544_v49, %v3428_v44  ;;  %v10211_v9 = vadd.f32 %v3550_v24, %v3431_v42 }
0x1077   :  { %3657 = vrot.lane.b32.xlu0 %v7948_v56, %s8294_s0 }
0x1078   :  { %7957 = vtanh.f32 %v10181_v50 }
0x1079   :  { %v3546_v28 = vpop.permute.xlu0 %3545  ;;  %7959 = vtanh.f32 %v10190_v63  ;;  %v3552_v61 = vpop.permute.xlu1 %3551 }
0x107a   :  { %v7950_v6 = vpop.eup %7949  ;;  %v10192_v17 = vadd.f32 %v3546_v28, %v3429_v4  ;;  %v10218_v23 = vadd.f32 %v3552_v61, %v3432_v58 }
0x107b   :  { %3659 = vrot.lane.b32.xlu0 %v7950_v6, %s8294_s0  ;;  %v7952_v14 = vpop.eup %7951 }
0x107c   :  { %7961 = vtanh.f32 %v10192_v17  ;;  %3633 = vrot.lane.b32.xlu1 %v7952_v14, %s8294_s0 }
0x107d   :  { %v3566_v39 = vpop.permute.xlu0 %3565  ;;  %7963 = vtanh.f32 %v10201_v0  ;;  %v3568_v25 = vpop.permute.xlu1 %3567 }
0x107e   :  { %v7954_v13 = vpop.eup %7953  ;;  %v10204_v26 = vadd.f32 %v3566_v39, %v3439_v40  ;;  %v10225_v45 = vadd.f32 %v3568_v25, %v3440_v35 }
0x107f   :  { %3635 = vrot.lane.b32.xlu0 %v7954_v13, %s8294_s0  ;;  %v7956_v62 = vpop.eup %7955 }
0x1080   :  { %7965 = vtanh.f32 %v10204_v26  ;;  %3653 = vrot.lane.b32.xlu1 %v7956_v62, %s8294_s0 }
0x1081   :  { %7967 = vtanh.f32 %v10211_v9 }
0x1082   :  { %v7958_v60 = vpop.eup %7957  ;;  %7969 = vtanh.f32 %v10218_v23 }
0x1083   :  { %3639 = vrot.lane.b32.xlu0 %v7958_v60, %s8294_s0  ;;  %v7960_v41 = vpop.eup %7959  ;;  %7971 = vtanh.f32 %v10225_v45 }
0x1084   :  { %3637 = vrot.lane.b32.xlu1 %v7960_v41, %s8294_s0 }
0x1086   :  { %v7962_v2 = vpop.eup %7961 }
0x1087   :  { %3641 = vrot.lane.b32.xlu0 %v7962_v2, %s8294_s0  ;;  %v7964_v16 = vpop.eup %7963 }
0x1088   :  { %3643 = vrot.lane.b32.xlu1 %v7964_v16, %s8294_s0 }
0x108a   :  { %v7966_v32 = vpop.eup %7965 }
0x108b   :  { %3661 = vrot.lane.b32.xlu0 %v7966_v32, %s8294_s0  ;;  %v7968_v18 = vpop.eup %7967 }
0x108c   :  { %3645 = vrot.lane.b32.xlu1 %v7968_v18, %s8294_s0  ;;  %v7970_v55 = vpop.eup %7969 }
0x108d   :  { %v7972_v48 = vpop.eup %7971 }
0x1090   :  { %3647 = vrot.lane.b32.xlu1 %v7970_v55, %s8294_s0 }
0x1094   :  { %3663 = vrot.lane.b32.xlu1 %v7972_v48, %s8294_s0 }
0x10df   :  { %v3650_v44 = vpop.permute.xlu1 %3649 }
0x10e1   :  { %v3652_v3 = vpop.permute.xlu0 %3651 }
0x10e2   :  { %v3690_v40 = vmul.f32 %v10074_v21, %v3652_v3 }
0x10e4   :  { %v3743_v41 = vrot.slane %v3690_v40, 7 }
0x10e5   :  { %v3656_v54 = vpop.permute.xlu0 %3655 }
0x10e9   :  { %v3658_v36 = vpop.permute.xlu0 %3657 }
0x10ed   :  { %v3660_v56 = vpop.permute.xlu0 %3659 }
0x10ee   :  { %v3634_v49 = vpop.permute.xlu1 %3633  ;;  %v3694_v18 = vmul.f32 %v10089_v43, %v3660_v56 }
0x10ef   :  { %v3681_v14 = vmul.f32 %v10093_v19, %v3634_v49  ;;  %v3689_v19 = vmul.f32 %v10066_v34, %v3650_v44 }
0x10f0   :  { %v3751_v49 = vrot.slane %v3694_v18, 3 }
0x10f1   :  { %v3636_v5 = vpop.permute.xlu0 %3635  ;;  %v3744_v32 = vsel %vm848_vm1, %v3743_v41, %v3689_v19 }
0x10f2   :  { %v3682_v33 = vmul.f32 %v10095_v10, %v3636_v5  ;;  %v3654_v4 = vpop.permute.xlu1 %3653 }
0x10f3   :  { %v3691_v42 = vmul.f32 %v10100_v12, %v3654_v4 }
0x10f4   :  { %v3729_v28 = vrot.slane %v3682_v33, 7 }
0x10f5   :  { %v3640_v6 = vpop.permute.xlu0 %3639  ;;  %v3745_v2 = vrot.slane %v3691_v42, 6 }
0x10f6   :  { %v3684_v47 = vmul.f32 %v10103_v37, %v3640_v6  ;;  %v3638_v22 = vpop.permute.xlu1 %3637  ;;  %v3730_v62 = vsel %vm848_vm1, %v3729_v28, %v3681_v14 }
0x10f7   :  { %v3683_v39 = vmul.f32 %v10108_v20, %v3638_v22  ;;  %v3692_v20 = vmul.f32 %v10079_v11, %v3656_v54  ;;  %v3746_v48 = vsel %vm851_vm2, %v3745_v2, %v3744_v32  ;;  %v3709_v2 = vld [vmem:[#allocation2 + $0x66] sm:$0x1]  ;;  %v3698_v32 = vld [vmem:[#allocation2 + $0xe] sm:$0x1] }
0x10f8   :  { %v3733_v10 = vrot.slane %v3684_v47, 5 }
0x10f9   :  { %v3642_v13 = vpop.permute.xlu0 %3641  ;;  %v3731_v60 = vrot.slane %v3683_v39, 6  ;;  %v3747_v11 = vrot.slane %v3692_v20, 5  ;;  %v3710_v20 = vld [vmem:[#allocation2 + $0x6e] sm:$0x1] }
0x10fa   :  { %v3685_v24 = vmul.f32 %v10111_v46, %v3642_v13  ;;  %v3644_v58 = vpop.permute.xlu1 %3643  ;;  %v3693_v46 = vmul.f32 %v10084_v27, %v3658_v36 }
0x10fb   :  { %v3686_v37 = vmul.f32 %v10116_v57, %v3644_v58  ;;  %v3732_v21 = vsel %vm851_vm2, %v3731_v60, %v3730_v62  ;;  %v3748_v36 = vsel %vm854_vm3, %v3747_v11, %v3746_v48  ;;  %v3706_v62 = vld [vmem:[#allocation2 + $0x4e] sm:$0x1]  ;;  %v3708_v58 = vld [vmem:[#allocation2 + $0x5e] sm:$0x1] }
0x10fc   :  { %v3735_v61 = vrot.slane %v3685_v24, 4  ;;  %v3734_v12 = vsel %vm854_vm3, %v3733_v10, %v3732_v21  ;;  %v3749_v54 = vrot.slane %v3693_v46, 4 }
0x10fd   :  { %v3662_v35 = vpop.permute.xlu0 %3661  ;;  %v3737_v57 = vrot.slane %v3686_v37, 3 }
0x10fe   :  { %v3646_v25 = vpop.permute.xlu1 %3645  ;;  %v3736_v16 = vsel %vm857_vm4, %v3735_v61, %v3734_v12  ;;  %v3695_v34 = vmul.f32 %v10119_v7, %v3662_v35 }
0x10ff   :  { %v3687_v55 = vmul.f32 %v10124_v53, %v3646_v25  ;;  %v3738_v3 = vsel %vm860_vm5, %v3737_v57, %v3736_v16  ;;  %v3750_v53 = vsel %vm857_vm4, %v3749_v54, %v3748_v36  ;;  %v3697_v25 = vld [vmem:[#allocation2 + $0x6] sm:$0x1] }
0x1100   :  { %v3753_v33 = vrot.slane %v3695_v34, 2  ;;  %v3752_v7 = vsel %vm860_vm5, %v3751_v49, %v3750_v53  ;;  %v3707_v34 = vld [vmem:[#allocation2 + $0x56] sm:$0x1] }
0x1101   :  { %v3739_v44 = vrot.slane %v3687_v55, 2  ;;  %v3699_v49 = vld [vmem:[#allocation2 + $0x16] sm:$0x1] }
0x1102   :  { %v3648_v27 = vpop.permute.xlu1 %3647  ;;  %v3754_v47 = vsel %vm863_vm6, %v3753_v33, %v3752_v7  ;;  %v3702_v7 = vld [vmem:[#allocation2 + $0x2e] sm:$0x1] }
0x1103   :  { %v3688_v5 = vmul.f32 %v10129_v38, %v3648_v27  ;;  %v3740_v43 = vsel %vm863_vm6, %v3739_v44, %v3738_v3  ;;  %v3700_v3 = vld [vmem:[#allocation2 + $0x1e] sm:$0x1] }
0x1105   :  { %v3741_v56 = vrot.slane %v3688_v5, 1  ;;  %v3701_v5 = vld [vmem:[#allocation2 + $0x26] sm:$0x1] }
0x1106   :  { %v3664_v4 = vpop.permute.xlu1 %3663 }
0x1107   :  { %v3696_v6 = vmul.f32 %v10133_v29, %v3664_v4  ;;  %v3742_v28 = vsel %vm866_vm7, %v3741_v56, %v3740_v43  ;;  %v3705_v29 = vld [vmem:[#allocation2 + $0x46] sm:$0x1] }
0x1108   :  { %3757 = vrot.lane.b32.xlu0 %v3742_v28, %s8295_s4 }
0x1109   :  { %v3755_v22 = vrot.slane %v3696_v6, 1  ;;  %v3711_v6 = vld [vmem:[#allocation2 + $0x76] sm:$0x1] }
0x110b   :  { %v3756_v38 = vsel %vm866_vm7, %v3755_v22, %v3754_v47 }
0x110c   :  { %3759 = vrot.lane.b32.xlu1 %v3756_v38, %s8295_s4 }
0x117a   :  { %v3758_v40 = vpop.permute.xlu0 %3757 }
0x117b   :  { %6926 = vmatprep.mubr.msk.f32.mxu0 %vm304_vm8, %v3758_v40 }
0x117e   :  { %v3760_v14 = vpop.permute.xlu1 %3759 }
0x117f   :  { %6927 = vmatmul.mubr.msk.f32.vlgmr.msra.gmra.mrb[18].mxu0 %vm304_vm8, %v3760_v14  ;;  %v3703_v14 = vld [vmem:[#allocation2 + $0x36] sm:$0x1] }
0x1252   :  { %v10267_v39 = vpop.f32.mrb[18].mxu0 }
0x1253   :  { %v10269_v13 = vpop.f32.mrb[19].mxu0  ;;  %v10272_v42 = vadd.f32 %v10267_v39, %v3705_v29  ;;  %v3849_v24 = vrot.slane %v10267_v39, 1  ;;  %v3851_v10 = vrot.slane %v10267_v39, 3  ;;  %v3852_v61 = vrot.slane %v10267_v39, 4 }
0x1254   :  { %v3853_v21 = vrot.slane %v10267_v39, 5  ;;  %v3842_v35 = vrot.slane %v10269_v13, 1  ;;  %v3850_v16 = vrot.slane %v10267_v39, 2  ;;  %v10296_v18 = vadd.f32 %v10269_v13, %v3697_v25 }
0x1255   :  { %7973 = vtanh.f32 %v10272_v42  ;;  %v10277_v60 = vadd.f32 %v3849_v24, %v3706_v62  ;;  %v10280_v41 = vadd.f32 %v3851_v10, %v3708_v58  ;;  %v10285_v19 = vadd.f32 %v3852_v61, %v3709_v2  ;;  %v3704_v58 = vld [vmem:[#allocation2 + $0x3e] sm:$0x1] }
0x1256   :  { %v10288_v12 = vadd.f32 %v3853_v21, %v3710_v20  ;;  %v3844_v57 = vrot.slane %v10269_v13, 3  ;;  %v10299_v55 = vadd.f32 %v3842_v35, %v3698_v32  ;;  %v10302_v11 = vadd.f32 %v3850_v16, %v3707_v34  ;;  %v3712_v21 = vld [vmem:[#allocation2 + $0x7e] sm:$0x1] }
0x1257   :  { %7975 = vtanh.f32 %v10277_v60  ;;  %v3843_v54 = vrot.slane %v10269_v13, 2  ;;  %v3845_v44 = vrot.slane %v10269_v13, 4  ;;  %v3846_v33 = vrot.slane %v10269_v13, 5 }
0x1258   :  { %7977 = vtanh.f32 %v10280_v41  ;;  %v10307_v27 = vadd.f32 %v3844_v57, %v3700_v3  ;;  %v3854_v56 = vrot.slane %v10267_v39, 6  ;;  %v3847_v28 = vrot.slane %v10269_v13, 6 }
0x1259   :  { %7979 = vtanh.f32 %v10285_v19  ;;  %v10313_v43 = vadd.f32 %v3843_v54, %v3699_v49  ;;  %v10316_v53 = vadd.f32 %v3845_v44, %v3701_v5  ;;  %v10321_v47 = vadd.f32 %v3846_v33, %v3702_v7 }
0x125a   :  { %7981 = vtanh.f32 %v10288_v12  ;;  %v10324_v22 = vadd.f32 %v3854_v56, %v3711_v6  ;;  %v3848_v29 = vrot.slane %v10269_v13, 7  ;;  %v10329_v24 = vadd.f32 %v3847_v28, %v3703_v14 }
0x125b   :  { %7983 = vtanh.f32 %v10296_v18  ;;  %v3855_v61 = vrot.slane %v10267_v39, 7  ;;  %v6643_v32 = vmul.f32 -1.442695, %v10272_v42  ;;  %v6644_v57 = vmul.f32 -1.442695, %v10277_v60 }
0x125c   :  { %7985 = vtanh.f32 %v10299_v55  ;;  %v6647_v3 = vmul.f32 -1.442695, %v10285_v19  ;;  %v6648_v44 = vmul.f32 -1.442695, %v10288_v12  ;;  %v6635_v49 = vmul.f32 -1.442695, %v10296_v18 }
0x125d   :  { %7987 = vtanh.f32 %v10302_v11  ;;  %v10341_v20 = vadd.f32 %v3855_v61, %v3712_v21  ;;  %v6636_v42 = vmul.f32 -1.442695, %v10299_v55  ;;  %v6645_v33 = vmul.f32 -1.442695, %v10302_v11 }
0x125e   :  { %7989 = vtanh.f32 %v10307_v27  ;;  %v6637_v18 = vmul.f32 -1.442695, %v10313_v43  ;;  %v6639_v55 = vmul.f32 -1.442695, %v10316_v53  ;;  %v6640_v28 = vmul.f32 -1.442695, %v10321_v47 }
0x125f   :  { %v7974_v37 = vpop.eup %7973  ;;  %7991 = vtanh.f32 %v10313_v43 }
0x1260   :  { %4048 = vrot.lane.b32.xlu1 %v7974_v37, %s8294_s0  ;;  %7993 = vtanh.f32 %v10316_v53  ;;  %v10336_v37 = vadd.f32 %v3848_v29, %v3704_v58  ;;  %v6641_v53 = vmul.f32 -1.442695, %v10329_v24 }
0x1261   :  { %v7976_v46 = vpop.eup %7975  ;;  %7995 = vtanh.f32 %v10321_v47 }
0x1262   :  { %4050 = vrot.lane.b32.xlu0 %v7976_v46, %s8294_s0  ;;  %v7978_v48 = vpop.eup %7977  ;;  %7997 = vtanh.f32 %v10324_v22 }
0x1263   :  { %v7980_v36 = vpop.eup %7979  ;;  %7999 = vtanh.f32 %v10329_v24 }
0x1264   :  { %v7982_v4 = vpop.eup %7981  ;;  %8001 = vtanh.f32 %v10336_v37 }
0x1265   :  { %v7984_v38 = vpop.eup %7983  ;;  %8003 = vtanh.f32 %v10341_v20 }
0x1266   :  { %4054 = vrot.lane.b32.xlu0 %v7978_v48, %s8294_s0  ;;  %v7986_v40 = vpop.eup %7985  ;;  %4032 = vrot.lane.b32.xlu1 %v7984_v38, %s8294_s0  ;;  %8005 = vpow2.f32 %v6643_v32  ;;  %v6646_v48 = vmul.f32 -1.442695, %v10280_v41  ;;  %v6638_v41 = vmul.f32 -1.442695, %v10307_v27  ;;  %v6649_v27 = vmul.f32 -1.442695, %v10324_v22 }
0x1267   :  { %v7988_v62 = vpop.eup %7987  ;;  %8007 = vpow2.f32 %v6644_v57  ;;  %v6650_v32 = vmul.f32 -1.442695, %v10341_v20 }
0x1268   :  { %v7990_v10 = vpop.eup %7989  ;;  %8009 = vpow2.f32 %v6646_v48 }
0x1269   :  { %v7992_v13 = vpop.eup %7991  ;;  %8011 = vpow2.f32 %v6647_v3 }
0x126a   :  { %4056 = vrot.lane.b32.xlu0 %v7980_v36, %s8294_s0  ;;  %4052 = vrot.lane.b32.xlu1 %v7988_v62, %s8294_s0  ;;  %v7994_v2 = vpop.eup %7993 }
0x126b   :  { %v7996_v35 = vpop.eup %7995 }
0x126c   :  { %v7998_v46 = vpop.eup %7997 }
0x126d   :  { %v8000_v39 = vpop.eup %7999 }
0x126e   :  { %4058 = vrot.lane.b32.xlu0 %v7982_v4, %s8294_s0  ;;  %4036 = vrot.lane.b32.xlu1 %v7992_v13, %s8294_s0  ;;  %v8002_v25 = vpop.eup %8001 }
0x126f   :  { %v8004_v16 = vpop.eup %8003 }
0x1270   :  { %v8006_v34 = vpop.eup %8005 }
0x1271   :  { %v3944_v54 = vadd.f32 1.0, %v8006_v34  ;;  %v8008_v36 = vpop.eup %8007 }
0x1272   :  { %4034 = vrot.lane.b32.xlu0 %v7986_v40, %s8294_s0  ;;  %4042 = vrot.lane.b32.xlu1 %v7996_v35, %s8294_s0  ;;  %v3945_v5 = vadd.f32 1.0, %v8008_v36  ;;  %v8010_v60 = vpop.eup %8009 }
0x1273   :  { %8013 = vrcp.f32 %v3944_v54  ;;  %v8012_v19 = vpop.eup %8011  ;;  %v3947_v56 = vadd.f32 1.0, %v8010_v60 }
0x1274   :  { %8015 = vpow2.f32 %v6648_v44  ;;  %v3948_v11 = vadd.f32 1.0, %v8012_v19 }
0x1275   :  { %8017 = vpow2.f32 %v6635_v49 }
0x1276   :  { %4038 = vrot.lane.b32.xlu0 %v7990_v10, %s8294_s0  ;;  %4044 = vrot.lane.b32.xlu1 %v8000_v39, %s8294_s0  ;;  %8019 = vpow2.f32 %v6636_v42 }
0x1277   :  { %8021 = vrcp.f32 %v3945_v5 }
0x1278   :  { %8023 = vpow2.f32 %v6645_v33 }
0x1279   :  { %8025 = vpow2.f32 %v6638_v41 }
0x127a   :  { %4040 = vrot.lane.b32.xlu0 %v7994_v2, %s8294_s0  ;;  %4046 = vrot.lane.b32.xlu1 %v8002_v25, %s8294_s0  ;;  %8027 = vrcp.f32 %v3947_v56  ;;  %v6642_v2 = vmul.f32 -1.442695, %v10336_v37 }
0x127b   :  { %8029 = vpow2.f32 %v6637_v18 }
0x127c   :  { %8031 = vpow2.f32 %v6639_v55 }
0x127d   :  { %v10360_v4 = vpop.eup %8013  ;;  %8033 = vrcp.f32 %v3948_v11 }
0x127e   :  { %4060 = vrot.lane.b32.xlu0 %v7998_v46, %s8294_s0  ;;  %4062 = vrot.lane.b32.xlu1 %v8004_v16, %s8294_s0  ;;  %v8016_v6 = vpop.eup %8015  ;;  %8035 = vpow2.f32 %v6649_v27 }
0x127f   :  { %v8018_v38 = vpop.eup %8017  ;;  %v3949_v40 = vadd.f32 1.0, %v8016_v6  ;;  %8037 = vpow2.f32 %v6640_v28 }
0x1280   :  { %v8020_v43 = vpop.eup %8019  ;;  %v3936_v58 = vadd.f32 1.0, %v8018_v38 }
0x1281   :  { %v10368_v14 = vpop.eup %8021  ;;  %8039 = vrcp.f32 %v3949_v40  ;;  %v3937_v47 = vadd.f32 1.0, %v8020_v43 }
0x1282   :  { %v8024_v10 = vpop.eup %8023  ;;  %8041 = vpow2.f32 %v6641_v53 }
0x1283   :  { %v8026_v22 = vpop.eup %8025  ;;  %8043 = vrcp.f32 %v3936_v58  ;;  %v3946_v24 = vadd.f32 1.0, %v8024_v10 }
0x1284   :  { %v10373_v61 = vpop.eup %8027  ;;  %8045 = vrcp.f32 %v3937_v47  ;;  %v3939_v39 = vadd.f32 1.0, %v8026_v22 }
0x1285   :  { %v8030_v35 = vpop.eup %8029  ;;  %8047 = vpow2.f32 %v6642_v2 }
0x1286   :  { %v8032_v46 = vpop.eup %8031  ;;  %8049 = vrcp.f32 %v3946_v24  ;;  %v3938_v37 = vadd.f32 1.0, %v8030_v35 }
0x1287   :  { %v10378_v25 = vpop.eup %8033  ;;  %8051 = vrcp.f32 %v3939_v39  ;;  %v3940_v3 = vadd.f32 1.0, %v8032_v46 }
0x1288   :  { %v8036_v48 = vpop.eup %8035  ;;  %8053 = vpow2.f32 %v6650_v32 }
0x1289   :  { %v8038_v34 = vpop.eup %8037  ;;  %8055 = vrcp.f32 %v3938_v37  ;;  %v3950_v42 = vadd.f32 1.0, %v8036_v48 }
0x128a   :  { %v3941_v49 = vadd.f32 1.0, %v8038_v34  ;;  %8057 = vrcp.f32 %v3940_v3 }
0x128b   :  { %v10383_v54 = vpop.eup %8039 }
0x128c   :  { %v8042_v20 = vpop.eup %8041  ;;  %8059 = vrcp.f32 %v3941_v49 }
0x128d   :  { %v10387_v5 = vpop.eup %8043  ;;  %8061 = vrcp.f32 %v3950_v42 }
0x128e   :  { %v10389_v33 = vpop.eup %8045 }
0x128f   :  { %v8048_v18 = vpop.eup %8047 }
0x1290   :  { %v3943_v38 = vadd.f32 1.0, %v8048_v18 }
0x12d2   :  { %v4049_v12 = vpop.permute.xlu1 %4048 }
0x12d3   :  { %v4088_v7 = vmul.f32 %v10360_v4, %v4049_v12  ;;  %v3942_v12 = vadd.f32 1.0, %v8042_v20  ;;  %v4009_v20 = vmul.f32 %v10368_v14, %v10144_v8 }
0x12d4   :  { %v4051_v29 = vpop.permute.xlu0 %4050 }
0x12d5   :  { %4128 = vrot.lane.b32.xlu1 %v4088_v7, %s8295_s4  ;;  %v4089_v62 = vmul.f32 %v10368_v14, %v4051_v29  ;;  %v10394_v7 = vpop.eup %8049  ;;  %8063 = vrcp.f32 %v3942_v12 }
0x12d6   :  { %v10397_v11 = vpop.eup %8051  ;;  %8065 = vrcp.f32 %v3943_v38  ;;  %v4001_v38 = vmul.f32 %v10389_v33, %v10170_v59 }
0x12d7   :  { %4130 = vrot.lane.b32.xlu0 %v4089_v62, %s8295_s4  ;;  %v8054_v40 = vpop.eup %8053 }
0x12d8   :  { %v4055_v13 = vpop.permute.xlu0 %4054  ;;  %v4033_v60 = vpop.permute.xlu1 %4032  ;;  %v3951_v22 = vadd.f32 1.0, %v8054_v40 }
0x12d9   :  { %v4091_v21 = vmul.f32 %v10373_v61, %v4055_v13  ;;  %v4080_v41 = vmul.f32 %v10387_v5, %v4033_v60  ;;  %v10402_v43 = vpop.eup %8055 }
0x12da   :  { %v10405_v53 = vpop.eup %8057  ;;  %8067 = vrcp.f32 %v3951_v22 }
0x12db   :  { %4134 = vrot.lane.b32.xlu0 %v4091_v21, %s8295_s4  ;;  %4112 = vrot.lane.b32.xlu1 %v4080_v41, %s8295_s4  ;;  %v10410_v47 = vpop.eup %8059  ;;  %v4011_v41 = vmul.f32 %v10373_v61, %v10149_v1 }
0x12dc   :  { %v4057_v16 = vpop.permute.xlu0 %4056  ;;  %v4053_v55 = vpop.permute.xlu1 %4052 }
0x12dd   :  { %v4092_v57 = vmul.f32 %v10378_v25, %v4057_v16  ;;  %v4090_v6 = vmul.f32 %v10394_v7, %v4053_v55  ;;  %v10413_v2 = vpop.eup %8061  ;;  %v4013_v55 = vmul.f32 %v10383_v54, %v10160_v52 }
0x12df   :  { %4136 = vrot.lane.b32.xlu0 %v4092_v57, %s8295_s4  ;;  %4132 = vrot.lane.b32.xlu1 %v4090_v6, %s8295_s4  ;;  %v10418_v46 = vpop.eup %8063 }
0x12e0   :  { %v4059_v44 = vpop.permute.xlu0 %4058  ;;  %v4037_v29 = vpop.permute.xlu1 %4036 }
0x12e1   :  { %v4093_v36 = vmul.f32 %v10383_v54, %v4059_v44  ;;  %v4082_v62 = vmul.f32 %v10402_v43, %v4037_v29  ;;  %v10423_v32 = vpop.eup %8065  ;;  %v4008_v44 = vmul.f32 %v10360_v4, %v10139_v30  ;;  %v4012_v30 = vmul.f32 %v10378_v25, %v10155_v51 }
0x12e3   :  { %4138 = vrot.lane.b32.xlu0 %v4093_v36, %s8295_s4  ;;  %4116 = vrot.lane.b32.xlu1 %v4082_v62, %s8295_s4 }
0x12e4   :  { %v4035_v19 = vpop.permute.xlu0 %4034  ;;  %v4043_v13 = vpop.permute.xlu1 %4042 }
0x12e5   :  { %v4081_v56 = vmul.f32 %v10389_v33, %v4035_v19  ;;  %v4085_v21 = vmul.f32 %v10410_v47, %v4043_v13  ;;  %v10427_v37 = vpop.eup %8067 }
0x12e7   :  { %4114 = vrot.lane.b32.xlu0 %v4081_v56, %s8295_s4  ;;  %4122 = vrot.lane.b32.xlu1 %v4085_v21, %s8295_s4 }
0x12e8   :  { %v4039_v27 = vpop.permute.xlu0 %4038  ;;  %v4045_v39 = vpop.permute.xlu1 %4044 }
0x12e9   :  { %v4083_v28 = vmul.f32 %v10397_v11, %v4039_v27  ;;  %v4086_v16 = vmul.f32 %v10418_v46, %v4045_v39 }
0x12eb   :  { %4118 = vrot.lane.b32.xlu0 %v4083_v28, %s8295_s4  ;;  %4124 = vrot.lane.b32.xlu1 %v4086_v16, %s8295_s4  ;;  %v4000_v28 = vmul.f32 %v10387_v5, %v10168_v31 }
0x12ec   :  { %v4041_v10 = vpop.permute.xlu0 %4040  ;;  %v4047_v57 = vpop.permute.xlu1 %4046 }
0x12ed   :  { %v4084_v58 = vmul.f32 %v10405_v53, %v4041_v10  ;;  %v4087_v48 = vmul.f32 %v10423_v32, %v4047_v57  ;;  %v4010_v10 = vmul.f32 %v10394_v7, %v10179_v15 }
0x12ef   :  { %4120 = vrot.lane.b32.xlu0 %v4084_v58, %s8295_s4  ;;  %4126 = vrot.lane.b32.xlu1 %v4087_v48, %s8295_s4  ;;  %v4003_v58 = vmul.f32 %v10397_v11, %v10181_v50  ;;  %v4005_v48 = vmul.f32 %v10410_v47, %v10201_v0  ;;  %v4006_v0 = vmul.f32 %v10418_v46, %v10211_v9 }
0x12f0   :  { %v4061_v35 = vpop.permute.xlu0 %4060  ;;  %v4063_v34 = vpop.permute.xlu1 %4062 }
0x12f1   :  { %v4094_v24 = vmul.f32 %v10413_v2, %v4061_v35  ;;  %v4095_v3 = vmul.f32 %v10427_v37, %v4063_v34  ;;  %v4002_v35 = vmul.f32 %v10402_v43, %v10190_v63  ;;  %v4014_v34 = vmul.f32 %v10413_v2, %v10204_v26 }
0x12f3   :  { %4140 = vrot.lane.b32.xlu0 %v4094_v24, %s8295_s4  ;;  %4142 = vrot.lane.b32.xlu1 %v4095_v3, %s8295_s4  ;;  %v4004_v24 = vmul.f32 %v10405_v53, %v10192_v17 }
0x1347   :  { %v4129_v36 = vpop.permute.xlu1 %4128 }
0x1348   :  { %v10433_v49 = vadd.f32 %v4129_v36, %v4008_v44 }
0x1349   :  { %v4131_v42 = vpop.permute.xlu0 %4130 }
0x134a   :  { %8069 = vtanh.f32 %v10433_v49  ;;  %v10438_v60 = vadd.f32 %v4131_v42, %v4009_v20 }
0x134c   :  { %8071 = vtanh.f32 %v10438_v60 }
0x134d   :  { %v4135_v56 = vpop.permute.xlu0 %4134  ;;  %v4113_v51 = vpop.permute.xlu1 %4112 }
0x134e   :  { %v10443_v12 = vadd.f32 %v4135_v56, %v4011_v41  ;;  %v10462_v29 = vadd.f32 %v4113_v51, %v4000_v28  ;;  %v4007_v56 = vmul.f32 %v10423_v32, %v10218_v23 }
0x1350   :  { %8073 = vtanh.f32 %v10443_v12 }
0x1351   :  { %v4137_v8 = vpop.permute.xlu0 %4136  ;;  %v4133_v31 = vpop.permute.xlu1 %4132 }
0x1352   :  { %v10449_v18 = vadd.f32 %v4137_v8, %v4012_v30  ;;  %v10473_v22 = vadd.f32 %v4133_v31, %v4010_v10 }
0x1354   :  { %v8070_v19 = vpop.eup %8069  ;;  %8075 = vtanh.f32 %v10449_v18 }
0x1355   :  { %4224 = vrot.lane.b32.xlu1 %v8070_v19, %s8294_s0  ;;  %v4139_v1 = vpop.permute.xlu0 %4138  ;;  %v4117_v15 = vpop.permute.xlu1 %4116 }
0x1356   :  { %v8072_v6 = vpop.eup %8071  ;;  %v10454_v27 = vadd.f32 %v4139_v1, %v4013_v55  ;;  %v10484_v39 = vadd.f32 %v4117_v15, %v4002_v35  ;;  %v4015_v1 = vmul.f32 %v10427_v37, %v10225_v45 }
0x1357   :  { %4226 = vrot.lane.b32.xlu0 %v8072_v6, %s8294_s0 }
0x1358   :  { %8077 = vtanh.f32 %v10454_v27 }
0x1359   :  { %v4115_v62 = vpop.permute.xlu0 %4114  ;;  %8079 = vtanh.f32 %v10462_v29  ;;  %v4123_v63 = vpop.permute.xlu1 %4122 }
0x135a   :  { %v8074_v40 = vpop.eup %8073  ;;  %v10464_v52 = vadd.f32 %v4115_v62, %v4001_v38  ;;  %v10495_v3 = vadd.f32 %v4123_v63, %v4005_v48 }
0x135b   :  { %4230 = vrot.lane.b32.xlu0 %v8074_v40, %s8294_s0 }
0x135c   :  { %8081 = vtanh.f32 %v10464_v52 }
0x135d   :  { %v4119_v13 = vpop.permute.xlu0 %4118  ;;  %8083 = vtanh.f32 %v10473_v22  ;;  %v4125_v42 = vpop.permute.xlu1 %4124 }
0x135e   :  { %v8076_v59 = vpop.eup %8075  ;;  %v10475_v21 = vadd.f32 %v4119_v13, %v4003_v58  ;;  %v10505_v41 = vadd.f32 %v4125_v42, %v4006_v0 }
0x135f   :  { %4232 = vrot.lane.b32.xlu0 %v8076_v59, %s8294_s0 }
0x1360   :  { %8085 = vtanh.f32 %v10475_v21 }
0x1361   :  { %v4121_v16 = vpop.permute.xlu0 %4120  ;;  %8087 = vtanh.f32 %v10484_v39  ;;  %v4127_v30 = vpop.permute.xlu1 %4126 }
0x1362   :  { %v8078_v50 = vpop.eup %8077  ;;  %v10486_v57 = vadd.f32 %v4121_v16, %v4004_v24  ;;  %v10512_v8 = vadd.f32 %v4127_v30, %v4007_v56 }
0x1363   :  { %4234 = vrot.lane.b32.xlu0 %v8078_v50, %s8294_s0  ;;  %v8080_v17 = vpop.eup %8079 }
0x1364   :  { %8089 = vtanh.f32 %v10486_v57  ;;  %4208 = vrot.lane.b32.xlu1 %v8080_v17, %s8294_s0 }
0x1365   :  { %v4141_v44 = vpop.permute.xlu0 %4140  ;;  %8091 = vtanh.f32 %v10495_v3  ;;  %v4143_v6 = vpop.permute.xlu1 %4142 }
0x1366   :  { %v8082_v36 = vpop.eup %8081  ;;  %v10498_v20 = vadd.f32 %v4141_v44, %v4014_v34  ;;  %v10519_v51 = vadd.f32 %v4143_v6, %v4015_v1 }
0x1367   :  { %4210 = vrot.lane.b32.xlu0 %v8082_v36, %s8294_s0  ;;  %v8084_v26 = vpop.eup %8083 }
0x1368   :  { %8093 = vtanh.f32 %v10498_v20  ;;  %4228 = vrot.lane.b32.xlu1 %v8084_v26, %s8294_s0 }
0x1369   :  { %8095 = vtanh.f32 %v10505_v41 }
0x136a   :  { %v8086_v19 = vpop.eup %8085  ;;  %8097 = vtanh.f32 %v10512_v8 }
0x136b   :  { %4214 = vrot.lane.b32.xlu0 %v8086_v19, %s8294_s0  ;;  %v8088_v9 = vpop.eup %8087  ;;  %8099 = vtanh.f32 %v10519_v51 }
0x136c   :  { %4212 = vrot.lane.b32.xlu1 %v8088_v9, %s8294_s0 }
0x136e   :  { %v8090_v55 = vpop.eup %8089 }
0x136f   :  { %4216 = vrot.lane.b32.xlu0 %v8090_v55, %s8294_s0  ;;  %v8092_v28 = vpop.eup %8091 }
0x1370   :  { %4218 = vrot.lane.b32.xlu1 %v8092_v28, %s8294_s0 }
0x1372   :  { %v8094_v23 = vpop.eup %8093 }
0x1373   :  { %4236 = vrot.lane.b32.xlu0 %v8094_v23, %s8294_s0  ;;  %v8096_v38 = vpop.eup %8095 }
0x1374   :  { %4220 = vrot.lane.b32.xlu1 %v8096_v38, %s8294_s0  ;;  %v8098_v40 = vpop.eup %8097 }
0x1375   :  { %v8100_v45 = vpop.eup %8099 }
0x1378   :  { %4222 = vrot.lane.b32.xlu1 %v8098_v40, %s8294_s0 }
0x137c   :  { %4238 = vrot.lane.b32.xlu1 %v8100_v45, %s8294_s0 }
0x13c7   :  { %v4225_v58 = vpop.permute.xlu1 %4224 }
0x13c9   :  { %v4227_v62 = vpop.permute.xlu0 %4226 }
0x13ca   :  { %v4265_v34 = vmul.f32 %v10368_v14, %v4227_v62 }
0x13cc   :  { %v4318_v9 = vrot.slane %v4265_v34, 7 }
0x13cd   :  { %v4231_v10 = vpop.permute.xlu0 %4230 }
0x13d1   :  { %v4233_v31 = vpop.permute.xlu0 %4232 }
0x13d5   :  { %v4235_v59 = vpop.permute.xlu0 %4234 }
0x13d6   :  { %v4209_v13 = vpop.permute.xlu1 %4208  ;;  %v4269_v38 = vmul.f32 %v10383_v54, %v4235_v59 }
0x13d7   :  { %v4256_v17 = vmul.f32 %v10387_v5, %v4209_v13  ;;  %v4264_v5 = vmul.f32 %v10360_v4, %v4225_v58 }
0x13d8   :  { %v4326_v13 = vrot.slane %v4269_v38, 3 }
0x13d9   :  { %v4211_v35 = vpop.permute.xlu0 %4210  ;;  %v4319_v23 = vsel %vm848_vm1, %v4318_v9, %v4264_v5 }
0x13da   :  { %v4257_v15 = vmul.f32 %v10389_v33, %v4211_v35  ;;  %v4229_v24 = vpop.permute.xlu1 %4228 }
0x13db   :  { %v4266_v0 = vmul.f32 %v10394_v7, %v4229_v24 }
0x13dc   :  { %v4304_v16 = vrot.slane %v4257_v15, 7 }
0x13dd   :  { %v4215_v50 = vpop.permute.xlu0 %4214  ;;  %v4320_v55 = vrot.slane %v4266_v0, 6 }
0x13de   :  { %v4259_v48 = vmul.f32 %v10397_v11, %v4215_v50  ;;  %v4213_v63 = vpop.permute.xlu1 %4212  ;;  %v4305_v26 = vsel %vm848_vm1, %v4304_v16, %v4256_v17 }
0x13df   :  { %v4258_v44 = vmul.f32 %v10402_v43, %v4213_v63  ;;  %v4267_v43 = vmul.f32 %v10373_v61, %v4231_v10  ;;  %v4321_v45 = vsel %vm851_vm2, %v4320_v55, %v4319_v23  ;;  %v4284_v55 = vld [vmem:[#allocation2 + $0x67] sm:$0x1]  ;;  %v4273_v23 = vld [vmem:[#allocation2 + $0xf] sm:$0x1] }
0x13e0   :  { %v4308_v33 = vrot.slane %v4259_v48, 5 }
0x13e1   :  { %v4217_v36 = vpop.permute.xlu0 %4216  ;;  %v4306_v19 = vrot.slane %v4258_v44, 6  ;;  %v4322_v61 = vrot.slane %v4267_v43, 5  ;;  %v4285_v43 = vld [vmem:[#allocation2 + $0x6f] sm:$0x1] }
0x13e2   :  { %v4260_v42 = vmul.f32 %v10405_v53, %v4217_v36  ;;  %v4219_v56 = vpop.permute.xlu1 %4218  ;;  %v4268_v53 = vmul.f32 %v10378_v25, %v4233_v31 }
0x13e3   :  { %v4261_v11 = vmul.f32 %v10410_v47, %v4219_v56  ;;  %v4307_v14 = vsel %vm851_vm2, %v4306_v19, %v4305_v26  ;;  %v4323_v31 = vsel %vm854_vm3, %v4322_v61, %v4321_v45  ;;  %v4281_v26 = vld [vmem:[#allocation2 + $0x4f] sm:$0x1]  ;;  %v4283_v56 = vld [vmem:[#allocation2 + $0x5f] sm:$0x1] }
0x13e4   :  { %v4310_v30 = vrot.slane %v4260_v42, 4  ;;  %v4309_v7 = vsel %vm854_vm3, %v4308_v33, %v4307_v14  ;;  %v4324_v10 = vrot.slane %v4268_v53, 4 }
0x13e5   :  { %v4237_v1 = vpop.permute.xlu0 %4236  ;;  %v4312_v47 = vrot.slane %v4261_v11, 3 }
0x13e6   :  { %v4221_v6 = vpop.permute.xlu1 %4220  ;;  %v4311_v28 = vsel %vm857_vm4, %v4310_v30, %v4309_v7  ;;  %v4270_v4 = vmul.f32 %v10413_v2, %v4237_v1 }
0x13e7   :  { %v4262_v40 = vmul.f32 %v10418_v46, %v4221_v6  ;;  %v4313_v62 = vsel %vm860_vm5, %v4312_v47, %v4311_v28  ;;  %v4325_v46 = vsel %vm857_vm4, %v4324_v10, %v4323_v31  ;;  %v4272_v6 = vld [vmem:[#allocation2 + $0x7] sm:$0x1] }
0x13e8   :  { %v4328_v15 = vrot.slane %v4270_v4, 2  ;;  %v4327_v2 = vsel %vm860_vm5, %v4326_v13, %v4325_v46  ;;  %v4282_v4 = vld [vmem:[#allocation2 + $0x57] sm:$0x1] }
0x13e9   :  { %v4314_v58 = vrot.slane %v4262_v40, 2  ;;  %v4274_v13 = vld [vmem:[#allocation2 + $0x17] sm:$0x1] }
0x13ea   :  { %v4223_v25 = vpop.permute.xlu1 %4222  ;;  %v4329_v48 = vsel %vm863_vm6, %v4328_v15, %v4327_v2  ;;  %v4277_v2 = vld [vmem:[#allocation2 + $0x2f] sm:$0x1] }
0x13eb   :  { %v4263_v35 = vmul.f32 %v10423_v32, %v4223_v25  ;;  %v4315_v54 = vsel %vm863_vm6, %v4314_v58, %v4313_v62  ;;  %v4275_v62 = vld [vmem:[#allocation2 + $0x1f] sm:$0x1] }
0x13ed   :  { %v4316_v59 = vrot.slane %v4263_v35, 1  ;;  %v4276_v35 = vld [vmem:[#allocation2 + $0x27] sm:$0x1] }
0x13ee   :  { %v4239_v24 = vpop.permute.xlu1 %4238 }
0x13ef   :  { %v4271_v50 = vmul.f32 %v10427_v37, %v4239_v24  ;;  %v4317_v16 = vsel %vm866_vm7, %v4316_v59, %v4315_v54  ;;  %v4280_v37 = vld [vmem:[#allocation2 + $0x47] sm:$0x1] }
0x13f0   :  { %4332 = vrot.lane.b32.xlu0 %v4317_v16, %s8295_s4 }
0x13f1   :  { %v4330_v63 = vrot.slane %v4271_v50, 1  ;;  %v4286_v50 = vld [vmem:[#allocation2 + $0x77] sm:$0x1] }
0x13f3   :  { %v4331_v32 = vsel %vm866_vm7, %v4330_v63, %v4329_v48 }
0x13f4   :  { %4334 = vrot.lane.b32.xlu1 %v4331_v32, %s8295_s4 }
0x1462   :  { %v4333_v34 = vpop.permute.xlu0 %4332 }
0x1463   :  { %6937 = vmatprep.mubr.msk.f32.mxu1 %vm304_vm8, %v4333_v34 }
0x1466   :  { %v4335_v17 = vpop.permute.xlu1 %4334 }
0x1467   :  { %6938 = vmatmul.mubr.msk.f32.vlgmr.msra.gmra.mrb[10].mxu1 %vm304_vm8, %v4335_v17  ;;  %v4278_v17 = vld [vmem:[#allocation2 + $0x37] sm:$0x1] }
0x153a   :  { %v10561_v44 = vpop.f32.mrb[10].mxu1 }
0x153b   :  { %v10563_v36 = vpop.f32.mrb[11].mxu1  ;;  %v10566_v0 = vadd.f32 %v10561_v44, %v4280_v37  ;;  %v4424_v42 = vrot.slane %v10561_v44, 1  ;;  %v4426_v33 = vrot.slane %v10561_v44, 3  ;;  %v4427_v30 = vrot.slane %v10561_v44, 4 }
0x153c   :  { %v4428_v14 = vrot.slane %v10561_v44, 5  ;;  %v4417_v1 = vrot.slane %v10563_v36, 1  ;;  %v4425_v28 = vrot.slane %v10561_v44, 2  ;;  %v10588_v38 = vadd.f32 %v10563_v36, %v4272_v6 }
0x153d   :  { %8101 = vtanh.f32 %v10566_v0  ;;  %v10571_v19 = vadd.f32 %v4424_v42, %v4281_v26  ;;  %v10574_v9 = vadd.f32 %v4426_v33, %v4283_v56  ;;  %v10579_v5 = vadd.f32 %v4427_v30, %v4284_v55  ;;  %v4279_v56 = vld [vmem:[#allocation2 + $0x3f] sm:$0x1] }
0x153e   :  { %v10582_v7 = vadd.f32 %v4428_v14, %v4285_v43  ;;  %v4419_v47 = vrot.slane %v10563_v36, 3  ;;  %v10593_v40 = vadd.f32 %v4417_v1, %v4273_v23  ;;  %v10595_v61 = vadd.f32 %v4425_v28, %v4282_v4  ;;  %v4287_v14 = vld [vmem:[#allocation2 + $0x7f] sm:$0x1] }
0x153f   :  { %8103 = vtanh.f32 %v10571_v19  ;;  %v4418_v10 = vrot.slane %v10563_v36, 2  ;;  %v4420_v58 = vrot.slane %v10563_v36, 4  ;;  %v4421_v15 = vrot.slane %v10563_v36, 5 }
0x1540   :  { %8105 = vtanh.f32 %v10574_v9  ;;  %v10601_v25 = vadd.f32 %v4419_v47, %v4275_v62  ;;  %v4429_v59 = vrot.slane %v10561_v44, 6  ;;  %v4422_v16 = vrot.slane %v10563_v36, 6 }
0x1541   :  { %8107 = vtanh.f32 %v10579_v5  ;;  %v10606_v54 = vadd.f32 %v4418_v10, %v4274_v13  ;;  %v10610_v46 = vadd.f32 %v4420_v58, %v4276_v35  ;;  %v10614_v48 = vadd.f32 %v4421_v15, %v4277_v2 }
0x1542   :  { %8109 = vtanh.f32 %v10582_v7  ;;  %v10618_v63 = vadd.f32 %v4429_v59, %v4286_v50  ;;  %v4423_v37 = vrot.slane %v10563_v36, 7  ;;  %v10623_v42 = vadd.f32 %v4422_v16, %v4278_v17 }
0x1543   :  { %8111 = vtanh.f32 %v10588_v38  ;;  %v4430_v30 = vrot.slane %v10561_v44, 7  ;;  %v6661_v23 = vmul.f32 -1.442695, %v10566_v0  ;;  %v6662_v47 = vmul.f32 -1.442695, %v10571_v19 }
0x1544   :  { %8113 = vtanh.f32 %v10593_v40  ;;  %v6665_v62 = vmul.f32 -1.442695, %v10579_v5  ;;  %v6666_v58 = vmul.f32 -1.442695, %v10582_v7  ;;  %v6653_v13 = vmul.f32 -1.442695, %v10588_v38 }
0x1545   :  { %8115 = vtanh.f32 %v10595_v61  ;;  %v10635_v43 = vadd.f32 %v4430_v30, %v4287_v14  ;;  %v6654_v0 = vmul.f32 -1.442695, %v10593_v40  ;;  %v6663_v15 = vmul.f32 -1.442695, %v10595_v61 }
0x1546   :  { %8117 = vtanh.f32 %v10601_v25  ;;  %v6655_v38 = vmul.f32 -1.442695, %v10606_v54  ;;  %v6657_v40 = vmul.f32 -1.442695, %v10610_v46  ;;  %v6667_v16 = vmul.f32 -1.442695, %v10618_v63 }
0x1547   :  { %v8102_v11 = vpop.eup %8101  ;;  %8119 = vtanh.f32 %v10606_v54 }
0x1548   :  { %4623 = vrot.lane.b32.xlu1 %v8102_v11, %s8294_s0  ;;  %8121 = vtanh.f32 %v10610_v46  ;;  %v10630_v11 = vadd.f32 %v4423_v37, %v4279_v56  ;;  %v6659_v46 = vmul.f32 -1.442695, %v10623_v42 }
0x1549   :  { %v8104_v53 = vpop.eup %8103  ;;  %8123 = vtanh.f32 %v10614_v48 }
0x154a   :  { %4625 = vrot.lane.b32.xlu0 %v8104_v53, %s8294_s0  ;;  %v8106_v45 = vpop.eup %8105  ;;  %8125 = vtanh.f32 %v10618_v63 }
0x154b   :  { %v8108_v31 = vpop.eup %8107  ;;  %8127 = vtanh.f32 %v10623_v42 }
0x154c   :  { %v8110_v24 = vpop.eup %8109  ;;  %8129 = vtanh.f32 %v10630_v11 }
0x154d   :  { %v8112_v32 = vpop.eup %8111  ;;  %8131 = vtanh.f32 %v10635_v43 }
0x154e   :  { %4629 = vrot.lane.b32.xlu0 %v8106_v45, %s8294_s0  ;;  %v8114_v34 = vpop.eup %8113  ;;  %4607 = vrot.lane.b32.xlu1 %v8112_v32, %s8294_s0  ;;  %8133 = vpow2.f32 %v6661_v23  ;;  %v6664_v45 = vmul.f32 -1.442695, %v10574_v9  ;;  %v6656_v9 = vmul.f32 -1.442695, %v10601_v25  ;;  %v6658_v25 = vmul.f32 -1.442695, %v10614_v48 }
0x154f   :  { %v8116_v26 = vpop.eup %8115  ;;  %8135 = vpow2.f32 %v6662_v47 }
0x1550   :  { %v8118_v33 = vpop.eup %8117  ;;  %8137 = vpow2.f32 %v6664_v45 }
0x1551   :  { %v8120_v36 = vpop.eup %8119  ;;  %8139 = vpow2.f32 %v6665_v62 }
0x1552   :  { %4631 = vrot.lane.b32.xlu0 %v8108_v31, %s8294_s0  ;;  %4627 = vrot.lane.b32.xlu1 %v8116_v26, %s8294_s0  ;;  %v8122_v55 = vpop.eup %8121 }
0x1553   :  { %v8124_v1 = vpop.eup %8123 }
0x1554   :  { %v8126_v53 = vpop.eup %8125 }
0x1555   :  { %v8128_v44 = vpop.eup %8127 }
0x1556   :  { %4633 = vrot.lane.b32.xlu0 %v8110_v24, %s8294_s0  ;;  %4611 = vrot.lane.b32.xlu1 %v8120_v36, %s8294_s0  ;;  %v8130_v6 = vpop.eup %8129  ;;  %v6660_v36 = vmul.f32 -1.442695, %v10630_v11 }
0x1557   :  { %v8132_v28 = vpop.eup %8131 }
0x1558   :  { %v8134_v4 = vpop.eup %8133 }
0x1559   :  { %v4519_v10 = vadd.f32 1.0, %v8134_v4  ;;  %v8136_v31 = vpop.eup %8135 }
0x155a   :  { %4609 = vrot.lane.b32.xlu0 %v8114_v34, %s8294_s0  ;;  %4617 = vrot.lane.b32.xlu1 %v8124_v1, %s8294_s0  ;;  %v4520_v35 = vadd.f32 1.0, %v8136_v31  ;;  %v8138_v19 = vpop.eup %8137 }
0x155b   :  { %8141 = vrcp.f32 %v4519_v10  ;;  %v8140_v5 = vpop.eup %8139  ;;  %v4522_v59 = vadd.f32 1.0, %v8138_v19 }
0x155c   :  { %8143 = vpow2.f32 %v6666_v58  ;;  %v4523_v61 = vadd.f32 1.0, %v8140_v5 }
0x155d   :  { %8145 = vpow2.f32 %v6653_v13 }
0x155e   :  { %4613 = vrot.lane.b32.xlu0 %v8118_v33, %s8294_s0  ;;  %4619 = vrot.lane.b32.xlu1 %v8128_v44, %s8294_s0  ;;  %8147 = vpow2.f32 %v6654_v0 }
0x155f   :  { %8149 = vrcp.f32 %v4520_v35 }
0x1560   :  { %8151 = vpow2.f32 %v6663_v15 }
0x1561   :  { %8153 = vpow2.f32 %v6656_v9 }
0x1562   :  { %4615 = vrot.lane.b32.xlu0 %v8122_v55, %s8294_s0  ;;  %4621 = vrot.lane.b32.xlu1 %v8130_v6, %s8294_s0  ;;  %8155 = vrcp.f32 %v4522_v59 }
0x1563   :  { %8157 = vpow2.f32 %v6655_v38 }
0x1564   :  { %8159 = vpow2.f32 %v6657_v40 }
0x1565   :  { %v10654_v24 = vpop.eup %8141  ;;  %8161 = vrcp.f32 %v4523_v61 }
0x1566   :  { %4635 = vrot.lane.b32.xlu0 %v8126_v53, %s8294_s0  ;;  %4637 = vrot.lane.b32.xlu1 %v8132_v28, %s8294_s0  ;;  %v8144_v50 = vpop.eup %8143  ;;  %8163 = vpow2.f32 %v6658_v25  ;;  %v6668_v28 = vmul.f32 -1.442695, %v10635_v43 }
0x1567   :  { %v8146_v32 = vpop.eup %8145  ;;  %v4524_v34 = vadd.f32 1.0, %v8144_v50  ;;  %8165 = vpow2.f32 %v6667_v16 }
0x1568   :  { %v8148_v54 = vpop.eup %8147  ;;  %v4511_v26 = vadd.f32 1.0, %v8146_v32 }
0x1569   :  { %v10662_v17 = vpop.eup %8149  ;;  %8167 = vrcp.f32 %v4524_v34  ;;  %v4512_v48 = vadd.f32 1.0, %v8148_v54 }
0x156a   :  { %v8152_v56 = vpop.eup %8151  ;;  %8169 = vpow2.f32 %v6659_v46 }
0x156b   :  { %v8154_v30 = vpop.eup %8153  ;;  %8171 = vrcp.f32 %v4511_v26  ;;  %v4521_v14 = vadd.f32 1.0, %v8152_v56 }
0x156c   :  { %v10667_v63 = vpop.eup %8155  ;;  %8173 = vrcp.f32 %v4512_v48  ;;  %v4514_v53 = vadd.f32 1.0, %v8154_v30 }
0x156d   :  { %v8158_v1 = vpop.eup %8157  ;;  %8175 = vpow2.f32 %v6660_v36 }
0x156e   :  { %v8160_v44 = vpop.eup %8159  ;;  %8177 = vrcp.f32 %v4521_v14  ;;  %v4513_v47 = vadd.f32 1.0, %v8158_v1 }
0x156f   :  { %v10672_v6 = vpop.eup %8161  ;;  %8179 = vrcp.f32 %v4514_v53  ;;  %v4515_v4 = vadd.f32 1.0, %v8160_v44 }
0x1570   :  { %v8164_v45 = vpop.eup %8163  ;;  %8181 = vpow2.f32 %v6668_v28 }
0x1571   :  { %v8166_v62 = vpop.eup %8165  ;;  %8183 = vrcp.f32 %v4513_v47  ;;  %v4516_v43 = vadd.f32 1.0, %v8164_v45 }
0x1572   :  { %8185 = vrcp.f32 %v4515_v4  ;;  %v4525_v0 = vadd.f32 1.0, %v8166_v62 }
0x1573   :  { %v10677_v10 = vpop.eup %8167  ;;  %8187 = vrcp.f32 %v4516_v43 }
0x1574   :  { %v8170_v13 = vpop.eup %8169  ;;  %8189 = vrcp.f32 %v4525_v0 }
0x1575   :  { %v10680_v35 = vpop.eup %8171 }
0x1576   :  { %v10683_v15 = vpop.eup %8173 }
0x1577   :  { %v8176_v38 = vpop.eup %8175 }
0x1578   :  { %v4518_v32 = vadd.f32 1.0, %v8176_v38 }
0x15ba   :  { %v4624_v7 = vpop.permute.xlu1 %4623 }
0x15bb   :  { %v4663_v2 = vmul.f32 %v10654_v24, %v4624_v7  ;;  %v4517_v7 = vadd.f32 1.0, %v8170_v13  ;;  %v4584_v13 = vmul.f32 %v10662_v17, %v10438_v60  ;;  %v4588_v60 = vmul.f32 %v10677_v10, %v10454_v27 }
0x15bc   :  { %v4626_v37 = vpop.permute.xlu0 %4625 }
0x15bd   :  { %4703 = vrot.lane.b32.xlu1 %v4663_v2, %s8295_s4  ;;  %v4664_v33 = vmul.f32 %v10662_v17, %v4626_v37  ;;  %v10688_v2 = vpop.eup %8177  ;;  %8191 = vrcp.f32 %v4517_v7 }
0x15be   :  { %v10691_v61 = vpop.eup %8179  ;;  %8193 = vrcp.f32 %v4518_v32  ;;  %v4585_v27 = vmul.f32 %v10688_v2, %v10473_v22 }
0x15bf   :  { %4705 = vrot.lane.b32.xlu0 %v4664_v33, %s8295_s4  ;;  %v8182_v34 = vpop.eup %8181 }
0x15c0   :  { %v4630_v55 = vpop.permute.xlu0 %4629  ;;  %v4608_v19 = vpop.permute.xlu1 %4607  ;;  %v4526_v48 = vadd.f32 1.0, %v8182_v34  ;;  %v4576_v34 = vmul.f32 %v10683_v15, %v10464_v52 }
0x15c1   :  { %v4666_v42 = vmul.f32 %v10667_v63, %v4630_v55  ;;  %v4655_v9 = vmul.f32 %v10680_v35, %v4608_v19  ;;  %v10696_v54 = vpop.eup %8183 }
0x15c2   :  { %v10699_v37 = vpop.eup %8185  ;;  %8195 = vrcp.f32 %v4526_v48  ;;  %v4577_v52 = vmul.f32 %v10696_v54, %v10484_v39 }
0x15c3   :  { %4709 = vrot.lane.b32.xlu0 %v4666_v42, %s8295_s4  ;;  %4687 = vrot.lane.b32.xlu1 %v4655_v9, %s8295_s4  ;;  %v10704_v30 = vpop.eup %8187  ;;  %v4586_v9 = vmul.f32 %v10667_v63, %v10443_v12  ;;  %v4575_v12 = vmul.f32 %v10680_v35, %v10462_v29  ;;  %v4578_v29 = vmul.f32 %v10691_v61, %v10475_v21 }
0x15c4   :  { %v4632_v23 = vpop.permute.xlu0 %4631  ;;  %v4628_v40 = vpop.permute.xlu1 %4627  ;;  %v4579_v22 = vmul.f32 %v10699_v37, %v10486_v57  ;;  %v4580_v21 = vmul.f32 %v10704_v30, %v10495_v3 }
0x15c5   :  { %v4667_v11 = vmul.f32 %v10672_v6, %v4632_v23  ;;  %v4665_v50 = vmul.f32 %v10688_v2, %v4628_v40  ;;  %v10707_v55 = vpop.eup %8189 }
0x15c6   :  { %v4589_v39 = vmul.f32 %v10707_v55, %v10498_v20 }
0x15c7   :  { %4711 = vrot.lane.b32.xlu0 %v4667_v11, %s8295_s4  ;;  %4707 = vrot.lane.b32.xlu1 %v4665_v50, %s8295_s4  ;;  %v10712_v53 = vpop.eup %8191 }
0x15c8   :  { %v4634_v58 = vpop.permute.xlu0 %4633  ;;  %v4612_v46 = vpop.permute.xlu1 %4611 }
0x15c9   :  { %v4668_v31 = vmul.f32 %v10677_v10, %v4634_v58  ;;  %v4657_v26 = vmul.f32 %v10696_v54, %v4612_v46  ;;  %v10717_v23 = vpop.eup %8193  ;;  %v4583_v58 = vmul.f32 %v10654_v24, %v10433_v49  ;;  %v4587_v49 = vmul.f32 %v10672_v6, %v10449_v18 }
0x15ca   :  { %v4582_v20 = vmul.f32 %v10717_v23, %v10512_v8 }
0x15cb   :  { %4713 = vrot.lane.b32.xlu0 %v4668_v31, %s8295_s4  ;;  %4691 = vrot.lane.b32.xlu1 %v4657_v26, %s8295_s4 }
0x15cc   :  { %v4610_v5 = vpop.permute.xlu0 %4609  ;;  %v4618_v36 = vpop.permute.xlu1 %4617 }
0x15cd   :  { %v4656_v59 = vmul.f32 %v10683_v15, %v4610_v5  ;;  %v4660_v42 = vmul.f32 %v10704_v30, %v4618_v36  ;;  %v10721_v45 = vpop.eup %8195 }
0x15cf   :  { %4689 = vrot.lane.b32.xlu0 %v4656_v59, %s8295_s4  ;;  %4697 = vrot.lane.b32.xlu1 %v4660_v42, %s8295_s4 }
0x15d0   :  { %v4614_v25 = vpop.permute.xlu0 %4613  ;;  %v4620_v44 = vpop.permute.xlu1 %4619 }
0x15d1   :  { %v4658_v16 = vmul.f32 %v10691_v61, %v4614_v25  ;;  %v4661_v28 = vmul.f32 %v10712_v53, %v4620_v44 }
0x15d3   :  { %4693 = vrot.lane.b32.xlu0 %v4658_v16, %s8295_s4  ;;  %4699 = vrot.lane.b32.xlu1 %v4661_v28, %s8295_s4 }
0x15d4   :  { %v4616_v33 = vpop.permute.xlu0 %4615  ;;  %v4622_v11 = vpop.permute.xlu1 %4621 }
0x15d5   :  { %v4659_v56 = vmul.f32 %v10699_v37, %v4616_v33  ;;  %v4662_v47 = vmul.f32 %v10717_v23, %v4622_v11 }
0x15d7   :  { %4695 = vrot.lane.b32.xlu0 %v4659_v56, %s8295_s4  ;;  %4701 = vrot.lane.b32.xlu1 %v4662_v47, %s8295_s4 }
0x15d8   :  { %v4636_v14 = vpop.permute.xlu0 %4635  ;;  %v4638_v4 = vpop.permute.xlu1 %4637 }
0x15d9   :  { %v4669_v1 = vmul.f32 %v10707_v55, %v4636_v14  ;;  %v4670_v62 = vmul.f32 %v10721_v45, %v4638_v4 }
0x15db   :  { %4715 = vrot.lane.b32.xlu0 %v4669_v1, %s8295_s4  ;;  %4717 = vrot.lane.b32.xlu1 %v4670_v62, %s8295_s4 }
0x162f   :  { %v4704_v31 = vpop.permute.xlu1 %4703 }
0x1630   :  { %v4743_v43 = vadd.f32 %v4704_v31, %v4583_v58 }
0x1631   :  { %v4706_v0 = vpop.permute.xlu0 %4705 }
0x1632   :  { %8197 = vtanh.f32 %v4743_v43  ;;  %v4744_v19 = vadd.f32 %v4706_v0, %v4584_v13  ;;  %v4581_v13 = vmul.f32 %v10712_v53, %v10505_v41  ;;  %v4590_v41 = vmul.f32 %v10721_v45, %v10519_v51 }
0x1634   :  { %8199 = vtanh.f32 %v4744_v19 }
0x1635   :  { %v4710_v59 = vpop.permute.xlu0 %4709  ;;  %v4688_v32 = vpop.permute.xlu1 %4687 }
0x1636   :  { %v4746_v7 = vadd.f32 %v4710_v59, %v4586_v9  ;;  %v4735_v18 = vadd.f32 %v4688_v32, %v4575_v12 }
0x1638   :  { %8201 = vtanh.f32 %v4746_v7 }
0x1639   :  { %v4712_v38 = vpop.permute.xlu0 %4711  ;;  %v4708_v56 = vpop.permute.xlu1 %4707 }
0x163a   :  { %v4747_v40 = vadd.f32 %v4712_v38, %v4587_v49  ;;  %v4745_v48 = vadd.f32 %v4708_v56, %v4585_v27 }
0x163c   :  { %v8198_v5 = vpop.eup %8197  ;;  %8203 = vtanh.f32 %v4747_v40 }
0x163d   :  { %4799 = vrot.lane.b32.xlu1 %v8198_v5, %s8294_s0  ;;  %v4714_v50 = vpop.permute.xlu0 %4713  ;;  %v4692_v1 = vpop.permute.xlu1 %4691 }
0x163e   :  { %v8200_v25 = vpop.eup %8199  ;;  %v4748_v16 = vadd.f32 %v4714_v50, %v4588_v60  ;;  %v4737_v44 = vadd.f32 %v4692_v1, %v4577_v52 }
0x163f   :  { %4801 = vrot.lane.b32.xlu0 %v8200_v25, %s8294_s0 }
0x1640   :  { %8205 = vtanh.f32 %v4748_v16 }
0x1641   :  { %v4690_v46 = vpop.permute.xlu0 %4689  ;;  %8207 = vtanh.f32 %v4735_v18  ;;  %v4698_v4 = vpop.permute.xlu1 %4697 }
0x1642   :  { %v8202_v26 = vpop.eup %8201  ;;  %v4736_v33 = vadd.f32 %v4690_v46, %v4576_v34  ;;  %v4740_v58 = vadd.f32 %v4698_v4, %v4580_v21 }
0x1643   :  { %4805 = vrot.lane.b32.xlu0 %v8202_v26, %s8294_s0 }
0x1644   :  { %8209 = vtanh.f32 %v4736_v33 }
0x1645   :  { %v4694_v36 = vpop.permute.xlu0 %4693  ;;  %8211 = vtanh.f32 %v4745_v48  ;;  %v4700_v3 = vpop.permute.xlu1 %4699 }
0x1646   :  { %v8204_v42 = vpop.eup %8203  ;;  %v4738_v14 = vadd.f32 %v4694_v36, %v4578_v29  ;;  %v4741_v19 = vadd.f32 %v4700_v3, %v4581_v13 }
0x1647   :  { %4807 = vrot.lane.b32.xlu0 %v8204_v42, %s8294_s0 }
0x1648   :  { %8213 = vtanh.f32 %v4738_v14 }
0x1649   :  { %v4696_v28 = vpop.permute.xlu0 %4695  ;;  %8215 = vtanh.f32 %v4737_v44  ;;  %v4702_v5 = vpop.permute.xlu1 %4701 }
0x164a   :  { %v8206_v11 = vpop.eup %8205  ;;  %v4739_v47 = vadd.f32 %v4696_v28, %v4579_v22  ;;  %v4742_v7 = vadd.f32 %v4702_v5, %v4582_v20 }
0x164b   :  { %4809 = vrot.lane.b32.xlu0 %v8206_v11, %s8294_s0  ;;  %v8208_v62 = vpop.eup %8207 }
0x164c   :  { %8217 = vtanh.f32 %v4739_v47  ;;  %4783 = vrot.lane.b32.xlu1 %v8208_v62, %s8294_s0 }
0x164d   :  { %v4716_v31 = vpop.permute.xlu0 %4715  ;;  %8219 = vtanh.f32 %v4740_v58  ;;  %v4718_v38 = vpop.permute.xlu1 %4717 }
0x164e   :  { %v8210_v43 = vpop.eup %8209  ;;  %v4749_v57 = vadd.f32 %v4716_v31, %v4589_v39  ;;  %v4750_v60 = vadd.f32 %v4718_v38, %v4590_v41 }
0x164f   :  { %4785 = vrot.lane.b32.xlu0 %v8210_v43, %s8294_s0  ;;  %v8212_v0 = vpop.eup %8211 }
0x1650   :  { %8221 = vtanh.f32 %v4749_v57  ;;  %4803 = vrot.lane.b32.xlu1 %v8212_v0, %s8294_s0 }
0x1651   :  { %8223 = vtanh.f32 %v4741_v19 }
0x1652   :  { %v8214_v9 = vpop.eup %8213  ;;  %8225 = vtanh.f32 %v4742_v7 }
0x1653   :  { %4789 = vrot.lane.b32.xlu0 %v8214_v9, %s8294_s0  ;;  %v8216_v59 = vpop.eup %8215  ;;  %8227 = vtanh.f32 %v4750_v60 }
0x1654   :  { %4787 = vrot.lane.b32.xlu1 %v8216_v59, %s8294_s0 }
0x1656   :  { %v8218_v49 = vpop.eup %8217 }
0x1657   :  { %4791 = vrot.lane.b32.xlu0 %v8218_v49, %s8294_s0  ;;  %v8220_v40 = vpop.eup %8219 }
0x1658   :  { %4793 = vrot.lane.b32.xlu1 %v8220_v40, %s8294_s0 }
0x165a   :  { %v8222_v50 = vpop.eup %8221 }
0x165b   :  { %4811 = vrot.lane.b32.xlu0 %v8222_v50, %s8294_s0  ;;  %v8224_v8 = vpop.eup %8223 }
0x165c   :  { %4795 = vrot.lane.b32.xlu1 %v8224_v8, %s8294_s0  ;;  %v8226_v25 = vpop.eup %8225 }
0x165d   :  { %v8228_v16 = vpop.eup %8227 }
0x1660   :  { %4797 = vrot.lane.b32.xlu1 %v8226_v25, %s8294_s0 }
0x1664   :  { %4813 = vrot.lane.b32.xlu1 %v8228_v16, %s8294_s0 }
0x16af   :  { %v4800_v34 = vpop.permute.xlu1 %4799 }
0x16b1   :  { %v4802_v51 = vpop.permute.xlu0 %4801 }
0x16b2   :  { %v10781_v42 = vmul.f32 %v10662_v17, %v4802_v51 }
0x16b5   :  { %v4806_v12 = vpop.permute.xlu0 %4805 }
0x16b6   :  { %v10808_v21 = vmul.f32 %v10667_v63, %v4806_v12 }
0x16b9   :  { %v4808_v32 = vpop.permute.xlu0 %4807 }
0x16ba   :  { %v10812_v62 = vmul.f32 %v10672_v6, %v4808_v32  ;;  %v4881_v6 = vrot.slane %v10808_v21, 5 }
0x16bc   :  { %v4883_v0 = vrot.slane %v10812_v62, 4 }
0x16bd   :  { %v4810_v18 = vpop.permute.xlu0 %4809 }
0x16be   :  { %v4784_v46 = vpop.permute.xlu1 %4783  ;;  %v10818_v43 = vmul.f32 %v10677_v10, %v4810_v18 }
0x16bf   :  { %v10784_v14 = vmul.f32 %v10680_v35, %v4784_v46 }
0x16c0   :  { %v4885_v10 = vrot.slane %v10818_v43, 3 }
0x16c1   :  { %v4786_v26 = vpop.permute.xlu0 %4785 }
0x16c2   :  { %v10774_v33 = vmul.f32 %v10683_v15, %v4786_v26  ;;  %v4804_v27 = vpop.permute.xlu1 %4803 }
0x16c3   :  { %v10790_v15 = vmul.f32 %v10688_v2, %v4804_v27 }
0x16c4   :  { %v4863_v29 = vrot.slane %v10774_v33, 7 }
0x16c5   :  { %v4790_v56 = vpop.permute.xlu0 %4789  ;;  %v4879_v2 = vrot.slane %v10790_v15, 6 }
0x16c6   :  { %v10778_v48 = vmul.f32 %v10691_v61, %v4790_v56  ;;  %v4788_v36 = vpop.permute.xlu1 %4787  ;;  %v4864_v61 = vsel %vm848_vm1, %v4863_v29, %v10784_v14 }
0x16c7   :  { %v10787_v52 = vmul.f32 %v10696_v54, %v4788_v36  ;;  %v4877_v54 = vrot.slane %v10781_v42, 7 }
0x16c8   :  { %v4867_v44 = vrot.slane %v10778_v48, 5 }
0x16c9   :  { %v4792_v1 = vpop.permute.xlu0 %4791  ;;  %v4865_v17 = vrot.slane %v10787_v52, 6 }
0x16ca   :  { %v10793_v22 = vmul.f32 %v10699_v37, %v4792_v1  ;;  %v4794_v28 = vpop.permute.xlu1 %4793  ;;  %v10805_v37 = vmul.f32 %v10654_v24, %v4800_v34 }
0x16cb   :  { %v4836_v11 = vmul.f32 %v10704_v30, %v4794_v28  ;;  %v4866_v47 = vsel %vm851_vm2, %v4865_v17, %v4864_v61 }
0x16cc   :  { %v4869_v35 = vrot.slane %v10793_v22, 4  ;;  %v4868_v4 = vsel %vm854_vm3, %v4867_v44, %v4866_v47  ;;  %v4878_v30 = vsel %vm848_vm1, %v4877_v54, %v10805_v37 }
0x16cd   :  { %v4812_v39 = vpop.permute.xlu0 %4811  ;;  %v4871_v24 = vrot.slane %v4836_v11, 3  ;;  %v4880_v63 = vsel %vm851_vm2, %v4879_v2, %v4878_v30 }
0x16ce   :  { %v4796_v58 = vpop.permute.xlu1 %4795  ;;  %v4870_v31 = vsel %vm857_vm4, %v4869_v35, %v4868_v4  ;;  %v10823_v13 = vmul.f32 %v10707_v55, %v4812_v39  ;;  %v4882_v20 = vsel %vm854_vm3, %v4881_v6, %v4880_v63 }
0x16cf   :  { %v4837_v57 = vmul.f32 %v10712_v53, %v4796_v58  ;;  %v4872_v3 = vsel %vm860_vm5, %v4871_v24, %v4870_v31  ;;  %v4884_v7 = vsel %vm857_vm4, %v4883_v0, %v4882_v20 }
0x16d0   :  { %v4887_v53 = vrot.slane %v10823_v13, 2  ;;  %v4886_v41 = vsel %vm860_vm5, %v4885_v10, %v4884_v7 }
0x16d1   :  { %v4873_v19 = vrot.slane %v4837_v57, 2 }
0x16d2   :  { %v4798_v9 = vpop.permute.xlu1 %4797  ;;  %v4888_v60 = vsel %vm863_vm6, %v4887_v53, %v4886_v41 }
0x16d3   :  { %v4838_v5 = vmul.f32 %v10717_v23, %v4798_v9  ;;  %v4874_v59 = vsel %vm863_vm6, %v4873_v19, %v4872_v3 }
0x16d5   :  { %v4875_v55 = vrot.slane %v4838_v5, 1 }
0x16d6   :  { %v4814_v49 = vpop.permute.xlu1 %4813 }
0x16d7   :  { %v10836_v38 = vmul.f32 %v10721_v45, %v4814_v49  ;;  %v4876_v40 = vsel %vm866_vm7, %v4875_v55, %v4874_v59 }
0x16d8   :  { %4891 = vrot.lane.b32.xlu0 %v4876_v40, %s8295_s4 }
0x16d9   :  { %v4889_v23 = vrot.slane %v10836_v38, 1 }
0x16db   :  { %v4890_v50 = vsel %vm866_vm7, %v4889_v23, %v4888_v60 }
0x16dc   :  { %4893 = vrot.lane.b32.xlu1 %v4890_v50, %s8295_s4 }
0x174a   :  { %v4892_v8 = vpop.permute.xlu0 %4891 }
0x174b   :  { %v4897_v25 = vsel %vm304_vm8, %v4892_v8, 0.0 }
0x174c   :  { %4898 = vadd.xlane.f32.xlu0 %v4897_v25 }
0x174e   :  { %v4894_v16 = vpop.permute.xlu1 %4893 }
0x174f   :  { %v4900_v45 = vsel %vm304_vm8, %v4894_v16, 0.0 }
0x1750   :  { %4901 = vadd.xlane.f32.xlu1 %v4900_v45 }
0x17d9   :  { %v4899_v51 = vpop.xlane.xlu0 %4898 }
0x17da   :  { %v4904_v12 = vmul.f32 0.03125, %v4899_v51 }
0x17dc   :  { %v4908_v32 = vrot.slane %v4904_v12, 1  ;;  %v4909_v34 = vrot.slane %v4904_v12, 2  ;;  %v4910_v18 = vrot.slane %v4904_v12, 3  ;;  %v4911_v46 = vrot.slane %v4904_v12, 4 }
0x17dd   :  { %v4902_v26 = vpop.xlane.xlu1 %4901  ;;  %v4912_v27 = vrot.slane %v4904_v12, 5  ;;  %v4913_v56 = vrot.slane %v4904_v12, 6  ;;  %v4914_v29 = vrot.slane %v4904_v12, 7  ;;  %v10847_v36 = vsub.f32 %v10784_v14, %v4904_v12 }
0x17de   :  { %v4905_v1 = vmul.f32 0.03125, %v4902_v26  ;;  %v10850_v61 = vsub.f32 %v10774_v33, %v4908_v32  ;;  %v10853_v44 = vsub.f32 %v10787_v52, %v4909_v34  ;;  %v10856_v17 = vsub.f32 %v10778_v48, %v4910_v18 }
0x17df   :  { %v10859_v28 = vsub.f32 %v10793_v22, %v4911_v46  ;;  %v10861_v35 = vsub.f32 %v4836_v11, %v4912_v27  ;;  %v10863_v54 = vsub.f32 %v4837_v57, %v4913_v56  ;;  %v10865_v2 = vsub.f32 %v4838_v5, %v4914_v29 }
0x17e0   :  { %v4955_v14 = vmul.f32 %v10850_v61, %v10850_v61  ;;  %v4956_v33 = vmul.f32 %v10853_v44, %v10853_v44  ;;  %v4957_v52 = vmul.f32 %v10856_v17, %v10856_v17  ;;  %v4954_v48 = vmul.f32 %v10847_v36, %v10847_v36 }
0x17e1   :  { %v4958_v22 = vmul.f32 %v10859_v28, %v10859_v28  ;;  %v4959_v11 = vmul.f32 %v10861_v35, %v10861_v35  ;;  %v4960_v47 = vmul.f32 %v10863_v54, %v10863_v54  ;;  %v4961_v4 = vmul.f32 %v10865_v2, %v10865_v2 }
0x17e2   :  { %v4986_v39 = vrot.slane %v4955_v14, 7  ;;  %v4988_v58 = vrot.slane %v4956_v33, 6  ;;  %v4915_v31 = vrot.slane %v4905_v1, 1  ;;  %v4990_v30 = vrot.slane %v4957_v52, 5 }
0x17e3   :  { %v4992_v24 = vrot.slane %v4958_v22, 4  ;;  %v4994_v57 = vrot.slane %v4959_v11, 3  ;;  %v4996_v63 = vrot.slane %v4960_v47, 2  ;;  %v4916_v3 = vrot.slane %v4905_v1, 2 }
0x17e4   :  { %v4987_v6 = vsel %vm848_vm1, %v4986_v39, %v4954_v48  ;;  %v4917_v0 = vrot.slane %v4905_v1, 3  ;;  %v4918_v19 = vrot.slane %v4905_v1, 4  ;;  %v4919_v20 = vrot.slane %v4905_v1, 5  ;;  %v10951_v39 = vld [vmem:[%s11207_s6] ss:$0 sm:$0xff] }
0x17e5   :  { %v4989_v9 = vsel %vm851_vm2, %v4988_v58, %v4987_v6  ;;  %v4920_v10 = vrot.slane %v4905_v1, 6  ;;  %v4921_v5 = vrot.slane %v4905_v1, 7  ;;  %v10887_v59 = vsub.f32 %v10805_v37, %v4905_v1  ;;  %v5130_v58 = vld [vmem:[%s11208_s7] sm:$0xff] }
0x17e6   :  { %v4991_v53 = vsel %vm854_vm3, %v4990_v30, %v4989_v9  ;;  %v10890_v55 = vsub.f32 %v10781_v42, %v4915_v31  ;;  %v10893_v7 = vsub.f32 %v10790_v15, %v4916_v3  ;;  %v10897_v41 = vsub.f32 %v10808_v21, %v4917_v0  ;;  %v5131_v31 = vld [vmem:[%s11208_s7 + $0x8] sm:$0xff]  ;;  %v5132_v30 = vld [vmem:[%s11208_s7 + $0x10] sm:$0xff] }
0x17e7   :  { %v4993_v49 = vsel %vm857_vm4, %v4992_v24, %v4991_v53  ;;  %v10900_v40 = vsub.f32 %v10812_v62, %v4918_v19  ;;  %v10903_v60 = vsub.f32 %v10818_v43, %v4919_v20  ;;  %v4998_v23 = vrot.slane %v4961_v4, 1  ;;  %v10944_v4 = vld [vmem:[%s11206_s5] ss:$0 sm:$0xff] }
0x17e8   :  { %v4995_v37 = vsel %vm860_vm5, %v4994_v57, %v4993_v49  ;;  %v10907_v42 = vsub.f32 %v10823_v13, %v4920_v10  ;;  %v10910_v15 = vsub.f32 %v10836_v38, %v4921_v5  ;;  %v4963_v21 = vmul.f32 %v10890_v55, %v10890_v55  ;;  %v5133_v57 = vld [vmem:[%s11208_s7 + $0x18] sm:$0xff] }
0x17e9   :  { %v4997_v50 = vsel %vm863_vm6, %v4996_v63, %v4995_v37  ;;  %v4964_v62 = vmul.f32 %v10893_v7, %v10893_v7  ;;  %v4965_v43 = vmul.f32 %v10897_v41, %v10897_v41  ;;  %v4966_v13 = vmul.f32 %v10900_v40, %v10900_v40 }
0x17ea   :  { %v4999_v8 = vsel %vm866_vm7, %v4998_v23, %v4997_v50  ;;  %v4962_v38 = vmul.f32 %v10887_v59, %v10887_v59  ;;  %v4967_v25 = vmul.f32 %v10903_v60, %v10903_v60  ;;  %v5000_v16 = vrot.slane %v4963_v21, 7 }
0x17eb   :  { %5014 = vrot.lane.b32.xlu0 %v4999_v8, %s8295_s4  ;;  %v5002_v45 = vrot.slane %v4964_v62, 6  ;;  %v4968_v51 = vmul.f32 %v10907_v42, %v10907_v42  ;;  %v4969_v12 = vmul.f32 %v10910_v15, %v10910_v15  ;;  %v5004_v34 = vrot.slane %v4965_v43, 5 }
0x17ec   :  { %v5001_v32 = vsel %vm848_vm1, %v5000_v16, %v4962_v38  ;;  %v5006_v46 = vrot.slane %v4966_v13, 4  ;;  %v5008_v27 = vrot.slane %v4967_v25, 3  ;;  %v7095_v24 = vpack.c.bf16 %v5131_v31, %v5130_v58 }
0x17ed   :  { %v5003_v18 = vsel %vm851_vm2, %v5002_v45, %v5001_v32  ;;  %v5010_v29 = vrot.slane %v4968_v51, 2  ;;  %v5012_v14 = vrot.slane %v4969_v12, 1  ;;  %v7099_v63 = vpack.c.bf16 %v5133_v57, %v5132_v30 }
0x17ee   :  { %v5005_v26 = vsel %vm854_vm3, %v5004_v34, %v5003_v18  ;;  %7096 = vmatprep.subr.bf16.mxu0 %v7095_v24 }
0x17ef   :  { %v5007_v56 = vsel %vm857_vm4, %v5006_v46, %v5005_v26  ;;  %7098 = vmatpush3.bf16.msra.mxu0 %v7095_v24 }
0x17f0   :  { %v5009_v1 = vsel %vm860_vm5, %v5008_v27, %v5007_v56  ;;  %7100 = vmatprep.subr.bf16.mxu0 %v7099_v63 }
0x17f1   :  { %v5011_v33 = vsel %vm863_vm6, %v5010_v29, %v5009_v1 }
0x17f2   :  { %v5013_v52 = vsel %vm866_vm7, %v5012_v14, %v5011_v33 }
0x17f3   :  { %5016 = vrot.lane.b32.xlu1 %v5013_v52, %s8295_s4  ;;  %7102 = vmatpush3.bf16.msra.mxu0 %v7099_v63 }
0x185d   :  { %v5015_v48 = vpop.permute.xlu0 %5014 }
0x185e   :  { %v5020_v22 = vsel %vm304_vm8, %v5015_v48, 0.0 }
0x185f   :  { %5021 = vadd.xlane.f32.xlu0 %v5020_v22 }
0x1865   :  { %v5017_v11 = vpop.permute.xlu1 %5016 }
0x1866   :  { %v5023_v47 = vsel %vm304_vm8, %v5017_v11, 0.0 }
0x1867   :  { %5024 = vadd.xlane.f32.xlu1 %v5023_v47 }
0x1875   :  { %5086 = vrot.lane.b32.xlu0 %v10944_v4, %s8296_s12 }
0x1878   :  { %5111 = vrot.lane.b32.xlu1 %v10951_v39, %s8296_s12 }
0x18ec   :  { %v5022_v6 = vpop.xlane.xlu0 %5021 }
0x18ed   :  { %v5026_v3 = vmul.f32 0.03125, %v5022_v6 }
0x18ef   :  { %v5028_v0 = vadd.f32 1e-05, %v5026_v3 }
0x18f0   :  { %v10967_v5 = vpop.permute.xlu0 %5086 }
0x18f1   :  { %8229 = vrsqrt.f32 %v5028_v0 }
0x18f4   :  { %v5025_v19 = vpop.xlane.xlu1 %5024 }
0x18f5   :  { %v5027_v9 = vmul.f32 0.03125, %v5025_v19 }
0x18f7   :  { %v5029_v20 = vadd.f32 1e-05, %v5027_v9 }
0x18f8   :  { %v10978_v32 = vpop.permute.xlu1 %5111 }
0x18f9   :  { %8231 = vrsqrt.f32 %v5029_v20 }
0x18fb   :  { %v8230_v10 = vpop.eup %8229 }
0x18fc   :  { %v5034_v53 = vrot.slane %v8230_v10, 1  ;;  %v5035_v49 = vrot.slane %v8230_v10, 2  ;;  %v5036_v37 = vrot.slane %v8230_v10, 3  ;;  %v5037_v23 = vrot.slane %v8230_v10, 4 }
0x18fd   :  { %v5038_v50 = vrot.slane %v8230_v10, 5  ;;  %v5039_v21 = vrot.slane %v8230_v10, 6  ;;  %v5040_v62 = vrot.slane %v8230_v10, 7  ;;  %v5064_v43 = vmul.f32 %v8230_v10, %v10847_v36 }
0x18fe   :  { %v5065_v8 = vmul.f32 %v5034_v53, %v10850_v61  ;;  %v5066_v13 = vmul.f32 %v5035_v49, %v10853_v44  ;;  %v5067_v38 = vmul.f32 %v5036_v37, %v10856_v17  ;;  %v5068_v25 = vmul.f32 %v5037_v23, %v10859_v28 }
0x18ff   :  { %v5069_v16 = vmul.f32 %v5038_v50, %v10861_v35  ;;  %v5070_v45 = vmul.f32 %v5039_v21, %v10863_v54  ;;  %v5071_v51 = vmul.f32 %v5040_v62, %v10865_v2  ;;  %v5089_v12 = vmul.f32 %v10967_v5, %v5064_v43 }
0x1900   :  { %v5090_v36 = vmul.f32 %v10967_v5, %v5065_v8  ;;  %v5091_v61 = vmul.f32 %v10967_v5, %v5066_v13  ;;  %v5092_v44 = vmul.f32 %v10967_v5, %v5067_v38  ;;  %v5093_v17 = vmul.f32 %v10967_v5, %v5068_v25 }
0x1901   :  { %v5094_v28 = vmul.f32 %v10967_v5, %v5069_v16  ;;  %v5095_v35 = vmul.f32 %v10967_v5, %v5070_v45  ;;  %v5096_v54 = vmul.f32 %v10967_v5, %v5071_v51  ;;  %v5114_v26 = vadd.f32 %v10978_v32, %v5089_v12 }
0x1902   :  { %v5115_v2 = vadd.f32 %v10978_v32, %v5090_v36  ;;  %v5116_v34 = vadd.f32 %v10978_v32, %v5091_v61  ;;  %v5117_v18 = vadd.f32 %v10978_v32, %v5092_v44  ;;  %v5118_v46 = vadd.f32 %v10978_v32, %v5093_v17 }
0x1903   :  { %v5119_v27 = vadd.f32 %v10978_v32, %v5094_v28  ;;  %v5120_v56 = vadd.f32 %v10978_v32, %v5095_v35  ;;  %v5121_v29 = vadd.f32 %v10978_v32, %v5096_v54  ;;  %v8232_v1 = vpop.eup %8231 }
0x1904   :  { %v5157_v14 = vrot.slane %v5115_v2, 7  ;;  %v5159_v33 = vrot.slane %v5116_v34, 6  ;;  %v5161_v52 = vrot.slane %v5117_v18, 5  ;;  %v5163_v48 = vrot.slane %v5118_v46, 4 }
0x1905   :  { %v5165_v22 = vrot.slane %v5119_v27, 3  ;;  %v5167_v11 = vrot.slane %v5120_v56, 2  ;;  %v5169_v47 = vrot.slane %v5121_v29, 1  ;;  %v5041_v58 = vrot.slane %v8232_v1, 1 }
0x1906   :  { %v5158_v31 = vsel %vm848_vm1, %v5157_v14, %v5114_v26  ;;  %v5042_v30 = vrot.slane %v8232_v1, 2  ;;  %v5043_v24 = vrot.slane %v8232_v1, 3  ;;  %v5044_v57 = vrot.slane %v8232_v1, 4 }
0x1907   :  { %v5160_v63 = vsel %vm851_vm2, %v5159_v33, %v5158_v31  ;;  %v5045_v6 = vrot.slane %v8232_v1, 5  ;;  %v5046_v3 = vrot.slane %v8232_v1, 6  ;;  %v5047_v0 = vrot.slane %v8232_v1, 7 }
0x1908   :  { %v5162_v19 = vsel %vm854_vm3, %v5161_v52, %v5160_v63  ;;  %v5072_v9 = vmul.f32 %v8232_v1, %v10887_v59  ;;  %v5073_v20 = vmul.f32 %v5041_v58, %v10890_v55  ;;  %v5074_v10 = vmul.f32 %v5042_v30, %v10893_v7  ;;  %v6671_v1 = vld [vmem:[%s11209_s8] ss:$0 sm:$0xff] }
0x1909   :  { %v5164_v53 = vsel %vm857_vm4, %v5163_v48, %v5162_v19  ;;  %v5075_v49 = vmul.f32 %v5043_v24, %v10897_v41  ;;  %v5076_v37 = vmul.f32 %v5044_v57, %v10900_v40  ;;  %v5077_v23 = vmul.f32 %v5045_v6, %v10903_v60  ;;  %v11073_v24 = vld [vmem:[%s11202_s1 + $0x8] sm:$0xff]  ;;  %v11078_v6 = vld [vmem:[%s11202_s1] sm:$0xff]  ;;  %s8297_s1 = smov 88  }
0x190a   :  { %v5166_v50 = vsel %vm860_vm5, %v5165_v22, %v5164_v53  ;;  %v5078_v21 = vmul.f32 %v5046_v3, %v10907_v42  ;;  %v5079_v62 = vmul.f32 %v5047_v0, %v10910_v15  ;;  %v5097_v59 = vmul.f32 %v10967_v5, %v5072_v9 }
0x190b   :  { %v5168_v55 = vsel %vm863_vm6, %v5167_v11, %v5166_v50  ;;  %v5098_v7 = vmul.f32 %v10967_v5, %v5073_v20  ;;  %v5099_v43 = vmul.f32 %v10967_v5, %v5074_v10  ;;  %v5100_v41 = vmul.f32 %v10967_v5, %v5075_v49 }
0x190c   :  { %v5170_v40 = vsel %vm866_vm7, %v5169_v47, %v5168_v55  ;;  %v5101_v60 = vmul.f32 %v10967_v5, %v5076_v37  ;;  %v5102_v8 = vmul.f32 %v10967_v5, %v5077_v23  ;;  %v5103_v42 = vmul.f32 %v10967_v5, %v5078_v21 }
0x190d   :  { %5185 = vrot.lane.b32.xlu0 %v5170_v40, %s8295_s4  ;;  %v5104_v15 = vmul.f32 %v10967_v5, %v5079_v62  ;;  %v5123_v13 = vadd.f32 %v10978_v32, %v5098_v7  ;;  %v5124_v38 = vadd.f32 %v10978_v32, %v5099_v43  ;;  %v5125_v25 = vadd.f32 %v10978_v32, %v5100_v41 }
0x190e   :  { %v5126_v16 = vadd.f32 %v10978_v32, %v5101_v60  ;;  %v5122_v45 = vadd.f32 %v10978_v32, %v5097_v59  ;;  %v5127_v51 = vadd.f32 %v10978_v32, %v5102_v8  ;;  %v5128_v61 = vadd.f32 %v10978_v32, %v5103_v42 }
0x190f   :  { %v5171_v12 = vrot.slane %v5123_v13, 7  ;;  %v5173_v36 = vrot.slane %v5124_v38, 6  ;;  %v5129_v44 = vadd.f32 %v10978_v32, %v5104_v15  ;;  %v5175_v17 = vrot.slane %v5125_v25, 5 }
0x1910   :  { %v5177_v35 = vrot.slane %v5126_v16, 4  ;;  %v5179_v2 = vrot.slane %v5127_v51, 3  ;;  %v5181_v18 = vrot.slane %v5128_v61, 2 }
0x1911   :  { %v5172_v5 = vsel %vm848_vm1, %v5171_v12, %v5122_v45  ;;  %v5183_v26 = vrot.slane %v5129_v44, 1 }
0x1912   :  { %v5174_v28 = vsel %vm851_vm2, %v5173_v36, %v5172_v5 }
0x1913   :  { %v5176_v54 = vsel %vm854_vm3, %v5175_v17, %v5174_v28 }
0x1914   :  { %v5178_v34 = vsel %vm857_vm4, %v5177_v35, %v5176_v54 }
0x1915   :  { %v5180_v46 = vsel %vm860_vm5, %v5179_v2, %v5178_v34 }
0x1916   :  { %v5182_v27 = vsel %vm863_vm6, %v5181_v18, %v5180_v46 }
0x1917   :  { %v5184_v56 = vsel %vm866_vm7, %v5183_v26, %v5182_v27 }
0x1918   :  { %5187 = vrot.lane.b32.xlu1 %v5184_v56, %s8295_s4  ;;  %s8304_s4 = smov 40  }
0x197f   :  { %v11035_v32 = vpop.permute.xlu0 %5185 }
0x1980   :  { %6948 = vmatprep.mubr.msk.f32.mxu0 %vm304_vm8, %v11035_v32 }
0x198a   :  { %v11039_v29 = vpop.permute.xlu1 %5187 }
0x198b   :  { %6949 = vmatmul.mubr.msk.f32.vlgmr.msra.gmra.mrb[20].mxu0 %vm304_vm8, %v11039_v29 }
0x1a5e   :  { %v6950_v14 = vpop.f32.mrb[20].mxu0 }
0x1a5f   :  { %v11046_v33 = vadd.f32 %v6950_v14, %v6671_v1  ;;  %v5259_v52 = vpop.f32.mrb[21].mxu0 }
0x1a60   :  { %v11048_v48 = vadd.f32 %v6671_v1, %v5259_v52 }
0x1a62   :  { %6955 = vmatprep.mubr.msk.f32.mxu1 %vm5276_vm9, %v11048_v48  ;;  %v11054_v22 = vpack.i.bf16 %v11046_v33, %v11048_v48 }
0x1a64   :  { %7166 = vrot.lane.b32.xlu0 %v11054_v22, %s8296_s12 }
0x1ad6   :  { %v7167_v11 = vpop.permute.xlu0 %7166 }
0x1ad7   :  { %v7169_v47 = vunpack.i.h.bf16 %v7167_v11  ;;  %v7168_v58 = vunpack.i.l.bf16 %v7167_v11 }
0x1ad9   :  { %v7103_v30 = vpack.c.bf16 %v7169_v47, %v7168_v58 }
0x1adb   :  { %7105 = vmatprep.subr.msk.bf16.mxu1 %vm11060_vm10, %v7103_v30 }
0x1adc   :  { %7108 = vmatpush3.bf16.xpose.msk.msra.mxu1 %vm11060_vm10, %v7103_v30 }
0x1ae3   :  { %6956 = vmatmul.mubr.msk.f32.vlgmr.msra.gmra.mrb[12].mxu1 %vm5276_vm9, %v11046_v33 }
0x1bb6   :  { %v6957_v57 = vpop.f32.mrb[12].mxu1 }
0x1bb7   :  { %v5361_v63 = vmul.f32 0.35355338, %v6957_v57  ;;  %v5351_v3 = vpop.f32.mrb[13].mxu1 }
0x1bb8   :  { %v5360_v0 = vmul.f32 0.35355338, %v5351_v3 }
0x1bb9   :  { %v5363_v19 = vadd.f32 %v5361_v63, %v11073_v24 }
0x1bba   :  { %v5362_v9 = vadd.f32 %v5360_v0, %v11078_v6 }
0x1bbb   :  { %v5367_v20 = vsel %vm74_vm0, %v5363_v19, -inf }
0x1bbc   :  { %5368 = vmax.xlane.f32.xlu0 %v5367_v20  ;;  %v5364_v10 = vsel %vm74_vm0, %v5362_v9, -inf }
0x1bbd   :  { %5365 = vmax.xlane.f32.xlu1 %v5364_v10 }
0x1c49   :  { %v5369_v53 = vpop.xlane.xlu0 %5368 }
0x1c4a   :  { %v5371_v49 = vsub.f32 %v5363_v19, %v5369_v53  ;;  %v5366_v37 = vpop.xlane.xlu1 %5365 }
0x1c4b   :  { %v5370_v23 = vsub.f32 %v5362_v9, %v5366_v37 }
0x1c4c   :  { %v5374_v50 = vmul.f32 1.442695, %v5371_v49 }
0x1c4d   :  { %v5372_v21 = vmul.f32 1.442695, %v5370_v23 }
0x1c4e   :  { %8233 = vpow2.f32 %v5374_v50 }
0x1c4f   :  { %8235 = vpow2.f32 %v5372_v21 }
0x1c58   :  { %v8234_v62 = vpop.eup %8233 }
0x1c59   :  { %v8236_v59 = vpop.eup %8235  ;;  %v5379_v55 = vsel %vm74_vm0, %v8234_v62, 0.0 }
0x1c5a   :  { %5380 = vadd.xlane.f32.xlu1 %v5379_v55  ;;  %v5376_v7 = vsel %vm74_vm0, %v8236_v59, 0.0 }
0x1c5b   :  { %5377 = vadd.xlane.f32.xlu0 %v5376_v7 }
0x1c6b   :  { %7176 = vrot.lane.b32.xlu1 %v11054_v22, %s8297_s1 }
0x1c6f   :  { %5474 = vrot.lane.b32.xlu1 %v11048_v48, %s8298_s28 }
0x1c71   :  { %7171 = vrot.lane.b32.xlu0 %v11054_v22, %s8294_s0  ;;  %s8303_s0 = smov 48  }
0x1c73   :  { %7181 = vrot.lane.b32.xlu1 %v11054_v22, %s8299_s29 }
0x1c75   :  { %5476 = vrot.lane.b32.xlu0 %v11046_v33, %s8298_s28 }
0x1c77   :  { %5843 = vrot.lane.b32.xlu1 %v11046_v33, %s8300_s30 }
0x1c79   :  { %5841 = vrot.lane.b32.xlu0 %v11048_v48, %s8300_s30 }
0x1ce7   :  { %v5381_v43 = vpop.xlane.xlu1 %5380 }
0x1ce8   :  { %8237 = vrcp.f32 %v5381_v43  ;;  %v5378_v41 = vpop.xlane.xlu0 %5377 }
0x1ce9   :  { %8239 = vrcp.f32 %v5378_v41 }
0x1ceb   :  { %v7177_v40 = vpop.permute.xlu1 %7176 }
0x1cec   :  { %v7172_v60 = vpop.permute.xlu0 %7171  ;;  %v7179_v8 = vunpack.i.h.bf16 %v7177_v40  ;;  %v7178_v42 = vunpack.i.l.bf16 %v7177_v40 }
0x1ced   :  { %v7174_v15 = vunpack.i.h.bf16 %v7172_v60  ;;  %v7173_v13 = vunpack.i.l.bf16 %v7172_v60 }
0x1cee   :  { %v7113_v16 = vpack.c.bf16 %v7179_v8, %v7178_v42 }
0x1cef   :  { %v7109_v38 = vpack.c.bf16 %v7174_v15, %v7173_v13  ;;  %v5475_v25 = vpop.permute.xlu1 %5474 }
0x1cf0   :  { %v5477_v28 = vpop.permute.xlu0 %5476 }
0x1cf1   :  { %7110 = vmatprep.subr.bf16.mxu0 %v7109_v38 }
0x1cf2   :  { %v8238_v45 = vpop.eup %8237  ;;  %7112 = vmatpush3.bf16.msra.mxu0 %v7109_v38 }
0x1cf3   :  { %v8240_v51 = vpop.eup %8239  ;;  %v7182_v12 = vpop.permute.xlu1 %7181  ;;  %7115 = vmatprep.subr.msk.bf16.mxu0 %vm11060_vm10, %v7113_v16  ;;  %v5385_v61 = vmul.f32 %v8238_v45, %v8234_v62 }
0x1cf4   :  { %v5384_v36 = vmul.f32 %v8240_v51, %v8236_v59  ;;  %v7184_v44 = vunpack.i.h.bf16 %v7182_v12  ;;  %v7183_v5 = vunpack.i.l.bf16 %v7182_v12  ;;  %v5842_v35 = vpop.permute.xlu0 %5841 }
0x1cf6   :  { %6962 = vmatprep.mubr.msk.f32.mxu0 %vm74_vm0, %v5384_v36  ;;  %v7123_v17 = vpack.c.bf16 %v7184_v44, %v7183_v5 }
0x1cf7   :  { %6963 = vmatmul.mubr.msk.f32.vlgmr.msra.gmra.mrb[22].mxu0 %vm74_vm0, %v5385_v61  ;;  %v5844_v54 = vpop.permute.xlu1 %5843 }
0x1cf8   :  { %6969 = vmatprep.mubr.msk.f32.mxu0 %vm5276_vm9, %v5475_v25 }
0x1cfb   :  { %7118 = vmatpush3.bf16.xpose.msk.msra.mxu0 %vm11060_vm10, %v7113_v16 }
0x1cfc   :  { %7125 = vmatprep.subr.msk.bf16.mxu0 %vm11060_vm10, %v7123_v17 }
0x1d02   :  { %6970 = vmatmul.mubr.msk.f32.vlgmr.msra.gmra.mrb[24].mxu0 %vm5276_vm9, %v5477_v28  ;;  %v5473_v28 = vld [vmem:[%s11210_s9] sm:$0xff] }
0x1d03   :  { %7128 = vmatpush3.bf16.xpose.msk.msra.mxu0 %vm11060_vm10, %v7123_v17  ;;  %6993 = vmatprep.mubr.msk.f32.mxu0 %vm5276_vm9, %v5842_v35  ;;  %v5678_v17 = vld [vmem:[%s11210_s9 + $0x8] sm:$0xff] }
0x1d0a   :  { %6994 = vmatmul.mubr.msk.f32.vlgmr.msra.gmra.mrb[26].mxu0 %vm5276_vm9, %v5844_v54 }
0x1dca   :  { %v11108_v2 = vpop.f32.mrb[22].mxu0 }
0x1dcb   :  { %v11110_v34 = vpop.f32.mrb[23].mxu0 }
0x1dd5   :  { %v6971_v18 = vpop.f32.mrb[24].mxu0 }
0x1dd6   :  { %v5566_v46 = vmul.f32 0.35355338, %v6971_v18  ;;  %v5556_v26 = vpop.f32.mrb[25].mxu0 }
0x1dd7   :  { %v5565_v27 = vmul.f32 0.35355338, %v5556_v26 }
0x1dd8   :  { %v5568_v56 = vadd.f32 %v5566_v46, %v11073_v24 }
0x1dd9   :  { %v5567_v1 = vadd.f32 %v5565_v27, %v11078_v6 }
0x1dda   :  { %v5572_v14 = vsel %vm74_vm0, %v5568_v56, -inf }
0x1ddb   :  { %5573 = vmax.xlane.f32.xlu1 %v5572_v14  ;;  %v5569_v52 = vsel %vm74_vm0, %v5567_v1, -inf }
0x1ddc   :  { %5570 = vmax.xlane.f32.xlu0 %v5569_v52 }
0x1ddd   :  { %v6995_v11 = vpop.f32.mrb[26].mxu0 }
0x1dde   :  { %v5923_v47 = vpop.f32.mrb[27].mxu0  ;;  %v5933_v58 = vmul.f32 0.35355338, %v6995_v11 }
0x1ddf   :  { %v5932_v62 = vmul.f32 0.35355338, %v5923_v47 }
0x1de0   :  { %v5935_v30 = vadd.f32 %v5933_v58, %v11073_v24 }
0x1de1   :  { %v5934_v59 = vadd.f32 %v5932_v62, %v11078_v6 }
0x1de2   :  { %v5939_v57 = vsel %vm74_vm0, %v5935_v30, -inf }
0x1de3   :  { %v5936_v55 = vsel %vm74_vm0, %v5934_v59, -inf }
0x1dec   :  { %7186 = vrot.lane.b32.xlu1 %v11054_v22, %s8301_s14 }
0x1df0   :  { %6129 = vrot.lane.b32.xlu1 %v11048_v48, %s8302_s15 }
0x1df4   :  { %6131 = vrot.lane.b32.xlu1 %v11046_v33, %s8302_s15 }
0x1e18   :  { %5940 = vmax.xlane.f32.xlu1 %v5939_v57 }
0x1e29   :  { %7196 = vrot.lane.b32.xlu1 %v11054_v22, %s8303_s0 }
0x1e2d   :  { %7201 = vrot.lane.b32.xlu1 %v11054_v22, %s8304_s4 }
0x1e68   :  { %v5574_v63 = vpop.xlane.xlu1 %5573 }
0x1e69   :  { %v5576_v3 = vsub.f32 %v5568_v56, %v5574_v63  ;;  %v5571_v0 = vpop.xlane.xlu0 %5570 }
0x1e6a   :  { %v5575_v19 = vsub.f32 %v5567_v1, %v5571_v0 }
0x1e6b   :  { %v5579_v9 = vmul.f32 1.442695, %v5576_v3 }
0x1e6c   :  { %v5577_v48 = vmul.f32 1.442695, %v5575_v19  ;;  %v7187_v20 = vpop.permute.xlu1 %7186 }
0x1e6d   :  { %v7189_v33 = vunpack.i.h.bf16 %v7187_v20  ;;  %v7188_v10 = vunpack.i.l.bf16 %v7187_v20 }
0x1e6e   :  { %8241 = vpow2.f32 %v5577_v48 }
0x1e6f   :  { %v7119_v53 = vpack.c.bf16 %v7189_v33, %v7188_v10  ;;  %8243 = vpow2.f32 %v5579_v9  ;;  %v6045_v9 = vld [vmem:[%s11210_s9 + $0x10] sm:$0xff] }
0x1e70   :  { %v6130_v49 = vpop.permute.xlu1 %6129 }
0x1e71   :  { %7120 = vmatprep.subr.bf16.mxu1 %v7119_v53  ;;  %7012 = vmatprep.mubr.msk.f32.mxu0 %vm5276_vm9, %v6130_v49 }
0x1e72   :  { %7122 = vmatpush3.bf16.msra.mxu1 %v7119_v53 }
0x1e73   :  { %6979 = vmatprep.subr.mxu1 %v5678_v17 }
0x1e74   :  { %v6132_v38 = vpop.permute.xlu1 %6131 }
0x1e78   :  { %v8242_v37 = vpop.eup %8241 }
0x1e79   :  { %v5581_v23 = vsel %vm74_vm0, %v8242_v37, 0.0  ;;  %v8244_v50 = vpop.eup %8243 }
0x1e7a   :  { %5582 = vadd.xlane.f32.xlu0 %v5581_v23  ;;  %v5584_v21 = vsel %vm74_vm0, %v8244_v50, 0.0 }
0x1e7e   :  { %5585 = vadd.xlane.f32.xlu0 %v5584_v21 }
0x1e94   :  { %7191 = vrot.lane.b32.xlu0 %v11054_v22, %s8305_s16 }
0x1ea5   :  { %v5941_v25 = vpop.xlane.xlu1 %5940 }
0x1ea6   :  { %v5943_v16 = vsub.f32 %v5935_v30, %v5941_v25 }
0x1ea8   :  { %v5946_v12 = vmul.f32 1.442695, %v5943_v16 }
0x1ea9   :  { %v7197_v54 = vpop.permute.xlu1 %7196 }
0x1eaa   :  { %v7199_v46 = vunpack.i.h.bf16 %v7197_v54  ;;  %v7198_v26 = vunpack.i.l.bf16 %v7197_v54 }
0x1eac   :  { %v7129_v1 = vpack.c.bf16 %v7199_v46, %v7198_v26 }
0x1ead   :  { %v7202_v57 = vpop.permute.xlu1 %7201 }
0x1eae   :  { %v7203_v48 = vunpack.i.l.bf16 %v7202_v57 }
0x1eb3   :  { %5937 = vmax.xlane.f32.xlu0 %v5936_v55 }
0x1f07   :  { %v5583_v7 = vpop.xlane.xlu0 %5582 }
0x1f08   :  { %8245 = vrcp.f32 %v5583_v7  ;;  %v6333_v7 = vld [vmem:[%s11210_s9 + $0x18] sm:$0xff] }
0x1f0b   :  { %v5586_v43 = vpop.xlane.xlu0 %5585 }
0x1f0c   :  { %8247 = vrcp.f32 %v5586_v43 }
0x1f0f   :  { %v7192_v41 = vpop.permute.xlu0 %7191 }
0x1f10   :  { %v7194_v40 = vunpack.i.h.bf16 %v7192_v41  ;;  %v7193_v60 = vunpack.i.l.bf16 %v7192_v41 }
0x1f12   :  { %v8246_v8 = vpop.eup %8245  ;;  %v7133_v42 = vpack.c.bf16 %v7194_v40, %v7193_v60 }
0x1f13   :  { %v5589_v15 = vmul.f32 %v8246_v8, %v8242_v37 }
0x1f14   :  { %7135 = vmatprep.subr.msk.bf16.mxu0 %vm11060_vm10, %v7133_v42 }
0x1f15   :  { %6976 = vmatprep.mubr.msk.f32.mxu1 %vm74_vm0, %v5589_v15  ;;  %7138 = vmatpush3.bf16.xpose.msk.msra.mxu0 %vm11060_vm10, %v7133_v42 }
0x1f16   :  { %v8248_v22 = vpop.eup %8247 }
0x1f17   :  { %v5590_v13 = vmul.f32 %v8248_v22, %v8244_v50 }
0x1f19   :  { %6977 = vmatmul.mubr.msk.f32.vlgmr.msra.gmra.mrb[14].mxu1 %vm74_vm0, %v5590_v13  ;;  %v6706_v13 = vld [vmem:[%s11211_s10] ss:$0 sm:$0xff] }
0x1f1a   :  { %6980 = vmatpush3.msra.mxu1 %v5678_v17 }
0x1f1b   :  { %6984 = vmatprep.subr.mxu1 %v5473_v28 }
0x1f1c   :  { %7013 = vmatmul.mubr.msk.f32.vlgmr.msra.gmra.mrb[28].mxu0 %vm5276_vm9, %v6132_v38 }
0x1f40   :  { %v5938_v45 = vpop.xlane.xlu0 %5937 }
0x1f41   :  { %v5942_v51 = vsub.f32 %v5934_v59, %v5938_v45 }
0x1f43   :  { %v5944_v36 = vmul.f32 1.442695, %v5942_v51 }
0x1f45   :  { %8249 = vpow2.f32 %v5944_v36 }
0x1f46   :  { %8251 = vpow2.f32 %v5946_v12 }
0x1f4f   :  { %v8250_v61 = vpop.eup %8249 }
0x1f50   :  { %v5948_v44 = vsel %vm74_vm0, %v8250_v61, 0.0  ;;  %v8252_v31 = vpop.eup %8251 }
0x1f51   :  { %5949 = vadd.xlane.f32.xlu0 %v5948_v44  ;;  %v5951_v5 = vsel %vm74_vm0, %v8252_v31, 0.0 }
0x1f55   :  { %5952 = vadd.xlane.f32.xlu0 %v5951_v5 }
0x1fde   :  { %v5950_v35 = vpop.xlane.xlu0 %5949 }
0x1fdf   :  { %8253 = vrcp.f32 %v5950_v35 }
0x1fe2   :  { %v5953_v18 = vpop.xlane.xlu0 %5952 }
0x1fe3   :  { %8255 = vrcp.f32 %v5953_v18 }
0x1fe9   :  { %v8254_v58 = vpop.eup %8253 }
0x1fea   :  { %v5956_v19 = vmul.f32 %v8254_v58, %v8250_v61 }
0x1fec   :  { %v6978_v27 = vpop.f32.mrb[14].mxu1 }
0x1fed   :  { %v5669_v56 = vpop.f32.mrb[15].mxu1  ;;  %v8256_v0 = vpop.eup %8255 }
0x1fee   :  { %6981 = vmatprep.mubr.msk.f32.mxu1 %vm5276_vm9, %v5669_v56 }
0x1fef   :  { %6982 = vmatmul.mubr.msk.f32.vlgmr.msra.gmra.mrb[16].mxu1 %vm5276_vm9, %v6978_v27  ;;  %v7014_v14 = vpop.f32.mrb[28].mxu0 }
0x1ff0   :  { %6985 = vmatpush3.msra.mxu1 %v5473_v28  ;;  %6986 = vmatprep.mubr.msk.f32.mxu1 %vm5276_vm9, %v11110_v34  ;;  %v6211_v52 = vpop.f32.mrb[29].mxu0  ;;  %v6221_v11 = vmul.f32 0.35355338, %v7014_v14  ;;  %v7204_v34 = vunpack.i.h.bf16 %v7202_v57  ;;  %v6707_v57 = vld [vmem:[%s11212_s11] ss:$0 sm:$0xff]  ;;  %s8306_s11 = smov [#allocation4]  }
0x1ff1   :  { %7130 = vmatprep.subr.bf16.mxu1 %v7129_v1  ;;  %v6220_v47 = vmul.f32 0.35355338, %v6211_v52  ;;  %s6502_s25 = sshll.u32 %s8306_s11, 4  ;;  %s6503_s25 = int_to_ptr.vmem [resolvable:$true] %s6502_s25 }
0x1ff2   :  { %v6223_v63 = vadd.f32 %v6221_v11, %v11073_v24  ;;  %v7139_v20 = vpack.c.bf16 %v7204_v34, %v7203_v48  ;;  %s8269_s6 = scalar_lea.vmem %s6503_s25, 32  ;;  %p8274_p1 = scmp.lt.s32.totalorder %s6503_s25, %s6503_s25 }
0x1ff3   :  { %v6222_v30 = vadd.f32 %v6220_v47, %v11078_v6  ;;  %v5957_v6 = vmul.f32 %v8256_v0, %v8252_v31  ;;  %p8270_p0 = scmp.ne.s32.totalorder %s6503_s25, %s8269_s6  ;;  %p8275_p2 = scmp.lt.s32.totalorder %s8269_s6, %s8269_s6 }
0x1ff4   :  { %v6227_v24 = vsel %vm74_vm0, %v6223_v63, -inf }
0x1ff5   :  { %v6224_v3 = vsel %vm74_vm0, %v6222_v30, -inf  ;;  %p8276_p3 = por %p8275_p2, %p8274_p1 }
0x1ff6   :  { %6225 = vmax.xlane.f32.xlu0 %v6224_v3 }
0x1ff7   :  { %6987 = vmatmul.mubr.msk.f32.vlgmr.msra.gmra.mrb[16].mxu1 %vm5276_vm9, %v11108_v2  ;;  %p8277_p4 = pnand %p8276_p3, %p8270_p0 }
0x1ff8   :  { %7132 = vmatpush3.bf16.msra.mxu1 %v7129_v1  ;;  %7000 = vmatprep.mubr.msk.f32.mxu1 %vm74_vm0, %v5956_v19 }
0x1ff9   :  { %7003 = vmatprep.subr.mxu1 %v6045_v9 }
0x1ffa   :  { %6228 = vmax.xlane.f32.xlu0 %v6227_v24  ;;  %v6482_v24 = vlaneseq }
0x1ffb   :  { %7001 = vmatmul.mubr.msk.f32.vlgmr.msra.gmra.mrb[18].mxu1 %vm74_vm0, %v5957_v6 }
0x1ffc   :  { %7004 = vmatpush3.msra.mxu1 %v6045_v9 }
0x1ffd   :  { %7140 = vmatprep.subr.bf16.mxu1 %v7139_v20 }
0x2083   :  { %v6226_v33 = vpop.xlane.xlu0 %6225 }
0x2084   :  { %v6230_v10 = vsub.f32 %v6222_v30, %v6226_v33  ;;  %v6485_v33 = vshrl.u32 %v6482_v24, 7 }
0x2086   :  { %v6232_v53 = vmul.f32 1.442695, %v6230_v10 }
0x2087   :  { %v6229_v49 = vpop.xlane.xlu0 %6228 }
0x2088   :  { %8257 = vpow2.f32 %v6232_v53  ;;  %v6231_v37 = vsub.f32 %v6223_v63, %v6229_v49 }
0x208a   :  { %v6234_v2 = vmul.f32 1.442695, %v6231_v37 }
0x208c   :  { %8259 = vpow2.f32 %v6234_v2 }
0x2092   :  { %v8258_v23 = vpop.eup %8257 }
0x2093   :  { %v6236_v50 = vsel %vm74_vm0, %v8258_v23, 0.0 }
0x2094   :  { %6237 = vadd.xlane.f32.xlu0 %v6236_v50 }
0x2096   :  { %v8260_v21 = vpop.eup %8259 }
0x2097   :  { %v6239_v62 = vsel %vm74_vm0, %v8260_v21, 0.0 }
0x2098   :  { %6240 = vadd.xlane.f32.xlu0 %v6239_v62 }
0x20ce   :  { %v7002_v59 = vpop.f32.mrb[18].mxu1 }
0x20cf   :  { %v6036_v55 = vpop.f32.mrb[19].mxu1 }
0x20d0   :  { %7005 = vmatprep.mubr.msk.f32.mxu1 %vm5276_vm9, %v6036_v55 }
0x20d1   :  { %7006 = vmatmul.mubr.msk.f32.vlgmr.msra.gmra.mrb[16].mxu1 %vm5276_vm9, %v7002_v59 }
0x20d2   :  { %7142 = vmatpush3.bf16.msra.mxu1 %v7139_v20  ;;  %v6483_v20 = vand.u32 127, %v6482_v24 }
0x20d3   :  { %7022 = vmatprep.subr.mxu1 %v6333_v7 }
0x20d4   :  { %v6486_v49 = vsub.s32 %v6483_v20, %v6485_v33 }
0x2121   :  { %v6238_v43 = vpop.xlane.xlu0 %6237 }
0x2122   :  { %8261 = vrcp.f32 %v6238_v43 }
0x2125   :  { %v6241_v41 = vpop.xlane.xlu0 %6240 }
0x2126   :  { %8263 = vrcp.f32 %v6241_v41 }
0x212c   :  { %v8262_v40 = vpop.eup %8261 }
0x212d   :  { %v6244_v60 = vmul.f32 %v8262_v40, %v8258_v23 }
0x212f   :  { %7019 = vmatprep.mubr.msk.f32.mxu1 %vm74_vm0, %v6244_v60 }
0x2130   :  { %v8264_v8 = vpop.eup %8263 }
0x2131   :  { %v6245_v42 = vmul.f32 %v8264_v8, %v8260_v21 }
0x2133   :  { %7020 = vmatmul.mubr.msk.f32.vlgmr.msra.gmra.mrb[20].mxu1 %vm74_vm0, %v6245_v42 }
0x2134   :  { %7023 = vmatpush3.msra.mxu1 %v6333_v7 }
0x2206   :  { %v7021_v15 = vpop.f32.mrb[20].mxu1 }
0x2207   :  { %v6324_v22 = vpop.f32.mrb[21].mxu1 }
0x2208   :  { %7024 = vmatprep.mubr.msk.f32.mxu1 %vm5276_vm9, %v6324_v22 }
0x2209   :  { %7025 = vmatmul.mubr.msk.f32.vlgmr.msra.gmra.mrb[16].mxu1 %vm5276_vm9, %v7021_v15 }
0x22dc   :  { %v7026_v38 = vpop.f32.mrb[16].mxu1 }
0x22dd   :  { %v6425_v25 = vadd.f32 %v7026_v38, %v6706_v13  ;;  %v6406_v16 = vpop.f32.mrb[17].mxu1 }
0x22de   :  { %v6424_v45 = vadd.f32 %v6706_v13, %v6406_v16 }
0x22df   :  { %v6429_v51 = vadd.f32 %v6425_v25, %v11039_v29 }
0x22e0   :  { %v6428_v12 = vadd.f32 %v6424_v45, %v11035_v32  ;;  %v6475_v32 = vld [vmem:[#allocation3] sm:$0x1] }
0x22e1   :  { %v6433_v36 = vsel %vm304_vm8, %v6429_v51, 0.0  ;;  %7149 = vpush %v6475_v32 }
0x22e2   :  { %6434 = vadd.xlane.f32.xlu1 %v6433_v36  ;;  %v6430_v61 = vsel %vm304_vm8, %v6428_v12, 0.0 }
0x22e3   :  { %6431 = vadd.xlane.f32.xlu0 %v6430_v61 }
0x2312   :  { %s7150_s24 = spop %7149 }
0x2313   :  { %v6477_v10 = vstv %s7150_s24 }
0x236f   :  { %v6435_v44 = vpop.xlane.xlu1 %6434 }
0x2370   :  { %v6437_v31 = vmul.f32 0.03125, %v6435_v44  ;;  %v6432_v5 = vpop.xlane.xlu0 %6431 }
0x2371   :  { %v6436_v17 = vmul.f32 0.03125, %v6432_v5 }
0x2372   :  { %v6439_v28 = vsub.f32 %v6429_v51, %v6437_v31 }
0x2373   :  { %v6438_v35 = vsub.f32 %v6428_v12, %v6436_v17 }
0x2374   :  { %v6441_v46 = vmul.f32 %v6439_v28, %v6439_v28 }
0x2375   :  { %v6440_v54 = vmul.f32 %v6438_v35, %v6438_v35 }
0x2376   :  { %v6445_v29 = vsel %vm304_vm8, %v6441_v46, 0.0 }
0x2377   :  { %v6442_v18 = vsel %vm304_vm8, %v6440_v54, 0.0 }
0x2378   :  { %6443 = vadd.xlane.f32.xlu0 %v6442_v18 }
0x237c   :  { %6446 = vadd.xlane.f32.xlu0 %v6445_v29 }
0x2405   :  { %v6444_v26 = vpop.xlane.xlu0 %6443 }
0x2406   :  { %v6448_v27 = vmul.f32 0.03125, %v6444_v26 }
0x2408   :  { %v6450_v56 = vadd.f32 1e-05, %v6448_v27 }
0x2409   :  { %v6447_v1 = vpop.xlane.xlu0 %6446 }
0x240a   :  { %8265 = vrsqrt.f32 %v6450_v56  ;;  %v6449_v14 = vmul.f32 0.03125, %v6447_v1 }
0x240c   :  { %v6451_v52 = vadd.f32 1e-05, %v6449_v14 }
0x240e   :  { %8267 = vrsqrt.f32 %v6451_v52 }
0x2414   :  { %v8266_v11 = vpop.eup %8265 }
0x2415   :  { %v6454_v47 = vmul.f32 %v8266_v11, %v6438_v35 }
0x2417   :  { %v6456_v58 = vmul.f32 %v10944_v4, %v6454_v47 }
0x2418   :  { %v8268_v30 = vpop.eup %8267 }
0x2419   :  { %v6458_v63 = vadd.f32 %v10951_v39, %v6456_v58  ;;  %v6455_v3 = vmul.f32 %v8268_v30, %v6439_v28 }
0x241b   :  { %v6467_v0 = vmul.f32 %v6707_v57, %v6458_v63  ;;  %v6457_v19 = vmul.f32 %v10944_v4, %v6455_v3 }
0x241d   :  { %v6469_v9 = vsel %vm304_vm8, %v6467_v0, 0.0  ;;  %v6459_v34 = vadd.f32 %v10951_v39, %v6457_v19 }
0x241e   :  { %6470 = vadd.xlane.f32.xlu0 %v6469_v9 }
0x241f   :  { %v6468_v48 = vmul.f32 %v6707_v57, %v6459_v34 }
0x2421   :  { %v6472_v6 = vsel %vm304_vm8, %v6468_v48, 0.0 }
0x2422   :  { %6473 = vadd.xlane.f32.xlu0 %v6472_v6 }
0x24ab   :  { %v6471_v53 = vpop.xlane.xlu0 %6470 }
0x24ac   :  { %v6478_v37 = vadd.f32 %v6477_v10, %v6471_v53 }
0x24ae   :  { %v6487_v4 = vrot.slane %v6478_v37, %v6486_v49 }
0x24af   :  { %v6474_v2 = vpop.xlane.xlu0 %6473 }
0x24b0   :  { %v6479_v23 = vadd.f32 %v6477_v10, %v6474_v2 }
0x24b2   :  { %v6491_v50 = vrot.slane %v6479_v23, %v6486_v49 }
0x24b4   :  { %v6492_v39 = vsel %vm848_vm1, %v6491_v50, %v6487_v4 }
0x24b5   :  { %6495 = vst.msk [vmem:[#allocation4] sm:$0x3] %vm6494_vm11, %v6492_v39 }
0x24b6   :  { %8280 = shalt.err (!%p8277_p4)
}
0x24b7   :  { %s8281_s3 = scalar_lea.hbm %s11214_s13, 32 }
0x24b8   :  { %p8282_p5 = scmp.ne.s32.totalorder %s11214_s13, %s8281_s3  ;;  %p8285_p6 = scmp.lt.u32.totalorder %s8281_s3, %s11214_s13 }
0x24ba   :  { %p8287_p7 = pnand %p8285_p6, %p8282_p5 }
0x24bc   :  { %8290 = shalt.err (!%p8287_p7)
}
0x24bd   :  { %6505 = dma.vmem_to_hbm [thread:$0]  %s6503_s25, 32, %s11214_s13, [#allocation5]  }
0x24be   :  { %8291 = dma.done.wait [#allocation5], 32  }
0x24bf   :  { %8292 = vsyncadd [#allocation5], 4294967264 }
0x24c0   :  { %6509 = vsyncpa [#allocation5], 1 }

</bundles_post_ra>
